<compile_context>
chip_gen: v5e
topology: v5e:2x2
jax: 0.10.0
libtpu: 0.0.40
codegen_flags: <defaults>
</compile_context>

<pallas_src>
import functools
import math

import jax
import jax.numpy as jnp
from jax.experimental import pallas as pl
from jax.experimental.pallas import tpu as pltpu


def _round_up(x, m):
    return ((x + m - 1) // m) * m


def _vmem_limit():
    """VMEM limit: ~3/4 of physical (96 MiB on v5e/v6e, 48 MiB on v7x), safe fallback."""
    limit = 48 * 1024 * 1024
    try:
        cap = int(pltpu.get_tpu_info().vmem_capacity_bytes)
        limit = int(min(cap * 3 // 4, 100 * 1024 * 1024))
    except Exception:
        pass
    return limit


def _choose_tm(M, cap):
    """Largest divisor of M that is <= cap and a multiple of 8 (sublane rule)."""
    cap = int(max(8, min(cap, M)))
    if M >= 16:
        cap = min(cap, max(8, M // 2))   # keep >= 2 M-tiles so both v7x TCs get work
    for d in range(cap, 7, -1):
        if M % d == 0 and d % 8 == 0:
            return d
    return M                              # full dim is exempt from the (8,128) rule


# --------------------------------------------------------------------------
# Path A: small Cin -> wrapper im2col, kernel = one dot (K = 9*Cin) + epilogue
# --------------------------------------------------------------------------
def _im2col_bn_act_kernel(x_ref, w_ref, s_ref, t_ref, o_ref, *, apply_relu):
    # x_ref: (tm, 9*Cin) bf16 | w_ref: (9*Cin, Coutp) bf16 | s/t: (1, Coutp) f32
    y = jnp.dot(x_ref[...], w_ref[...], preferred_element_type=jnp.float32)
    y = y * s_ref[...] + t_ref[...]
    if apply_relu:
        y = jnp.maximum(y, 0.0)
    o_ref[...] = y.astype(o_ref.dtype)


def _conv_small_cin(x_nhwc, params, *, out_dtype, apply_relu):
    N, H, W, Cin = x_nhwc.shape
    w = params["w"]                                   # (3, 3, Cin, Cout)
    Cout = w.shape[-1]
    Coutp = _round_up(Cout, 128)                      # lane-dense accumulator/output
    K = 9 * Cin

    x = x_nhwc.astype(jnp.bfloat16)
    xp = jnp.pad(x, ((0, 0), (1, 1), (1, 1), (0, 0)))
    taps = [xp[:, dy:dy + H, dx:dx + W, :] for dy in range(3) for dx in range(3)]
    xim = jnp.concatenate(taps, axis=-1).reshape(N * H * W, K)        # im2col, K = 9*Cin

    wb = jnp.pad(w.reshape(K, Cout).astype(jnp.bfloat16), ((0, 0), (0, Coutp - Cout)))
    s = jnp.pad(params["s"].astype(jnp.float32), (0, Coutp - Cout)).reshape(1, Coutp)
    t = jnp.pad(params["t"].astype(jnp.float32), (0, Coutp - Cout)).reshape(1, Coutp)

    M = N * H * W
    out_bytes = jnp.dtype(out_dtype).itemsize
    vlimit = _vmem_limit()
    per_row = 2 * (K * 2) + 2 * (Coutp * out_bytes)   # double-buffered in + out bytes/row
    cap = min(8192, max(8, (vlimit * 3 // 8) // max(per_row, 1)))
    tm = _choose_tm(M, cap)
    grid = (M // tm,)

    out = pl.pallas_call(
        functools.partial(_im2col_bn_act_kernel, apply_relu=apply_relu),
        out_shape=jax.ShapeDtypeStruct((M, Coutp), out_dtype),
        grid=grid,
        in_specs=[
            pl.BlockSpec((tm, K), lambda m: (m, 0)),
            pl.BlockSpec((K, Coutp), lambda m: (0, 0)),     # weights resident
            pl.BlockSpec((1, Coutp), lambda m: (0, 0)),
            pl.BlockSpec((1, Coutp), lambda m: (0, 0)),
        ],
        out_specs=pl.BlockSpec((tm, Coutp), lambda m: (m, 0)),
        compiler_params=pltpu.CompilerParams(
            dimension_semantics=("parallel",),
            vmem_limit_bytes=vlimit,
        ),
    )(xim, wb, s, t)
    return out[:, :Cout].reshape(N, H, W, Cout)


# --------------------------------------------------------------------------
# Path B: larger Cin -> single padded copy in HBM, per-image block,
#         per-dy (H*W, 3*Cin) slab in VMEM scratch -> 3 dots of K = 3*Cin
# --------------------------------------------------------------------------
def _conv3x3_bn_act_kernel(x_ref, w_ref, s_ref, t_ref, o_ref, slab_ref, acc_ref, *,
                           H, W, Cin, apply_relu):
    # x_ref : (1, H+2, W+2, Cin) bf16  -- one zero-padded image
    # w_ref : (3, 3*Cin, Coutp)  bf16  -- resident folded weights (dy, dx*Cin+ci, co)
    # s/t   : (1, Coutp) f32           -- folded conv-bias + inference-BN scale/shift
    # slab  : (H*W, 3*Cin) bf16 scratch; acc: (H*W, Coutp) f32 scratch
    for dy in range(3):
        for dx in range(3):
            slab_ref[:, dx * Cin:(dx + 1) * Cin] = (
                x_ref[0, dy:dy + H, dx:dx + W, :].reshape(H * W, Cin))
        contrib = jnp.dot(slab_ref[...], w_ref[dy],
                          preferred_element_type=jnp.float32)
        if dy == 0:
            acc_ref[...] = contrib
        else:
            acc_ref[...] = acc_ref[...] + contrib
    y = acc_ref[...] * s_ref[...] + t_ref[...]
    if apply_relu:
        y = jnp.maximum(y, 0.0)
    o_ref[...] = y.astype(o_ref.dtype)


def _conv_large_cin(x_nhwc, params, *, out_dtype, apply_relu):
    N, H, W, Cin = x_nhwc.shape
    w = params["w"]
    Cout = w.shape[-1]
    Coutp = _round_up(Cout, 128)

    x = x_nhwc.astype(jnp.bfloat16)
    xp = jnp.pad(x, ((0, 0), (1, 1), (1, 1), (0, 0)))          # single padded copy (~1.1x)

    wb = jnp.pad(w.reshape(3, 3 * Cin, Cout).astype(jnp.bfloat16),
                 ((0, 0), (0, 0), (0, Coutp - Cout)))
    s = jnp.pad(params["s"].astype(jnp.float32), (0, Coutp - Cout)).reshape(1, Coutp)
    t = jnp.pad(params["t"].astype(jnp.float32), (0, Coutp - Cout)).reshape(1, Coutp)

    # TODO(synk): for very large H*W*Cin images the per-image block should be row-chunked
    # (overlapping row windows via manual DMA); fine for UNet conv_block sizes.
    out = pl.pallas_call(
        functools.partial(_conv3x3_bn_act_kernel, H=H, W=W, Cin=Cin,
                          apply_relu=apply_relu),
        out_shape=jax.ShapeDtypeStruct((N * H * W, Coutp), out_dtype),
        grid=(N,),
        in_specs=[
            pl.BlockSpec((1, H + 2, W + 2, Cin), lambda n: (n, 0, 0, 0)),
            pl.BlockSpec((3, 3 * Cin, Coutp), lambda n: (0, 0, 0)),   # weights resident
            pl.BlockSpec((1, Coutp), lambda n: (0, 0)),
            pl.BlockSpec((1, Coutp), lambda n: (0, 0)),
        ],
        out_specs=pl.BlockSpec((H * W, Coutp), lambda n: (n, 0)),
        scratch_shapes=[pltpu.VMEM((H * W, 3 * Cin), jnp.bfloat16),
                        pltpu.VMEM((H * W, Coutp), jnp.float32)],
        compiler_params=pltpu.CompilerParams(
            dimension_semantics=("parallel",),
            vmem_limit_bytes=_vmem_limit(),
        ),
    )(xp, wb, s, t)
    return out[:, :Cout].reshape(N, H, W, Cout)


def conv3x3_bn_relu(x_nhwc, params, *, out_dtype, apply_relu=True):
    """3x3 stride-1 pad-1 conv + folded inference BN + ReLU, NHWC layout."""
    Cin = x_nhwc.shape[-1]
    if Cin <= 32:
        return _conv_small_cin(x_nhwc, params, out_dtype=out_dtype, apply_relu=apply_relu)
    return _conv_large_cin(x_nhwc, params, out_dtype=out_dtype, apply_relu=apply_relu)


# --------------------------------------------------------------------------
# conv_block forward (conv->BN->ReLU, conv->BN->ReLU), NCHW in / NCHW out
# --------------------------------------------------------------------------
def conv_block_forward(params, x_nchw):
    x = jnp.transpose(x_nchw, (0, 2, 3, 1))                    # NCHW -> NHWC
    h = conv3x3_bn_relu(x, params["conv1"], out_dtype=jnp.bfloat16)
    y = conv3x3_bn_relu(h, params["conv2"], out_dtype=jnp.float32)
    return jnp.transpose(y, (0, 3, 1, 2))                      # NHWC -> NCHW


# --------------------------------------------------------------------------
# Deterministic parameters (conv bias + inference-BN folded into scale/shift)
# --------------------------------------------------------------------------
def _conv_bn_params(key, cin, cout):
    k1, k2, k3, k4 = jax.random.split(key, 4)
    fan_in = 9 * cin
    w = jax.random.normal(k1, (3, 3, cin, cout), jnp.float32) * math.sqrt(2.0 / fan_in)
    b = 0.01 * jax.random.normal(k2, (cout,), jnp.float32)
    gamma = 1.0 + 0.1 * jax.random.normal(k3, (cout,), jnp.float32)
    beta = 0.01 * jax.random.normal(k4, (cout,), jnp.float32)
    running_mean = jnp.zeros((cout,), jnp.float32)
    running_var = jnp.ones((cout,), jnp.float32)
    eps = 1e-5
    s = gamma / jnp.sqrt(running_var + eps)          # y = conv(x)*s + t
    t = (b - running_mean) * s + beta
    return {"w": w, "s": s, "t": t}


def init_params(key, ch_in, ch_out):
    k1, k2 = jax.random.split(key)
    return {"conv1": _conv_bn_params(k1, ch_in, ch_out),
            "conv2": _conv_bn_params(k2, ch_out, ch_out)}


# --------------------------------------------------------------------------
# Precision-matched pure-JAX reference (bf16 inputs/weights, f32 math)
# --------------------------------------------------------------------------
def _conv_block_ref(params, x_nchw):
    def layer(x, p):
        w = p["w"].astype(jnp.bfloat16).astype(jnp.float32)
        y = jax.lax.conv_general_dilated(
            x, w, window_strides=(1, 1), padding=((1, 1), (1, 1)),
            dimension_numbers=("NHWC", "HWIO", "NHWC"),
            precision=jax.lax.Precision.HIGHEST)
        y = y * p["s"].reshape(1, 1, 1, -1) + p["t"].reshape(1, 1, 1, -1)
        return jnp.maximum(y, 0.0)

    x = jnp.transpose(x_nchw, (0, 2, 3, 1)).astype(jnp.bfloat16).astype(jnp.float32)
    h = layer(x, params["conv1"])
    h = h.astype(jnp.bfloat16).astype(jnp.float32)   # kernel carries bf16 between convs
    y = layer(h, params["conv2"])
    return jnp.transpose(y, (0, 3, 1, 2))


if __name__ == "__main__":
    key = jax.random.PRNGKey(0)
    kx, kp = jax.random.split(key)

    B, CH_IN, CH_OUT, H, W = 4, 4, 64, 16, 16
    x = jax.random.normal(kx, (B, CH_IN, H, W), jnp.float32)     # NCHW like PyTorch
    params = init_params(kp, CH_IN, CH_OUT)

    fwd = jax.jit(conv_block_forward)
    out = jax.block_until_ready(fwd(params, x))

    assert out.shape == (B, CH_OUT, H, W)
    assert bool(jnp.all(jnp.isfinite(out)))

    ref = _conv_block_ref(params, x)
    assert bool(jnp.allclose(out, ref, atol=1e-2, rtol=1e-2)), \
        float(jnp.max(jnp.abs(out - ref)))

    print("KERNEL_OK")
</pallas_src>

<mosaic_0001>
module attributes {stable_mosaic.version = 11 : i64} {
  func.func @_im2col_bn_act_kernel(%arg0: i32, %arg1: memref<512x36xbf16, #tpu.memory_space<vmem>>, %arg2: memref<36x128xbf16, #tpu.memory_space<vmem>>, %arg3: memref<1x128xf32, #tpu.memory_space<vmem>>, %arg4: memref<1x128xf32, #tpu.memory_space<vmem>>, %arg5: memref<512x128xbf16, #tpu.memory_space<vmem>>) attributes {dimension_semantics = [#tpu.dimension_semantics<parallel>], iteration_bounds = array<i64: 2>, scalar_prefetch = 0 : i64, scratch_operands = 0 : i64, tpu.core_type = #tpu.core_type<tc>, window_params = [{transform_indices = @transform_0, window_bounds = array<i64: 512, 36>}, {pipeline_mode = #tpu.pipeline_mode<synchronous>, transform_indices = @transform_1, window_bounds = array<i64: 36, 128>}, {pipeline_mode = #tpu.pipeline_mode<synchronous>, transform_indices = @transform_2, window_bounds = array<i64: 1, 128>}, {pipeline_mode = #tpu.pipeline_mode<synchronous>, transform_indices = @transform_3, window_bounds = array<i64: 1, 128>}, {transform_indices = @transform_4, window_bounds = array<i64: 512, 128>}]} {
    %c0 = arith.constant 0 : index
    %c0_0 = arith.constant 0 : index
    %0 = vector.load %arg1[%c0, %c0_0] : memref<512x36xbf16, #tpu.memory_space<vmem>>, vector<512x36xbf16>
    %c0_1 = arith.constant 0 : index
    %c0_2 = arith.constant 0 : index
    %1 = vector.load %arg2[%c0_1, %c0_2] : memref<36x128xbf16, #tpu.memory_space<vmem>>, vector<36x128xbf16>
    %cst = arith.constant dense<0.000000e+00> : vector<512x128xf32>
    %2 = tpu.matmul %0, %1, %cst {dimension_numbers = #tpu.dot_dimension_numbers<[1], [0], [0], [1], [0, 0, 1, 1], [], []>} : vector<512x36xbf16>, vector<36x128xbf16>, vector<512x128xf32> -> vector<512x128xf32>
    %c0_3 = arith.constant 0 : index
    %c0_4 = arith.constant 0 : index
    %3 = vector.load %arg3[%c0_3, %c0_4] : memref<1x128xf32, #tpu.memory_space<vmem>>, vector<1x128xf32>
    %4 = vector.broadcast %3 : vector<1x128xf32> to vector<512x128xf32>
    %5 = arith.mulf %2, %4 : vector<512x128xf32>
    %c0_5 = arith.constant 0 : index
    %c0_6 = arith.constant 0 : index
    %6 = vector.load %arg4[%c0_5, %c0_6] : memref<1x128xf32, #tpu.memory_space<vmem>>, vector<1x128xf32>
    %7 = vector.broadcast %6 : vector<1x128xf32> to vector<512x128xf32>
    %8 = arith.addf %5, %7 : vector<512x128xf32>
    %cst_7 = arith.constant 0.000000e+00 : f32
    %9 = vector.broadcast %cst_7 : f32 to vector<512x128xf32>
    %10 = arith.maximumf %8, %9 : vector<512x128xf32>
    %11 = arith.truncf %10 : vector<512x128xf32> to vector<512x128xbf16>
    %c0_8 = arith.constant 0 : index
    %c0_9 = arith.constant 0 : index
    %12 = vector.load %arg5[%c0_8, %c0_9] : memref<512x128xbf16, #tpu.memory_space<vmem>>, vector<512x128xbf16>
    tpu.vector_store %arg5[%c0_8, %c0_9], %11 {strides = array<i32>} : memref<512x128xbf16, #tpu.memory_space<vmem>>, vector<512x128xbf16>,
    return
  }
  func.func @transform_0(%arg0: i32) -> (i32, i32) {
    %c0_i32 = arith.constant 0 : i32
    %c0_i32_0 = arith.constant 0 : i32
    return %arg0, %c0_i32 : i32, i32
  }
  func.func @transform_1(%arg0: i32) -> (i32, i32) {
    %c0_i32 = arith.constant 0 : i32
    %c0_i32_0 = arith.constant 0 : i32
    %c0_i32_1 = arith.constant 0 : i32
    return %c0_i32, %c0_i32_0 : i32, i32
  }
  func.func @transform_2(%arg0: i32) -> (i32, i32) {
    %c0_i32 = arith.constant 0 : i32
    %c0_i32_0 = arith.constant 0 : i32
    %c0_i32_1 = arith.constant 0 : i32
    return %c0_i32, %c0_i32_0 : i32, i32
  }
  func.func @transform_3(%arg0: i32) -> (i32, i32) {
    %c0_i32 = arith.constant 0 : i32
    %c0_i32_0 = arith.constant 0 : i32
    %c0_i32_1 = arith.constant 0 : i32
    return %c0_i32, %c0_i32_0 : i32, i32
  }
  func.func @transform_4(%arg0: i32) -> (i32, i32) {
    %c0_i32 = arith.constant 0 : i32
    %c0_i32_0 = arith.constant 0 : i32
    return %arg0, %c0_i32 : i32, i32
  }
}

module attributes {stable_mosaic.version = 11 : i64} {
  func.func @_conv3x3_bn_act_kernel(%arg0: i32, %arg1: memref<1x18x18x64xbf16, #tpu.memory_space<vmem>>, %arg2: memref<3x192x128xbf16, #tpu.memory_space<vmem>>, %arg3: memref<1x128xf32, #tpu.memory_space<vmem>>, %arg4: memref<1x128xf32, #tpu.memory_space<vmem>>, %arg5: memref<256x128xf32, #tpu.memory_space<vmem>>, %arg6: memref<256x192xbf16, #tpu.memory_space<vmem>>, %arg7: memref<256x128xf32, #tpu.memory_space<vmem>>) attributes {dimension_semantics = [#tpu.dimension_semantics<parallel>], iteration_bounds = array<i64: 4>, scalar_prefetch = 0 : i64, scratch_operands = 2 : i64, tpu.core_type = #tpu.core_type<tc>, window_params = [{transform_indices = @transform_0, window_bounds = array<i64: 1, 18, 18, 64>}, {pipeline_mode = #tpu.pipeline_mode<synchronous>, transform_indices = @transform_1, window_bounds = array<i64: 3, 192, 128>}, {pipeline_mode = #tpu.pipeline_mode<synchronous>, transform_indices = @transform_2, window_bounds = array<i64: 1, 128>}, {pipeline_mode = #tpu.pipeline_mode<synchronous>, transform_indices = @transform_3, window_bounds = array<i64: 1, 128>}, {transform_indices = @transform_4, window_bounds = array<i64: 256, 128>}]} {
    %c0 = arith.constant 0 : index
    %c0_0 = arith.constant 0 : index
    %c0_1 = arith.constant 0 : index
    %c0_2 = arith.constant 0 : index
    %0 = vector.load %arg1[%c0, %c0_0, %c0_1, %c0_2] : memref<1x18x18x64xbf16, #tpu.memory_space<vmem>>, vector<1x16x16x64xbf16>
    %1 = vector.shape_cast %0 : vector<1x16x16x64xbf16> to vector<16x16x64xbf16>
    %2 = vector.shape_cast %1 : vector<16x16x64xbf16> to vector<256x64xbf16>
    %c0_3 = arith.constant 0 : index
    %c0_4 = arith.constant 0 : index
    %3 = vector.load %arg6[%c0_3, %c0_4] : memref<256x192xbf16, #tpu.memory_space<vmem>>, vector<256x64xbf16>
    tpu.vector_store %arg6[%c0_3, %c0_4], %2 {strides = array<i32>} : memref<256x192xbf16, #tpu.memory_space<vmem>>, vector<256x64xbf16>,
    %c0_5 = arith.constant 0 : index
    %c0_6 = arith.constant 0 : index
    %c1 = arith.constant 1 : index
    %c0_7 = arith.constant 0 : index
    %4 = vector.load %arg1[%c0_5, %c0_6, %c1, %c0_7] : memref<1x18x18x64xbf16, #tpu.memory_space<vmem>>, vector<1x16x16x64xbf16>
    %5 = vector.shape_cast %4 : vector<1x16x16x64xbf16> to vector<16x16x64xbf16>
    %6 = vector.shape_cast %5 : vector<16x16x64xbf16> to vector<256x64xbf16>
    %c0_8 = arith.constant 0 : index
    %c64 = arith.constant 64 : index
    %7 = vector.load %arg6[%c0_8, %c64] : memref<256x192xbf16, #tpu.memory_space<vmem>>, vector<256x64xbf16>
    tpu.vector_store %arg6[%c0_8, %c64], %6 {strides = array<i32>} : memref<256x192xbf16, #tpu.memory_space<vmem>>, vector<256x64xbf16>,
    %c0_9 = arith.constant 0 : index
    %c0_10 = arith.constant 0 : index
    %c2 = arith.constant 2 : index
    %c0_11 = arith.constant 0 : index
    %8 = vector.load %arg1[%c0_9, %c0_10, %c2, %c0_11] : memref<1x18x18x64xbf16, #tpu.memory_space<vmem>>, vector<1x16x16x64xbf16>
    %9 = vector.shape_cast %8 : vector<1x16x16x64xbf16> to vector<16x16x64xbf16>
    %10 = vector.shape_cast %9 : vector<16x16x64xbf16> to vector<256x64xbf16>
    %c0_12 = arith.constant 0 : index
    %c128 = arith.constant 128 : index
    %11 = vector.load %arg6[%c0_12, %c128] : memref<256x192xbf16, #tpu.memory_space<vmem>>, vector<256x64xbf16>
    tpu.vector_store %arg6[%c0_12, %c128], %10 {strides = array<i32>} : memref<256x192xbf16, #tpu.memory_space<vmem>>, vector<256x64xbf16>,
    %c0_13 = arith.constant 0 : index
    %c0_14 = arith.constant 0 : index
    %12 = vector.load %arg6[%c0_13, %c0_14] : memref<256x192xbf16, #tpu.memory_space<vmem>>, vector<256x192xbf16>
    %c0_15 = arith.constant 0 : index
    %c0_16 = arith.constant 0 : index
    %c0_17 = arith.constant 0 : index
    %13 = vector.load %arg2[%c0_15, %c0_16, %c0_17] : memref<3x192x128xbf16, #tpu.memory_space<vmem>>, vector<1x192x128xbf16>
    %14 = vector.shape_cast %13 : vector<1x192x128xbf16> to vector<192x128xbf16>
    %cst = arith.constant dense<0.000000e+00> : vector<256x128xf32>
    %15 = tpu.matmul %12, %14, %cst {dimension_numbers = #tpu.dot_dimension_numbers<[1], [0], [0], [1], [0, 0, 1, 1], [], []>} : vector<256x192xbf16>, vector<192x128xbf16>, vector<256x128xf32> -> vector<256x128xf32>
    %c0_18 = arith.constant 0 : index
    %c0_19 = arith.constant 0 : index
    %16 = vector.load %arg7[%c0_18, %c0_19] : memref<256x128xf32, #tpu.memory_space<vmem>>, vector<256x128xf32>
    tpu.vector_store %arg7[%c0_18, %c0_19], %15 {strides = array<i32>} : memref<256x128xf32, #tpu.memory_space<vmem>>, vector<256x128xf32>,
    %c0_20 = arith.constant 0 : index
    %c1_21 = arith.constant 1 : index
    %c0_22 = arith.constant 0 : index
    %c0_23 = arith.constant 0 : index
    %17 = vector.load %arg1[%c0_20, %c1_21, %c0_22, %c0_23] : memref<1x18x18x64xbf16, #tpu.memory_space<vmem>>, vector<1x16x16x64xbf16>
    %18 = vector.shape_cast %17 : vector<1x16x16x64xbf16> to vector<16x16x64xbf16>
    %19 = vector.shape_cast %18 : vector<16x16x64xbf16> to vector<256x64xbf16>
    %c0_24 = arith.constant 0 : index
    %c0_25 = arith.constant 0 : index
    %20 = vector.load %arg6[%c0_24, %c0_25] : memref<256x192xbf16, #tpu.memory_space<vmem>>, vector<256x64xbf16>
    tpu.vector_store %arg6[%c0_24, %c0_25], %19 {strides = array<i32>} : memref<256x192xbf16, #tpu.memory_space<vmem>>, vector<256x64xbf16>,
    %c0_26 = arith.constant 0 : index
    %c1_27 = arith.constant 1 : index
    %c1_28 = arith.constant 1 : index
    %c0_29 = arith.constant 0 : index
    %21 = vector.load %arg1[%c0_26, %c1_27, %c1_28, %c0_29] : memref<1x18x18x64xbf16, #tpu.memory_space<vmem>>, vector<1x16x16x64xbf16>
    %22 = vector.shape_cast %21 : vector<1x16x16x64xbf16> to vector<16x16x64xbf16>
    %23 = vector.shape_cast %22 : vector<16x16x64xbf16> to vector<256x64xbf16>
    %c0_30 = arith.constant 0 : index
    %c64_31 = arith.constant 64 : index
    %24 = vector.load %arg6[%c0_30, %c64_31] : memref<256x192xbf16, #tpu.memory_space<vmem>>, vector<256x64xbf16>
    tpu.vector_store %arg6[%c0_30, %c64_31], %23 {strides = array<i32>} : memref<256x192xbf16, #tpu.memory_space<vmem>>, vector<256x64xbf16>,
    %c0_32 = arith.constant 0 : index
    %c1_33 = arith.constant 1 : index
    %c2_34 = arith.constant 2 : index
    %c0_35 = arith.constant 0 : index
    %25 = vector.load %arg1[%c0_32, %c1_33, %c2_34, %c0_35] : memref<1x18x18x64xbf16, #tpu.memory_space<vmem>>, vector<1x16x16x64xbf16>
    %26 = vector.shape_cast %25 : vector<1x16x16x64xbf16> to vector<16x16x64xbf16>
    %27 = vector.shape_cast %26 : vector<16x16x64xbf16> to vector<256x64xbf16>
    %c0_36 = arith.constant 0 : index
    %c128_37 = arith.constant 128 : index
    %28 = vector.load %arg6[%c0_36, %c128_37] : memref<256x192xbf16, #tpu.memory_space<vmem>>, vector<256x64xbf16>
    tpu.vector_store %arg6[%c0_36, %c128_37], %27 {strides = array<i32>} : memref<256x192xbf16, #tpu.memory_space<vmem>>, vector<256x64xbf16>,
    %c0_38 = arith.constant 0 : index
    %c0_39 = arith.constant 0 : index
    %29 = vector.load %arg6[%c0_38, %c0_39] : memref<256x192xbf16, #tpu.memory_space<vmem>>, vector<256x192xbf16>
    %c1_40 = arith.constant 1 : index
    %c0_41 = arith.constant 0 : index
    %c0_42 = arith.constant 0 : index
    %30 = vector.load %arg2[%c1_40, %c0_41, %c0_42] : memref<3x192x128xbf16, #tpu.memory_space<vmem>>, vector<1x192x128xbf16>
    %31 = vector.shape_cast %30 : vector<1x192x128xbf16> to vector<192x128xbf16>
    %cst_43 = arith.constant dense<0.000000e+00> : vector<256x128xf32>
    %32 = tpu.matmul %29, %31, %cst_43 {dimension_numbers = #tpu.dot_dimension_numbers<[1], [0], [0], [1], [0, 0, 1, 1], [], []>} : vector<256x192xbf16>, vector<192x128xbf16>, vector<256x128xf32> -> vector<256x128xf32>
    %c0_44 = arith.constant 0 : index
    %c0_45 = arith.constant 0 : index
    %33 = vector.load %arg7[%c0_44, %c0_45] : memref<256x128xf32, #tpu.memory_space<vmem>>, vector<256x128xf32>
    %34 = arith.addf %33, %32 : vector<256x128xf32>
    %c0_46 = arith.constant 0 : index
    %c0_47 = arith.constant 0 : index
    %35 = vector.load %arg7[%c0_46, %c0_47] : memref<256x128xf32, #tpu.memory_space<vmem>>, vector<256x128xf32>
    tpu.vector_store %arg7[%c0_46, %c0_47], %34 {strides = array<i32>} : memref<256x128xf32, #tpu.memory_space<vmem>>, vector<256x128xf32>,
    %c0_48 = arith.constant 0 : index
    %c2_49 = arith.constant 2 : index
    %c0_50 = arith.constant 0 : index
    %c0_51 = arith.constant 0 : index
    %36 = vector.load %arg1[%c0_48, %c2_49, %c0_50, %c0_51] : memref<1x18x18x64xbf16, #tpu.memory_space<vmem>>, vector<1x16x16x64xbf16>
    %37 = vector.shape_cast %36 : vector<1x16x16x64xbf16> to vector<16x16x64xbf16>
    %38 = vector.shape_cast %37 : vector<16x16x64xbf16> to vector<256x64xbf16>
    %c0_52 = arith.constant 0 : index
    %c0_53 = arith.constant 0 : index
    %39 = vector.load %arg6[%c0_52, %c0_53] : memref<256x192xbf16, #tpu.memory_space<vmem>>, vector<256x64xbf16>
    tpu.vector_store %arg6[%c0_52, %c0_53], %38 {strides = array<i32>} : memref<256x192xbf16, #tpu.memory_space<vmem>>, vector<256x64xbf16>,
    %c0_54 = arith.constant 0 : index
    %c2_55 = arith.constant 2 : index
    %c1_56 = arith.constant 1 : index
    %c0_57 = arith.constant 0 : index
    %40 = vector.load %arg1[%c0_54, %c2_55, %c1_56, %c0_57] : memref<1x18x18x64xbf16, #tpu.memory_space<vmem>>, vector<1x16x16x64xbf16>
    %41 = vector.shape_cast %40 : vector<1x16x16x64xbf16> to vector<16x16x64xbf16>
    %42 = vector.shape_cast %41 : vector<16x16x64xbf16> to vector<256x64xbf16>
    %c0_58 = arith.constant 0 : index
    %c64_59 = arith.constant 64 : index
    %43 = vector.load %arg6[%c0_58, %c64_59] : memref<256x192xbf16, #tpu.memory_space<vmem>>, vector<256x64xbf16>
    tpu.vector_store %arg6[%c0_58, %c64_59], %42 {strides = array<i32>} : memref<256x192xbf16, #tpu.memory_space<vmem>>, vector<256x64xbf16>,
    %c0_60 = arith.constant 0 : index
    %c2_61 = arith.constant 2 : index
    %c2_62 = arith.constant 2 : index
    %c0_63 = arith.constant 0 : index
    %44 = vector.load %arg1[%c0_60, %c2_61, %c2_62, %c0_63] : memref<1x18x18x64xbf16, #tpu.memory_space<vmem>>, vector<1x16x16x64xbf16>
    %45 = vector.shape_cast %44 : vector<1x16x16x64xbf16> to vector<16x16x64xbf16>
    %46 = vector.shape_cast %45 : vector<16x16x64xbf16> to vector<256x64xbf16>
    %c0_64 = arith.constant 0 : index
    %c128_65 = arith.constant 128 : index
    %47 = vector.load %arg6[%c0_64, %c128_65] : memref<256x192xbf16, #tpu.memory_space<vmem>>, vector<256x64xbf16>
    tpu.vector_store %arg6[%c0_64, %c128_65], %46 {strides = array<i32>} : memref<256x192xbf16, #tpu.memory_space<vmem>>, vector<256x64xbf16>,
    %c0_66 = arith.constant 0 : index
    %c0_67 = arith.constant 0 : index
    %48 = vector.load %arg6[%c0_66, %c0_67] : memref<256x192xbf16, #tpu.memory_space<vmem>>, vector<256x192xbf16>
    %c2_68 = arith.constant 2 : index
    %c0_69 = arith.constant 0 : index
    %c0_70 = arith.constant 0 : index
    %49 = vector.load %arg2[%c2_68, %c0_69, %c0_70] : memref<3x192x128xbf16, #tpu.memory_space<vmem>>, vector<1x192x128xbf16>
    %50 = vector.shape_cast %49 : vector<1x192x128xbf16> to vector<192x128xbf16>
    %cst_71 = arith.constant dense<0.000000e+00> : vector<256x128xf32>
    %51 = tpu.matmul %48, %50, %cst_71 {dimension_numbers = #tpu.dot_dimension_numbers<[1], [0], [0], [1], [0, 0, 1, 1], [], []>} : vector<256x192xbf16>, vector<192x128xbf16>, vector<256x128xf32> -> vector<256x128xf32>
    %c0_72 = arith.constant 0 : index
    %c0_73 = arith.constant 0 : index
    %52 = vector.load %arg7[%c0_72, %c0_73] : memref<256x128xf32, #tpu.memory_space<vmem>>, vector<256x128xf32>
    %53 = arith.addf %52, %51 : vector<256x128xf32>
    %c0_74 = arith.constant 0 : index
    %c0_75 = arith.constant 0 : index
    %54 = vector.load %arg7[%c0_74, %c0_75] : memref<256x128xf32, #tpu.memory_space<vmem>>, vector<256x128xf32>
    tpu.vector_store %arg7[%c0_74, %c0_75], %53 {strides = array<i32>} : memref<256x128xf32, #tpu.memory_space<vmem>>, vector<256x128xf32>,
    %c0_76 = arith.constant 0 : index
    %c0_77 = arith.constant 0 : index
    %55 = vector.load %arg7[%c0_76, %c0_77] : memref<256x128xf32, #tpu.memory_space<vmem>>, vector<256x128xf32>
    %c0_78 = arith.constant 0 : index
    %c0_79 = arith.constant 0 : index
    %56 = vector.load %arg3[%c0_78, %c0_79] : memref<1x128xf32, #tpu.memory_space<vmem>>, vector<1x128xf32>
    %57 = vector.broadcast %56 : vector<1x128xf32> to vector<256x128xf32>
    %58 = arith.mulf %55, %57 : vector<256x128xf32>
    %c0_80 = arith.constant 0 : index
    %c0_81 = arith.constant 0 : index
    %59 = vector.load %arg4[%c0_80, %c0_81] : memref<1x128xf32, #tpu.memory_space<vmem>>, vector<1x128xf32>
    %60 = vector.broadcast %59 : vector<1x128xf32> to vector<256x128xf32>
    %61 = arith.addf %58, %60 : vector<256x128xf32>
    %cst_82 = arith.constant 0.000000e+00 : f32
    %62 = vector.broadcast %cst_82 : f32 to vector<256x128xf32>
    %63 = arith.maximumf %61, %62 : vector<256x128xf32>
    %c0_83 = arith.constant 0 : index
    %c0_84 = arith.constant 0 : index
    %64 = vector.load %arg5[%c0_83, %c0_84] : memref<256x128xf32, #tpu.memory_space<vmem>>, vector<256x128xf32>
    tpu.vector_store %arg5[%c0_83, %c0_84], %63 {strides = array<i32>} : memref<256x128xf32, #tpu.memory_space<vmem>>, vector<256x128xf32>,
    return
  }
  func.func @transform_0(%arg0: i32) -> (i32, i32, i32, i32) {
    %c0_i32 = arith.constant 0 : i32
    %c0_i32_0 = arith.constant 0 : i32
    %c0_i32_1 = arith.constant 0 : i32
    %c0_i32_2 = arith.constant 0 : i32
    return %arg0, %c0_i32, %c0_i32_0, %c0_i32_1 : i32, i32, i32, i32
  }
  func.func @transform_1(%arg0: i32) -> (i32, i32, i32) {
    %c0_i32 = arith.constant 0 : i32
    %c0_i32_0 = arith.constant 0 : i32
    %c0_i32_1 = arith.constant 0 : i32
    %c0_i32_2 = arith.constant 0 : i32
    return %c0_i32, %c0_i32_0, %c0_i32_1 : i32, i32, i32
  }
  func.func @transform_2(%arg0: i32) -> (i32, i32) {
    %c0_i32 = arith.constant 0 : i32
    %c0_i32_0 = arith.constant 0 : i32
    %c0_i32_1 = arith.constant 0 : i32
    return %c0_i32, %c0_i32_0 : i32, i32
  }
  func.func @transform_3(%arg0: i32) -> (i32, i32) {
    %c0_i32 = arith.constant 0 : i32
    %c0_i32_0 = arith.constant 0 : i32
    %c0_i32_1 = arith.constant 0 : i32
    return %c0_i32, %c0_i32_0 : i32, i32
  }
  func.func @transform_4(%arg0: i32) -> (i32, i32) {
    %c0_i32 = arith.constant 0 : i32
    %c0_i32_0 = arith.constant 0 : i32
    return %arg0, %c0_i32 : i32, i32
  }
}

</mosaic_0001>

<bundles_post_ra>
// kernel: conv_block_forward.2
= control target key start
LH: loop header
LB: loop body
LE: loop exit
PB: predicated region body
PF: predicated region fallthrough
CT: control target
= control target key end

     0   :  { %s1556_s15 = smov 0   ;;  %s1827_s0 = inlined_call_operand.vmem [shape: bf16[1024,36], index: 0, kind: input, shape index: {}]   ;;  %s1828_s1 = inlined_call_operand.vmem [shape: bf16[36,128], index: 1, kind: input, shape index: {}]   ;;  %s1829_s2 = inlined_call_operand.vmem [shape: f32[1,128], index: 2, kind: input, shape index: {}]   ;;  %s1830_s3 = inlined_call_operand.vmem [shape: f32[1,128], index: 3, kind: input, shape index: {}]   ;;  %s1831_s4 = inlined_call_operand.vmem [shape: bf16[1024,128], index: 4, kind: output, shape index: {}]  }
   0x1 LB: > { %s1100_s16 = sadd.s32 4294967295, %s1529_s15   ;;  %p1104_p0 = scmp.ge.s32.totalorder %s1529_s15, 1  ;;  %s1529_s15 = sphi %s1556_s15, %s14_s15  }
   0x2   : > { %p163_p1 = scmp.lt.s32.totalorder %s1529_s15, 3 }
   0x4   : > { %p164_p2 = pnand %p1104_p0, %p163_p1 }
   0x5   : > { %s1105_s19 = sshll.u32 (!%p164_p2), %s1100_s16, 6 }
   0x6   : > { %167 = sbr.rel (%p164_p2) target bundleno = 291 (0x123), region = 36  ;;  %p190_p3 = scmp.lt.s32.totalorder (!%p164_p2), %s1105_s19, 127 }
   0xb   : > { %v270_v0 = vld [vmem:[%s1828_s1 + $0x10] sm:$0x3]  ;;  %vm543_vm0 = vcmask 1041408   ;;  %s1833_s19 = smov (!%p190_p3, %s1105_s19), 127  ;;  %v1312_v4 = vld [vmem:[%s1828_s1 + $0x8] sm:$0xff]  ;;  %v1311_v5 = vld [vmem:[%s1828_s1] sm:$0xff] }
   0xc   : > { %v440_v1 = vunpack.c.l.b16 %v270_v0  ;;  %s1106_s22 = sshll.u32 %s1833_s19, 2  ;;  %vm446_vm1 = vcmask 293888   ;;  %v1650_v40 = vld [vmem:[%s1829_s2] ss:$0 sm:$0xff] }
   0xd   : > { %s1581_s27 = scalar_lea.vmem %s1827_s0, %s1106_s22  ;;  %v1656_v42 = vld [vmem:[%s1830_s3] ss:$0 sm:$0xff]  ;;  %s1672_s8 = scalar_lea.vmem %s1831_s4, %s1106_s22 }
   0xe   : > { %v443_v2 = vpack.c.b16 %v440_v1, %v440_v1  ;;  %v1279_v6 = vld [vmem:[%s1581_s27] sm:$0xff]  ;;  %v1280_v10 = vld [vmem:[%s1581_s27 + $0x8] sm:$0xff]  ;;  %v1281_v14 = vld [vmem:[%s1581_s27 + $0x10] sm:$0xff] }
   0xf   : > { %v1287_v7 = vld [vmem:[%s1581_s27 + $0x40] sm:$0xff]  ;;  %v1288_v11 = vld [vmem:[%s1581_s27 + $0x48] sm:$0xff]  ;;  %v1289_v15 = vld [vmem:[%s1581_s27 + $0x50] sm:$0xff] }
  0x10   : > { %v545_v3 = vsel %vm543_vm0, %v443_v2, 0  ;;  %v1295_v8 = vld [vmem:[%s1581_s27 + $0x80] sm:$0xff]  ;;  %v1296_v12 = vld [vmem:[%s1581_s27 + $0x88] sm:$0xff]  ;;  %v1297_v16 = vld [vmem:[%s1581_s27 + $0x90] sm:$0xff] }
  0x11   : > { %552 = vmatpush.bf16.msra.mxu0 %v545_v3  ;;  %1504 = vmatpush.bf16.msra.mxu1 %v545_v3  ;;  %v1303_v9 = vld [vmem:[%s1581_s27 + $0xc0] sm:$0xff]  ;;  %v1304_v13 = vld [vmem:[%s1581_s27 + $0xc8] sm:$0xff]  ;;  %v1305_v17 = vld [vmem:[%s1581_s27 + $0xd0] sm:$0xff] }
  0x12   : > { %1505 = vmatpush.bf16.msra.mxu2 %v545_v3  ;;  %1506 = vmatpush.bf16.msra.mxu3 %v545_v3  ;;  %v1282_v18 = vld [vmem:[%s1581_s27 + $0x18] sm:$0xff]  ;;  %v1283_v22 = vld [vmem:[%s1581_s27 + $0x20] sm:$0xff]  ;;  %v1284_v26 = vld [vmem:[%s1581_s27 + $0x28] sm:$0xff] }
  0x13   : > { %v1290_v19 = vld [vmem:[%s1581_s27 + $0x58] sm:$0xff]  ;;  %v1291_v23 = vld [vmem:[%s1581_s27 + $0x60] sm:$0xff]  ;;  %v1292_v27 = vld [vmem:[%s1581_s27 + $0x68] sm:$0xff] }
  0x14   : > { %v1298_v20 = vld [vmem:[%s1581_s27 + $0x98] sm:$0xff]  ;;  %v1299_v24 = vld [vmem:[%s1581_s27 + $0xa0] sm:$0xff]  ;;  %v1300_v28 = vld [vmem:[%s1581_s27 + $0xa8] sm:$0xff] }
  0x15   : > { %553 = vmatpush.bf16.msra.mxu0 %v1312_v4  ;;  %1507 = vmatpush.bf16.msra.mxu1 %v1312_v4  ;;  %v1306_v21 = vld [vmem:[%s1581_s27 + $0xd8] sm:$0xff]  ;;  %v1307_v25 = vld [vmem:[%s1581_s27 + $0xe0] sm:$0xff]  ;;  %v1308_v29 = vld [vmem:[%s1581_s27 + $0xe8] sm:$0xff] }
  0x16   : > { %1508 = vmatpush.bf16.msra.mxu2 %v1312_v4  ;;  %1509 = vmatpush.bf16.msra.mxu3 %v1312_v4  ;;  %v1285_v30 = vld [vmem:[%s1581_s27 + $0x30] sm:$0xff]  ;;  %v1286_v34 = vld [vmem:[%s1581_s27 + $0x38] sm:$0xff] }
  0x17   : > { %v1293_v31 = vld [vmem:[%s1581_s27 + $0x70] sm:$0xff]  ;;  %v1294_v35 = vld [vmem:[%s1581_s27 + $0x78] sm:$0xff] }
  0x18   : > { %v1301_v32 = vld [vmem:[%s1581_s27 + $0xb0] sm:$0xff]  ;;  %v1302_v36 = vld [vmem:[%s1581_s27 + $0xb8] sm:$0xff] }
  0x19   : > { %554 = vmatpush.bf16.msra.mxu0 %v1311_v5  ;;  %1510 = vmatpush.bf16.msra.mxu1 %v1311_v5  ;;  %v1309_v33 = vld [vmem:[%s1581_s27 + $0xf0] sm:$0xff]  ;;  %v1310_v37 = vld [vmem:[%s1581_s27 + $0xf8] sm:$0xff] }
  0x1a   : > { %1511 = vmatpush.bf16.msra.mxu2 %v1311_v5  ;;  %1512 = vmatpush.bf16.msra.mxu3 %v1311_v5 }
  0x1c   : > { %1245 = vmatmul.msk.bf16.vlgmr.msra.gmra.mxu0 %vm446_vm1, %v1279_v6  ;;  %1253 = vmatmul.msk.bf16.vlgmr.msra.gmra.mxu1 %vm446_vm1, %v1287_v7 }
  0x1d   : > { %1261 = vmatmul.msk.bf16.vlgmr.msra.gmra.mxu2 %vm446_vm1, %v1295_v8  ;;  %1269 = vmatmul.msk.bf16.vlgmr.msra.gmra.mxu3 %vm446_vm1, %v1303_v9 }
  0x2c   : > { %1246 = vmatmul.msk.bf16.gmra.mxu0 %vm446_vm1, %v1280_v10  ;;  %1254 = vmatmul.msk.bf16.gmra.mxu1 %vm446_vm1, %v1288_v11 }
  0x2d   : > { %1262 = vmatmul.msk.bf16.gmra.mxu2 %vm446_vm1, %v1296_v12  ;;  %1270 = vmatmul.msk.bf16.gmra.mxu3 %vm446_vm1, %v1304_v13 }
  0x3c   : > { %1247 = vmatmul.msk.bf16.gmra.mxu0 %vm446_vm1, %v1281_v14  ;;  %1255 = vmatmul.msk.bf16.gmra.mxu1 %vm446_vm1, %v1289_v15 }
  0x3d   : > { %1263 = vmatmul.msk.bf16.gmra.mxu2 %vm446_vm1, %v1297_v16  ;;  %1271 = vmatmul.msk.bf16.gmra.mxu3 %vm446_vm1, %v1305_v17 }
  0x4c   : > { %1248 = vmatmul.msk.bf16.gmra.mxu0 %vm446_vm1, %v1282_v18  ;;  %1256 = vmatmul.msk.bf16.gmra.mxu1 %vm446_vm1, %v1290_v19 }
  0x4d   : > { %1264 = vmatmul.msk.bf16.gmra.mxu2 %vm446_vm1, %v1298_v20  ;;  %1272 = vmatmul.msk.bf16.gmra.mxu3 %vm446_vm1, %v1306_v21 }
  0x5c   : > { %1249 = vmatmul.msk.bf16.gmra.mxu0 %vm446_vm1, %v1283_v22  ;;  %1257 = vmatmul.msk.bf16.gmra.mxu1 %vm446_vm1, %v1291_v23 }
  0x5d   : > { %1265 = vmatmul.msk.bf16.gmra.mxu2 %vm446_vm1, %v1299_v24  ;;  %1273 = vmatmul.msk.bf16.gmra.mxu3 %vm446_vm1, %v1307_v25 }
  0x6c   : > { %1250 = vmatmul.msk.bf16.gmra.mxu0 %vm446_vm1, %v1284_v26  ;;  %1258 = vmatmul.msk.bf16.gmra.mxu1 %vm446_vm1, %v1292_v27 }
  0x6d   : > { %1266 = vmatmul.msk.bf16.gmra.mxu2 %vm446_vm1, %v1300_v28  ;;  %1274 = vmatmul.msk.bf16.gmra.mxu3 %vm446_vm1, %v1308_v29 }
  0x7c   : > { %1251 = vmatmul.msk.bf16.gmra.mxu0 %vm446_vm1, %v1285_v30  ;;  %1259 = vmatmul.msk.bf16.gmra.mxu1 %vm446_vm1, %v1293_v31 }
  0x7d   : > { %1267 = vmatmul.msk.bf16.gmra.mxu2 %vm446_vm1, %v1301_v32  ;;  %1275 = vmatmul.msk.bf16.gmra.mxu3 %vm446_vm1, %v1309_v33 }
  0x8c   : > { %1252 = vmatmul.msk.bf16.gmra.mxu0 %vm446_vm1, %v1286_v34  ;;  %1260 = vmatmul.msk.bf16.gmra.mxu1 %vm446_vm1, %v1294_v35 }
  0x8d   : > { %1268 = vmatmul.msk.bf16.gmra.mxu2 %vm446_vm1, %v1302_v36  ;;  %1276 = vmatmul.msk.bf16.gmra.mxu3 %vm446_vm1, %v1310_v37 }
  0x99   : > { %v556_v38 = vpop.f32.mrf.mxu0  ;;  %v596_v39 = vpop.f32.mrf.mxu1 }
  0x9a   : > { %v720_v41 = vmul.f32 %v1650_v40, %v556_v38  ;;  %v736_v43 = vmul.f32 %v1650_v40, %v596_v39 }
  0x9c   : > { %v788_v48 = vadd.f32 %v1656_v42, %v720_v41  ;;  %v804_v49 = vadd.f32 %v1656_v42, %v736_v43 }
  0x9e   : > { %v852_v56 = vmax.f32 %v788_v48, 0.0  ;;  %v868_v57 = vmax.f32 %v804_v49, 0.0 }
  0xa0   : > { %v636_v44 = vpop.f32.mrf.mxu2  ;;  %v676_v45 = vpop.f32.mrf.mxu3 }
  0xa1   : > { %v558_v46 = vpop.f32.mrf.mxu0  ;;  %v598_v47 = vpop.f32.mrf.mxu1  ;;  %v752_v54 = vmul.f32 %v1650_v40, %v636_v44  ;;  %v768_v55 = vmul.f32 %v1650_v40, %v676_v45 }
  0xa2   : > { %v721_v50 = vmul.f32 %v1650_v40, %v558_v46  ;;  %v737_v51 = vmul.f32 %v1650_v40, %v598_v47 }
  0xa3   : > { %v820_v0 = vadd.f32 %v1656_v42, %v752_v54  ;;  %v836_v1 = vadd.f32 %v1656_v42, %v768_v55 }
  0xa4   : > { %v789_v52 = vadd.f32 %v1656_v42, %v721_v50  ;;  %v805_v53 = vadd.f32 %v1656_v42, %v737_v51 }
  0xa5   : > { %v884_v8 = vmax.f32 %v820_v0, 0.0  ;;  %v900_v9 = vmax.f32 %v836_v1, 0.0 }
  0xa6   : > { %v853_v58 = vmax.f32 %v789_v52, 0.0  ;;  %v869_v59 = vmax.f32 %v805_v53, 0.0 }
  0xa8   : > { %v1316_v60 = vpack.c.bf16 %v853_v58, %v852_v56  ;;  %v1356_v61 = vpack.c.bf16 %v869_v59, %v868_v57  ;;  %v638_v62 = vpop.f32.mrf.mxu2  ;;  %v678_v63 = vpop.f32.mrf.mxu3 }
  0xa9   : > { %v753_v2 = vmul.f32 %v1650_v40, %v638_v62  ;;  %v769_v3 = vmul.f32 %v1650_v40, %v678_v63  ;;  %v561_v4 = vpop.f32.mrf.mxu0  ;;  %v601_v5 = vpop.f32.mrf.mxu1 }
  0xaa   : > { %1317 = vst [vmem:[%s1672_s8] sm:$0xff] %v1316_v60   ;;  %v722_v12 = vmul.f32 %v1650_v40, %v561_v4  ;;  %v738_v13 = vmul.f32 %v1650_v40, %v601_v5 }
  0xab   : > { %1480 = vst [vmem:[%s1672_s8 + $0x40] sm:$0xff] %v1356_v61   ;;  %v821_v6 = vadd.f32 %v1656_v42, %v753_v2  ;;  %v837_v7 = vadd.f32 %v1656_v42, %v769_v3 }
  0xac   : > { %v790_v20 = vadd.f32 %v1656_v42, %v722_v12  ;;  %v806_v21 = vadd.f32 %v1656_v42, %v738_v13 }
  0xad   : > { %v885_v10 = vmax.f32 %v821_v6, 0.0  ;;  %v901_v11 = vmax.f32 %v837_v7, 0.0 }
  0xae   : > { %v854_v28 = vmax.f32 %v790_v20, 0.0  ;;  %v870_v29 = vmax.f32 %v806_v21, 0.0 }
  0xaf   : > { %v1396_v14 = vpack.c.bf16 %v885_v10, %v884_v8  ;;  %v1436_v15 = vpack.c.bf16 %v901_v11, %v900_v9 }
  0xb0   : > { %v641_v16 = vpop.f32.mrf.mxu2  ;;  %v681_v17 = vpop.f32.mrf.mxu3 }
  0xb1   : > { %1488 = vst [vmem:[%s1672_s8 + $0x80] sm:$0xff] %v1396_v14   ;;  %v563_v18 = vpop.f32.mrf.mxu0  ;;  %v603_v19 = vpop.f32.mrf.mxu1  ;;  %v754_v26 = vmul.f32 %v1650_v40, %v641_v16  ;;  %v770_v27 = vmul.f32 %v1650_v40, %v681_v17 }
  0xb2   : > { %1496 = vst [vmem:[%s1672_s8 + $0xc0] sm:$0xff] %v1436_v15   ;;  %v723_v22 = vmul.f32 %v1650_v40, %v563_v18  ;;  %v739_v23 = vmul.f32 %v1650_v40, %v603_v19 }
  0xb3   : > { %v822_v36 = vadd.f32 %v1656_v42, %v754_v26  ;;  %v838_v37 = vadd.f32 %v1656_v42, %v770_v27 }
  0xb4   : > { %v791_v24 = vadd.f32 %v1656_v42, %v723_v22  ;;  %v807_v25 = vadd.f32 %v1656_v42, %v739_v23 }
  0xb5   : > { %v886_v46 = vmax.f32 %v822_v36, 0.0  ;;  %v902_v47 = vmax.f32 %v838_v37, 0.0 }
  0xb6   : > { %v855_v30 = vmax.f32 %v791_v24, 0.0  ;;  %v871_v31 = vmax.f32 %v807_v25, 0.0 }
  0xb8   : > { %v1321_v32 = vpack.c.bf16 %v855_v30, %v854_v28  ;;  %v1361_v33 = vpack.c.bf16 %v871_v31, %v870_v29  ;;  %v643_v34 = vpop.f32.mrf.mxu2  ;;  %v683_v35 = vpop.f32.mrf.mxu3 }
  0xb9   : > { %v755_v38 = vmul.f32 %v1650_v40, %v643_v34  ;;  %v771_v39 = vmul.f32 %v1650_v40, %v683_v35  ;;  %v566_v41 = vpop.f32.mrf.mxu0  ;;  %v606_v43 = vpop.f32.mrf.mxu1 }
  0xba   : > { %1473 = vst [vmem:[%s1672_s8 + $0x8] sm:$0xff] %v1321_v32   ;;  %v724_v50 = vmul.f32 %v1650_v40, %v566_v41  ;;  %v740_v51 = vmul.f32 %v1650_v40, %v606_v43 }
  0xbb   : > { %1481 = vst [vmem:[%s1672_s8 + $0x48] sm:$0xff] %v1361_v33   ;;  %v823_v44 = vadd.f32 %v1656_v42, %v755_v38  ;;  %v839_v45 = vadd.f32 %v1656_v42, %v771_v39 }
  0xbc   : > { %v792_v58 = vadd.f32 %v1656_v42, %v724_v50  ;;  %v808_v59 = vadd.f32 %v1656_v42, %v740_v51 }
  0xbd   : > { %v887_v48 = vmax.f32 %v823_v44, 0.0  ;;  %v903_v49 = vmax.f32 %v839_v45, 0.0 }
  0xbe   : > { %v856_v2 = vmax.f32 %v792_v58, 0.0  ;;  %v872_v3 = vmax.f32 %v808_v59, 0.0 }
  0xbf   : > { %v1401_v52 = vpack.c.bf16 %v887_v48, %v886_v46  ;;  %v1441_v53 = vpack.c.bf16 %v903_v49, %v902_v47 }
  0xc0   : > { %v646_v54 = vpop.f32.mrf.mxu2  ;;  %v686_v55 = vpop.f32.mrf.mxu3 }
  0xc1   : > { %1489 = vst [vmem:[%s1672_s8 + $0x88] sm:$0xff] %v1401_v52   ;;  %v568_v56 = vpop.f32.mrf.mxu0  ;;  %v608_v57 = vpop.f32.mrf.mxu1  ;;  %v756_v0 = vmul.f32 %v1650_v40, %v646_v54  ;;  %v772_v1 = vmul.f32 %v1650_v40, %v686_v55 }
  0xc2   : > { %1497 = vst [vmem:[%s1672_s8 + $0xc8] sm:$0xff] %v1441_v53   ;;  %v725_v60 = vmul.f32 %v1650_v40, %v568_v56  ;;  %v741_v61 = vmul.f32 %v1650_v40, %v608_v57 }
  0xc3   : > { %v824_v10 = vadd.f32 %v1656_v42, %v756_v0  ;;  %v840_v11 = vadd.f32 %v1656_v42, %v772_v1 }
  0xc4   : > { %v793_v62 = vadd.f32 %v1656_v42, %v725_v60  ;;  %v809_v63 = vadd.f32 %v1656_v42, %v741_v61 }
  0xc5   : > { %v888_v18 = vmax.f32 %v824_v10, 0.0  ;;  %v904_v19 = vmax.f32 %v840_v11, 0.0 }
  0xc6   : > { %v857_v4 = vmax.f32 %v793_v62, 0.0  ;;  %v873_v5 = vmax.f32 %v809_v63, 0.0 }
  0xc8   : > { %v1326_v6 = vpack.c.bf16 %v857_v4, %v856_v2  ;;  %v1366_v7 = vpack.c.bf16 %v873_v5, %v872_v3  ;;  %v648_v8 = vpop.f32.mrf.mxu2  ;;  %v688_v9 = vpop.f32.mrf.mxu3 }
  0xc9   : > { %v757_v12 = vmul.f32 %v1650_v40, %v648_v8  ;;  %v773_v13 = vmul.f32 %v1650_v40, %v688_v9  ;;  %v571_v14 = vpop.f32.mrf.mxu0  ;;  %v611_v15 = vpop.f32.mrf.mxu1 }
  0xca   : > { %1474 = vst [vmem:[%s1672_s8 + $0x10] sm:$0xff] %v1326_v6   ;;  %v726_v22 = vmul.f32 %v1650_v40, %v571_v14  ;;  %v742_v23 = vmul.f32 %v1650_v40, %v611_v15 }
  0xcb   : > { %1482 = vst [vmem:[%s1672_s8 + $0x50] sm:$0xff] %v1366_v7   ;;  %v825_v16 = vadd.f32 %v1656_v42, %v757_v12  ;;  %v841_v17 = vadd.f32 %v1656_v42, %v773_v13 }
  0xcc   : > { %v794_v30 = vadd.f32 %v1656_v42, %v726_v22  ;;  %v810_v31 = vadd.f32 %v1656_v42, %v742_v23 }
  0xcd   : > { %v889_v20 = vmax.f32 %v825_v16, 0.0  ;;  %v905_v21 = vmax.f32 %v841_v17, 0.0 }
  0xce   : > { %v858_v38 = vmax.f32 %v794_v30, 0.0  ;;  %v874_v39 = vmax.f32 %v810_v31, 0.0 }
  0xcf   : > { %v1406_v24 = vpack.c.bf16 %v889_v20, %v888_v18  ;;  %v1446_v25 = vpack.c.bf16 %v905_v21, %v904_v19 }
  0xd0   : > { %v651_v26 = vpop.f32.mrf.mxu2  ;;  %v691_v27 = vpop.f32.mrf.mxu3 }
  0xd1   : > { %1490 = vst [vmem:[%s1672_s8 + $0x90] sm:$0xff] %v1406_v24   ;;  %v573_v28 = vpop.f32.mrf.mxu0  ;;  %v613_v29 = vpop.f32.mrf.mxu1  ;;  %v758_v36 = vmul.f32 %v1650_v40, %v651_v26  ;;  %v774_v37 = vmul.f32 %v1650_v40, %v691_v27 }
  0xd2   : > { %1498 = vst [vmem:[%s1672_s8 + $0xd0] sm:$0xff] %v1446_v25   ;;  %v727_v32 = vmul.f32 %v1650_v40, %v573_v28  ;;  %v743_v33 = vmul.f32 %v1650_v40, %v613_v29 }
  0xd3   : > { %v826_v48 = vadd.f32 %v1656_v42, %v758_v36  ;;  %v842_v49 = vadd.f32 %v1656_v42, %v774_v37 }
  0xd4   : > { %v795_v34 = vadd.f32 %v1656_v42, %v727_v32  ;;  %v811_v35 = vadd.f32 %v1656_v42, %v743_v33 }
  0xd5   : > { %v890_v56 = vmax.f32 %v826_v48, 0.0  ;;  %v906_v57 = vmax.f32 %v842_v49, 0.0 }
  0xd6   : > { %v859_v41 = vmax.f32 %v795_v34, 0.0  ;;  %v875_v43 = vmax.f32 %v811_v35, 0.0 }
  0xd8   : > { %v1331_v44 = vpack.c.bf16 %v859_v41, %v858_v38  ;;  %v1371_v45 = vpack.c.bf16 %v875_v43, %v874_v39  ;;  %v653_v46 = vpop.f32.mrf.mxu2  ;;  %v693_v47 = vpop.f32.mrf.mxu3 }
  0xd9   : > { %v759_v50 = vmul.f32 %v1650_v40, %v653_v46  ;;  %v775_v51 = vmul.f32 %v1650_v40, %v693_v47  ;;  %v576_v52 = vpop.f32.mrf.mxu0  ;;  %v616_v53 = vpop.f32.mrf.mxu1 }
  0xda   : > { %1475 = vst [vmem:[%s1672_s8 + $0x18] sm:$0xff] %v1331_v44   ;;  %v728_v60 = vmul.f32 %v1650_v40, %v576_v52  ;;  %v744_v61 = vmul.f32 %v1650_v40, %v616_v53 }
  0xdb   : > { %1483 = vst [vmem:[%s1672_s8 + $0x58] sm:$0xff] %v1371_v45   ;;  %v827_v54 = vadd.f32 %v1656_v42, %v759_v50  ;;  %v843_v55 = vadd.f32 %v1656_v42, %v775_v51 }
  0xdc   : > { %v796_v4 = vadd.f32 %v1656_v42, %v728_v60  ;;  %v812_v5 = vadd.f32 %v1656_v42, %v744_v61 }
  0xdd   : > { %v891_v58 = vmax.f32 %v827_v54, 0.0  ;;  %v907_v59 = vmax.f32 %v843_v55, 0.0 }
  0xde   : > { %v860_v12 = vmax.f32 %v796_v4, 0.0  ;;  %v876_v13 = vmax.f32 %v812_v5, 0.0 }
  0xdf   : > { %v1411_v62 = vpack.c.bf16 %v891_v58, %v890_v56  ;;  %v1451_v63 = vpack.c.bf16 %v907_v59, %v906_v57 }
  0xe0   : > { %v656_v0 = vpop.f32.mrf.mxu2  ;;  %v696_v1 = vpop.f32.mrf.mxu3 }
  0xe1   : > { %1491 = vst [vmem:[%s1672_s8 + $0x98] sm:$0xff] %v1411_v62   ;;  %v578_v2 = vpop.f32.mrf.mxu0  ;;  %v618_v3 = vpop.f32.mrf.mxu1  ;;  %v760_v10 = vmul.f32 %v1650_v40, %v656_v0  ;;  %v776_v11 = vmul.f32 %v1650_v40, %v696_v1 }
  0xe2   : > { %1499 = vst [vmem:[%s1672_s8 + $0xd8] sm:$0xff] %v1451_v63   ;;  %v729_v6 = vmul.f32 %v1650_v40, %v578_v2  ;;  %v745_v7 = vmul.f32 %v1650_v40, %v618_v3 }
  0xe3   : > { %v828_v20 = vadd.f32 %v1656_v42, %v760_v10  ;;  %v844_v21 = vadd.f32 %v1656_v42, %v776_v11 }
  0xe4   : > { %v797_v8 = vadd.f32 %v1656_v42, %v729_v6  ;;  %v813_v9 = vadd.f32 %v1656_v42, %v745_v7 }
  0xe5   : > { %v892_v28 = vmax.f32 %v828_v20, 0.0  ;;  %v908_v29 = vmax.f32 %v844_v21, 0.0 }
  0xe6   : > { %v861_v14 = vmax.f32 %v797_v8, 0.0  ;;  %v877_v15 = vmax.f32 %v813_v9, 0.0 }
  0xe8   : > { %v1336_v16 = vpack.c.bf16 %v861_v14, %v860_v12  ;;  %v1376_v17 = vpack.c.bf16 %v877_v15, %v876_v13  ;;  %v658_v18 = vpop.f32.mrf.mxu2  ;;  %v698_v19 = vpop.f32.mrf.mxu3 }
  0xe9   : > { %v761_v22 = vmul.f32 %v1650_v40, %v658_v18  ;;  %v777_v23 = vmul.f32 %v1650_v40, %v698_v19  ;;  %v581_v24 = vpop.f32.mrf.mxu0  ;;  %v621_v25 = vpop.f32.mrf.mxu1 }
  0xea   : > { %1476 = vst [vmem:[%s1672_s8 + $0x20] sm:$0xff] %v1336_v16   ;;  %v730_v32 = vmul.f32 %v1650_v40, %v581_v24  ;;  %v746_v33 = vmul.f32 %v1650_v40, %v621_v25 }
  0xeb   : > { %1484 = vst [vmem:[%s1672_s8 + $0x60] sm:$0xff] %v1376_v17   ;;  %v829_v26 = vadd.f32 %v1656_v42, %v761_v22  ;;  %v845_v27 = vadd.f32 %v1656_v42, %v777_v23 }
  0xec   : > { %v798_v41 = vadd.f32 %v1656_v42, %v730_v32  ;;  %v814_v43 = vadd.f32 %v1656_v42, %v746_v33 }
  0xed   : > { %v893_v30 = vmax.f32 %v829_v26, 0.0  ;;  %v909_v31 = vmax.f32 %v845_v27, 0.0 }
  0xee   : > { %v862_v50 = vmax.f32 %v798_v41, 0.0  ;;  %v878_v51 = vmax.f32 %v814_v43, 0.0 }
  0xef   : > { %v1416_v34 = vpack.c.bf16 %v893_v30, %v892_v28  ;;  %v1456_v35 = vpack.c.bf16 %v909_v31, %v908_v29 }
  0xf0   : > { %v661_v36 = vpop.f32.mrf.mxu2  ;;  %v701_v37 = vpop.f32.mrf.mxu3 }
  0xf1   : > { %1492 = vst [vmem:[%s1672_s8 + $0xa0] sm:$0xff] %v1416_v34   ;;  %v583_v38 = vpop.f32.mrf.mxu0  ;;  %v623_v39 = vpop.f32.mrf.mxu1  ;;  %v762_v48 = vmul.f32 %v1650_v40, %v661_v36  ;;  %v778_v49 = vmul.f32 %v1650_v40, %v701_v37 }
  0xf2   : > { %1500 = vst [vmem:[%s1672_s8 + $0xe0] sm:$0xff] %v1456_v35   ;;  %v731_v44 = vmul.f32 %v1650_v40, %v583_v38  ;;  %v747_v45 = vmul.f32 %v1650_v40, %v623_v39 }
  0xf3   : > { %v830_v58 = vadd.f32 %v1656_v42, %v762_v48  ;;  %v846_v59 = vadd.f32 %v1656_v42, %v778_v49 }
  0xf4   : > { %v799_v46 = vadd.f32 %v1656_v42, %v731_v44  ;;  %v815_v47 = vadd.f32 %v1656_v42, %v747_v45 }
  0xf5   : > { %v894_v2 = vmax.f32 %v830_v58, 0.0  ;;  %v910_v3 = vmax.f32 %v846_v59, 0.0 }
  0xf6   : > { %v863_v52 = vmax.f32 %v799_v46, 0.0  ;;  %v879_v53 = vmax.f32 %v815_v47, 0.0 }
  0xf8   : > { %v1341_v54 = vpack.c.bf16 %v863_v52, %v862_v50  ;;  %v1381_v55 = vpack.c.bf16 %v879_v53, %v878_v51  ;;  %v663_v56 = vpop.f32.mrf.mxu2  ;;  %v703_v57 = vpop.f32.mrf.mxu3 }
  0xf9   : > { %v763_v60 = vmul.f32 %v1650_v40, %v663_v56  ;;  %v779_v61 = vmul.f32 %v1650_v40, %v703_v57  ;;  %v586_v62 = vpop.f32.mrf.mxu0  ;;  %v626_v63 = vpop.f32.mrf.mxu1 }
  0xfa   : > { %1477 = vst [vmem:[%s1672_s8 + $0x28] sm:$0xff] %v1341_v54   ;;  %v732_v6 = vmul.f32 %v1650_v40, %v586_v62  ;;  %v748_v7 = vmul.f32 %v1650_v40, %v626_v63 }
  0xfb   : > { %1485 = vst [vmem:[%s1672_s8 + $0x68] sm:$0xff] %v1381_v55   ;;  %v831_v0 = vadd.f32 %v1656_v42, %v763_v60  ;;  %v847_v1 = vadd.f32 %v1656_v42, %v779_v61 }
  0xfc   : > { %v800_v14 = vadd.f32 %v1656_v42, %v732_v6  ;;  %v816_v15 = vadd.f32 %v1656_v42, %v748_v7 }
  0xfd   : > { %v895_v4 = vmax.f32 %v831_v0, 0.0  ;;  %v911_v5 = vmax.f32 %v847_v1, 0.0 }
  0xfe   : > { %v864_v22 = vmax.f32 %v800_v14, 0.0  ;;  %v880_v23 = vmax.f32 %v816_v15, 0.0 }
  0xff   : > { %v1421_v8 = vpack.c.bf16 %v895_v4, %v894_v2  ;;  %v1461_v9 = vpack.c.bf16 %v911_v5, %v910_v3 }
 0x100   : > { %v666_v10 = vpop.f32.mrf.mxu2  ;;  %v706_v11 = vpop.f32.mrf.mxu3 }
 0x101   : > { %1493 = vst [vmem:[%s1672_s8 + $0xa8] sm:$0xff] %v1421_v8   ;;  %v588_v12 = vpop.f32.mrf.mxu0  ;;  %v628_v13 = vpop.f32.mrf.mxu1  ;;  %v764_v20 = vmul.f32 %v1650_v40, %v666_v10  ;;  %v780_v21 = vmul.f32 %v1650_v40, %v706_v11 }
 0x102   : > { %1501 = vst [vmem:[%s1672_s8 + $0xe8] sm:$0xff] %v1461_v9   ;;  %v733_v16 = vmul.f32 %v1650_v40, %v588_v12  ;;  %v749_v17 = vmul.f32 %v1650_v40, %v628_v13 }
 0x103   : > { %v832_v30 = vadd.f32 %v1656_v42, %v764_v20  ;;  %v848_v31 = vadd.f32 %v1656_v42, %v780_v21 }
 0x104   : > { %v801_v18 = vadd.f32 %v1656_v42, %v733_v16  ;;  %v817_v19 = vadd.f32 %v1656_v42, %v749_v17 }
 0x105   : > { %v896_v38 = vmax.f32 %v832_v30, 0.0  ;;  %v912_v39 = vmax.f32 %v848_v31, 0.0 }
 0x106   : > { %v865_v24 = vmax.f32 %v801_v18, 0.0  ;;  %v881_v25 = vmax.f32 %v817_v19, 0.0 }
 0x108   : > { %v1346_v26 = vpack.c.bf16 %v865_v24, %v864_v22  ;;  %v1386_v27 = vpack.c.bf16 %v881_v25, %v880_v23  ;;  %v668_v28 = vpop.f32.mrf.mxu2  ;;  %v708_v29 = vpop.f32.mrf.mxu3 }
 0x109   : > { %v765_v32 = vmul.f32 %v1650_v40, %v668_v28  ;;  %v781_v33 = vmul.f32 %v1650_v40, %v708_v29  ;;  %v591_v34 = vpop.f32.mrf.mxu0  ;;  %v631_v35 = vpop.f32.mrf.mxu1 }
 0x10a   : > { %1478 = vst [vmem:[%s1672_s8 + $0x30] sm:$0xff] %v1346_v26   ;;  %v734_v44 = vmul.f32 %v1650_v40, %v591_v34  ;;  %v750_v45 = vmul.f32 %v1650_v40, %v631_v35 }
 0x10b   : > { %1486 = vst [vmem:[%s1672_s8 + $0x70] sm:$0xff] %v1386_v27   ;;  %v833_v36 = vadd.f32 %v1656_v42, %v765_v32  ;;  %v849_v37 = vadd.f32 %v1656_v42, %v781_v33 }
 0x10c   : > { %v802_v52 = vadd.f32 %v1656_v42, %v734_v44  ;;  %v818_v53 = vadd.f32 %v1656_v42, %v750_v45 }
 0x10d   : > { %v897_v41 = vmax.f32 %v833_v36, 0.0  ;;  %v913_v43 = vmax.f32 %v849_v37, 0.0 }
 0x10e   : > { %v866_v60 = vmax.f32 %v802_v52, 0.0  ;;  %v882_v61 = vmax.f32 %v818_v53, 0.0 }
 0x10f   : > { %v1426_v46 = vpack.c.bf16 %v897_v41, %v896_v38  ;;  %v1466_v47 = vpack.c.bf16 %v913_v43, %v912_v39 }
 0x110   : > { %v671_v48 = vpop.f32.mrf.mxu2  ;;  %v711_v49 = vpop.f32.mrf.mxu3 }
 0x111   : > { %1494 = vst [vmem:[%s1672_s8 + $0xb0] sm:$0xff] %v1426_v46   ;;  %v593_v50 = vpop.f32.mrf.mxu0  ;;  %v633_v51 = vpop.f32.mrf.mxu1  ;;  %v766_v58 = vmul.f32 %v1650_v40, %v671_v48  ;;  %v782_v59 = vmul.f32 %v1650_v40, %v711_v49 }
 0x112   : > { %1502 = vst [vmem:[%s1672_s8 + $0xf0] sm:$0xff] %v1466_v47   ;;  %v735_v54 = vmul.f32 %v1650_v40, %v593_v50  ;;  %v751_v55 = vmul.f32 %v1650_v40, %v633_v51 }
 0x113   : > { %v834_v4 = vadd.f32 %v1656_v42, %v766_v58  ;;  %v850_v5 = vadd.f32 %v1656_v42, %v782_v59 }
 0x114   : > { %v803_v56 = vadd.f32 %v1656_v42, %v735_v54  ;;  %v819_v57 = vadd.f32 %v1656_v42, %v751_v55 }
 0x115   : > { %v898_v10 = vmax.f32 %v834_v4, 0.0  ;;  %v914_v11 = vmax.f32 %v850_v5, 0.0 }
 0x116   : > { %v867_v62 = vmax.f32 %v803_v56, 0.0  ;;  %v883_v63 = vmax.f32 %v819_v57, 0.0 }
 0x118   : > { %v1351_v0 = vpack.c.bf16 %v867_v62, %v866_v60  ;;  %v1391_v1 = vpack.c.bf16 %v883_v63, %v882_v61  ;;  %v673_v2 = vpop.f32.mrf.mxu2  ;;  %v713_v3 = vpop.f32.mrf.mxu3 }
 0x119   : > { %v767_v6 = vmul.f32 %v1650_v40, %v673_v2  ;;  %v783_v7 = vmul.f32 %v1650_v40, %v713_v3 }
 0x11a   : > { %1479 = vst [vmem:[%s1672_s8 + $0x38] sm:$0xff] %v1351_v0  }
 0x11b   : > { %1487 = vst [vmem:[%s1672_s8 + $0x78] sm:$0xff] %v1391_v1   ;;  %v835_v8 = vadd.f32 %v1656_v42, %v767_v6  ;;  %v851_v9 = vadd.f32 %v1656_v42, %v783_v7 }
 0x11d   : > { %v899_v12 = vmax.f32 %v835_v8, 0.0  ;;  %v915_v13 = vmax.f32 %v851_v9, 0.0 }
 0x11f   : > { %v1431_v14 = vpack.c.bf16 %v899_v12, %v898_v10  ;;  %v1471_v15 = vpack.c.bf16 %v915_v13, %v914_v11 }
 0x121   : > { %1495 = vst [vmem:[%s1672_s8 + $0xb8] sm:$0xff] %v1431_v14  }
 0x122   : > { %1503 = vst [vmem:[%s1672_s8 + $0xf8] sm:$0xff] %v1471_v15  }
 0x123 PF: > { %s14_s15 = sadd.s32 1, %s1529_s15  }
 0x124   : > { %p11_p4 = scmp.ge.s32.totalorder %s14_s15, 4  }
 0x126   :  { %13 = sbr.rel (!%p11_p4) target bundleno = 1 (0x1), region = 66 }

// kernel: conv_block_forward.3
= control target key start
LH: loop header
LB: loop body
LE: loop exit
PB: predicated region body
PF: predicated region fallthrough
CT: control target
= control target key end

     0   :  { %9 = vsyncpa [#allocation5], 0  ;;  %s8532_s0 = inlined_call_operand.vmem [shape: bf16[4,18,18,64], index: 0, kind: input, shape index: {}]   ;;  %s8533_s1 = inlined_call_operand.vmem [shape: bf16[3,192,128], index: 1, kind: input, shape index: {}]   ;;  %s8534_s2 = inlined_call_operand.vmem [shape: f32[1,128], index: 2, kind: input, shape index: {}]   ;;  %s8535_s3 = inlined_call_operand.vmem [shape: f32[1,128], index: 3, kind: input, shape index: {}]   ;;  %s8536_s4 = inlined_call_operand.hbm [shape: f32[1024,128], index: 4, kind: output, shape index: {}]  }
   0x1   :  { %11 = vsyncpa [#allocation5 + $0x1], 0  ;;  %s6088_s15 = smov 0   ;;  %s6090_s16 = smov 0  }
   0x2   :  { %s6092_s17 = smov 0   ;;  %s6094_s18 = smov 0  }
   0x3 LB: > { %s6109_s19 = sadd.s32 4294967295, %s6058_s18   ;;  %s4863_s20 = sadd.s32 4294967294, %s6058_s18   ;;  %s6058_s18 = sphi %s6094_s18, %s8652_s18   ;;  %s6054_s17 = sphi %s6092_s17, %s8651_s17   ;;  %s6050_s16 = sphi %s6090_s16, %s8650_s16   ;;  %s6046_s15 = sphi %s6088_s15, %s8649_s15  }
   0x4   : > { %s6113_s21 = sadd.s32 1, %s6058_s18   ;;  %s113_s22 = sadd.s32 1, %s6054_s17 }
   0x5   : > { %s110_s23 = ssub.s32 %s6058_s18, %s6113_s21  ;;  %p123_p0 = scmp.ne.s32.totalorder %s6054_s17, %s6050_s16 }
   0x6   : > { %p111_p1 = scmp.eq.s32.totalorder %s110_s23, 0  ;;  %p124_p2 = scmp.eq.s32.totalorder %s6109_s19, 3 }
   0x7   : > { %p129_p3 = scmp.ne.s32.totalorder %s6050_s16, %s6046_s15  ;;  %p130_p4 = scmp.eq.s32.totalorder %s4863_s20, 3 }
   0x8   : > { %s6124_s24 = scalar_select %p111_p1, %s6054_s17, %s113_s22  }
   0x9   : > { %p6126_p5 = por %p124_p2, %p123_p0  ;;  %p6130_p6 = por %p130_p4, %p129_p3 }
   0xa   : > { %p4866_p7 = scmp.ge.s32.totalorder %s6058_s18, 1  ;;  %p165_p8 = scmp.lt.s32.totalorder %s6058_s18, 5 }
   0xc   : > { %p166_p9 = pnand %p4866_p7, %p165_p8 }
   0xe   : > { %169 = sbr.rel (%p166_p9) target bundleno = 788 (0x314), region = 36 }
  0x13   : > { %p191_p10 = scmp.lt.s32.totalorder %s6109_s19, 3  ;;  %vm311_vm0 = vsmask.f32 3328  ;;  %vm312_vm1 = vsmask.f32 7440  ;;  %s6060_s6 = smov 64  }
  0x14   : > { %vm6152_vm2 = vmor %vm311_vm0, %vm312_vm1  ;;  %vm923_vm3 = vcmask 1042432   ;;  %vm230_vm4 = vcmask 519168   ;;  %vm924_vm5 = vcmask 1046532   ;;  %vm1374_vm7 = vcmask 523264   ;;  %s188_s29 = sand.u32 1, %s6050_s16   ;;  %s5934_s10 = sshll.u32 %s6109_s19, 8 }
  0x15   : > { %s192_s27 = scalar_select %p191_p10, %s6109_s19, 3  ;;  %vm6313_vm6 = vmor %vm923_vm3, %vm924_vm5  ;;  %vm794_vm8 = vcmask 1043968  }
  0x16   : > { %s4867_s8 = sshll.u32 %s188_s29, 8  ;;  %s4797_s13 = scalar_lea.hbm %s8536_s4, %s5934_s10 }
  0x17   : > { %s5943_s28 = smul.u32 216, %s192_s27  ;;  %s8316_s9 = scalar_lea.vmem [#allocation4], %s4867_s8 }
  0x18   : > { %s4798_s14 = sshll.u32 %s8316_s9, 4  ;;  %s4800_s20 = sshll.u32 %s4797_s13, 4  ;;  %s4799_s14 = int_to_ptr.vmem [resolvable:$true] %s4798_s14  ;;  %s4801_s20 = int_to_ptr.hbm [resolvable:$true] %s4800_s20 }
  0x19   : > { %s6141_s5 = scalar_lea.vmem %s8532_s0, %s5943_s28  ;;  %s4786_s19 = scalar_lea.sflag [#allocation5], %s188_s29 }
  0x1a   : > { %v5109_v0 = vld [vmem:[%s6141_s5 + $0xc] sm:$0xf]  ;;  %v5110_v1 = vld [vmem:[%s6141_s5 + $0x10] sm:$0xf]  ;;  %v263_v2 = vld [vmem:[%s6141_s5] sm:$0xf] }
  0x1b   : > { %v1747_v3 = vshrl.u32 %v5109_v0, 16  ;;  %v1750_v4 = vshll.u32 %v5109_v0, 16  ;;  %v1756_v5 = vshll.u32 %v5110_v1, 16  ;;  %v1760_v6 = vshrl.u32 %v5110_v1, 16  ;;  %v264_v7 = vld [vmem:[%s6141_s5 + $0x4] sm:$0xf] }
  0x1c   : > { %v315_v8 = vshrl.u32 %v263_v2, 16  ;;  %v318_v9 = vshll.u32 %v263_v2, 16  ;;  %v324_v10 = vshll.u32 %v264_v7, 16  ;;  %v328_v11 = vshrl.u32 %v264_v7, 16  ;;  %v5111_v12 = vld [vmem:[%s6141_s5 + $0x14] sm:$0x1] }
  0x1d   : > { %v1749_v13 = vrot.slane %v1747_v3, 4  ;;  %v1752_v14 = vrot.slane %v1750_v4, 5  ;;  %v1758_v15 = vrot.slane %v1756_v5, 5  ;;  %v1762_v16 = vrot.slane %v1760_v6, 4  ;;  %v5113_v20 = vld [vmem:[%s6141_s5 + $0x1c] sm:$0xf] }
  0x1e   : > { %v317_v17 = vrot.slane %v315_v8, 4  ;;  %v320_v18 = vrot.slane %v318_v9, 5  ;;  %v330_v19 = vrot.slane %v328_v11, 4  ;;  %v1766_v23 = vshll.u32 %v5111_v12, 16  ;;  %v265_v24 = vld [vmem:[%s6141_s5 + $0x8] sm:$0x1] }
  0x1f   : > { %v1753_v21 = vor.u32 %v1752_v14, %v1749_v13  ;;  %v1763_v22 = vor.u32 %v1762_v16, %v1758_v15  ;;  %v326_v27 = vrot.slane %v324_v10, 5  ;;  %v1780_v28 = vshll.u32 %v5113_v20, 16  ;;  %v5112_v30 = vld [vmem:[%s6141_s5 + $0x18] sm:$0xf]  ;;  %v5115_v35 = vld [vmem:[%s6141_s5 + $0x24] sm:$0xf] }
  0x20   : > { %v321_v26 = vor.u32 %v320_v18, %v317_v17  ;;  %v1784_v29 = vshrl.u32 %v5113_v20, 16  ;;  %v334_v34 = vshll.u32 %v265_v24, 16  ;;  %v1768_v38 = vrot.slane %v1766_v23, 5  ;;  %v5114_v39 = vld [vmem:[%s6141_s5 + $0x20] sm:$0x1]  ;;  %s6010_s22 = sshra.s32 %s4801_s20, 4  ;;  %s6011_s22 = int_to_ptr.hbm [resolvable:$true] %s6010_s22 }
  0x21   : > { %v1754_v31 = vrot.slane %v1753_v21, 4  ;;  %v331_v33 = vor.u32 %v330_v19, %v326_v27  ;;  %v1764_v37 = vrot.slane %v1763_v22, 4  ;;  %v1771_v40 = vshrl.u32 %v5112_v30, 16  ;;  %v266_v45 = vld [vmem:[%s6141_s5 + $0xc] sm:$0xf]  ;;  %v5889_v22 = vld [vmem:[%s8533_s1 + $0xb8] sm:$0xff]  ;;  %p6017_p0 = scmp.lt.s32.totalorder %s6011_s22, %s8536_s4 }
  0x22   : > { %v322_v32 = vrot.slane %v321_v26, 4  ;;  %v6164_v42 = vrot.slane %v1780_v28, 5  ;;  %v1786_v43 = vrot.slane %v1784_v29, 4  ;;  %v1774_v44 = vshll.u32 %v5112_v30, 16  ;;  %v267_v48 = vld [vmem:[%s6141_s5 + $0x10] sm:$0xf]  ;;  %5939 = vmatpush.bf16.msra.mxu3 %v5889_v22 }
  0x23   : > { %v1759_v36 = vsel %vm6152_vm2, %v1754_v31, %v1758_v15  ;;  %v1795_v46 = vshrl.u32 %v5115_v35, 16  ;;  %v1798_v47 = vshll.u32 %v5115_v35, 16  ;;  %v332_v49 = vrot.slane %v331_v33, 4  ;;  %v270_v56 = vld [vmem:[%s6141_s5 + $0x1c] sm:$0xf]  ;;  %s6012_s23 = scalar_lea.hbm %s6011_s22, 256 }
  0x24   : > { %2130 = vrot.lane.b32.xlu1 %v1759_v36, %s6060_s6  ;;  %v327_v41 = vsel %vm6152_vm2, %v322_v32, %v326_v27  ;;  %v336_v50 = vrot.slane %v334_v34, 5  ;;  %v1773_v51 = vrot.slane %v1771_v40, 4  ;;  %v1776_v52 = vrot.slane %v1774_v44, 5  ;;  %v273_v1 = vld [vmem:[%s6141_s5 + $0x28] sm:$0xf]  ;;  %p6013_p11 = scmp.ne.s32.totalorder %s6011_s22, %s6012_s23 }
  0x25   : > { %698 = vrot.lane.b32.xlu0 %v327_v41, %s6060_s6  ;;  %v1790_v53 = vshll.u32 %v5114_v39, 16  ;;  %v339_v54 = vshrl.u32 %v266_v45, 16  ;;  %v342_v55 = vshll.u32 %v266_v45, 16  ;;  %v1769_v57 = vsel %vm6152_vm2, %v1764_v37, %v1768_v38  ;;  %v6177_v4 = vld [vmem:[%s6141_s5 + $0x28] sm:$0xf] }
  0x26   : > { %v1787_v58 = vor.u32 %v1786_v43, %v6164_v42  ;;  %v1797_v59 = vrot.slane %v1795_v46, 4  ;;  %v348_v60 = vshll.u32 %v267_v48, 16  ;;  %v1800_v61 = vrot.slane %v1798_v47, 5  ;;  %v271_v5 = vld [vmem:[%s6141_s5 + $0x20] sm:$0x1]  ;;  %p6014_p12 = pnand %p6013_p11, %p6126_p5 }
  0x27   : > { %v341_v62 = vrot.slane %v339_v54, 4  ;;  %v344_v63 = vrot.slane %v342_v55, 5  ;;  %v352_v0 = vshrl.u32 %v267_v48, 16  ;;  %v337_v2 = vsel %vm6152_vm2, %v332_v49, %v336_v50  ;;  %v268_v12 = vld [vmem:[%s6141_s5 + $0x14] sm:$0x1] }
  0x28   : > { %v1777_v3 = vor.u32 %v1776_v52, %v1773_v51  ;;  %v372_v6 = vshll.u32 %v270_v56, 16  ;;  %v376_v7 = vshrl.u32 %v270_v56, 16  ;;  %v1792_v8 = vrot.slane %v1790_v53, 5  ;;  %v272_v17 = vld [vmem:[%s6141_s5 + $0x24] sm:$0xf]  ;;  %p6015_p13 = pneg %p6014_p12 }
  0x29   : > { %v345_v9 = vor.u32 %v344_v63, %v341_v62  ;;  %v350_v10 = vrot.slane %v348_v60, 5  ;;  %v354_v11 = vrot.slane %v352_v0, 4  ;;  %v1788_v13 = vrot.slane %v1787_v58, 4  ;;  %v274_v29 = vld [vmem:[%s6141_s5 + $0x2c] sm:$0x1]  ;;  %v5845_v62 = vld [vmem:[%s8533_s1 + $0x58] sm:$0xff] }
  0x2a   : > { %v6182_v14 = vrot.slane %v372_v6, 5  ;;  %v378_v15 = vrot.slane %v376_v7, 4  ;;  %v396_v16 = vshll.u32 %v273_v1, 16  ;;  %v1801_v18 = vor.u32 %v1800_v61, %v1797_v59  ;;  %v275_v36 = vld [vmem:[%s6141_s5 + $0x30] sm:$0xf]  ;;  %5935 = vmatpush.bf16.msra.mxu1 %v5845_v62 }
  0x2b   : > { %v1804_v19 = vshll.u32 %v6177_v4, 16  ;;  %v346_v20 = vrot.slane %v345_v9, 4  ;;  %v400_v21 = vshrl.u32 %v273_v1, 16  ;;  %v1778_v23 = vrot.slane %v1777_v3, 4  ;;  %v6201_v37 = vld [vmem:[%s6141_s5 + $0x34] sm:$0xf] }
  0x2c   : > { %2132 = vrot.lane.b32.xlu1 %v1769_v57, %s6060_s6  ;;  %v382_v24 = vshll.u32 %v271_v5, 16  ;;  %v6190_v26 = vrot.slane %v396_v16, 5  ;;  %v355_v27 = vor.u32 %v354_v11, %v350_v10  ;;  %v358_v31 = vshll.u32 %v268_v12, 16  ;;  %v269_v43 = vld [vmem:[%s6141_s5 + $0x18] sm:$0xf]  ;;  %v5888_v61 = vld [vmem:[%s8533_s1 + $0xb0] sm:$0xff] }
  0x2d   : > { %700 = vrot.lane.b32.xlu0 %v337_v2, %s6060_s6  ;;  %v351_v28 = vsel %vm6152_vm2, %v346_v20, %v350_v10  ;;  %v402_v30 = vrot.slane %v400_v21, 4  ;;  %v387_v32 = vshrl.u32 %v272_v17, 16  ;;  %v1793_v33 = vsel %vm6152_vm2, %v1788_v13, %v1792_v8  ;;  %v5119_v48 = vld [vmem:[%s6141_s5 + $0x34] sm:$0xf]  ;;  %v5122_v57 = vld [vmem:[%s6141_s5 + $0x40] sm:$0xf]  ;;  %5940 = vmatpush.bf16.msra.mxu3 %v5888_v61 }
  0x2e   : > { %702 = vrot.lane.b32.xlu2 %v351_v28, %s6060_s6  ;;  %v379_v34 = vor.u32 %v378_v15, %v6182_v14  ;;  %v390_v35 = vshll.u32 %v272_v17, 16  ;;  %v6203_v38 = vrot.slane %v1804_v19, 5  ;;  %v356_v39 = vrot.slane %v355_v27, 4  ;;  %v5887_v8 = vld [vmem:[%s8533_s1 + $0xa8] sm:$0xff]  ;;  %v5121_v13 = vld [vmem:[%s6141_s5 + $0x3c] sm:$0xf] }
  0x2f   : > { %v360_v40 = vrot.slane %v358_v31, 5  ;;  %v389_v41 = vrot.slane %v387_v32, 4  ;;  %v1783_v44 = vsel %vm6152_vm2, %v1778_v23, %v6164_v42  ;;  %v403_v45 = vor.u32 %v402_v30, %v6190_v26  ;;  %v5117_v12 = vld [vmem:[%s6141_s5 + $0x2c] sm:$0x1]  ;;  %v5120_v17 = vld [vmem:[%s6141_s5 + $0x38] sm:$0x1] }
  0x30   : > { %v406_v46 = vshll.u32 %v274_v29, 16  ;;  %v392_v47 = vrot.slane %v390_v35, 5  ;;  %v1802_v49 = vrot.slane %v1801_v18, 4  ;;  %v384_v50 = vrot.slane %v382_v24, 5  ;;  %v5124_v24 = vld [vmem:[%s6141_s5 + $0x48] sm:$0xf] }
  0x31   : > { %v411_v51 = vshrl.u32 %v275_v36, 16  ;;  %v414_v52 = vshll.u32 %v275_v36, 16  ;;  %v380_v53 = vrot.slane %v379_v34, 4  ;;  %v420_v55 = vshll.u32 %v6201_v37, 16  ;;  %v5123_v29 = vld [vmem:[%s6141_s5 + $0x44] sm:$0x1]  ;;  %5941 = vmatpush.bf16.msra.mxu3 %v5887_v8 }
  0x32   : > { %v393_v54 = vor.u32 %v392_v47, %v389_v41  ;;  %v363_v56 = vshrl.u32 %v269_v43, 16  ;;  %v361_v42 = vsel %vm6152_vm2, %v356_v39, %v360_v40  ;;  %v366_v58 = vshll.u32 %v269_v43, 16  ;;  %v5118_v36 = vld [vmem:[%s6141_s5 + $0x30] sm:$0xf]  ;;  %v6267_v43 = vld [vmem:[%s6141_s5 + $0x4c] sm:$0xf] }
  0x33   : > { %v1828_v59 = vshll.u32 %v5119_v48, 16  ;;  %v1832_v60 = vshrl.u32 %v5119_v48, 16  ;;  %v1808_v63 = vshrl.u32 %v6177_v4, 16  ;;  %v6224_v0 = vrot.slane %v403_v45, 4  ;;  %v279_v48 = vld [vmem:[%s6141_s5 + $0x40] sm:$0xf] }
  0x34   : > { %2136 = vrot.lane.b32.xlu1 %v1793_v33, %s6060_s6  ;;  %v6226_v1 = vrot.slane %v406_v46, 5  ;;  %v365_v2 = vrot.slane %v363_v56, 4  ;;  %v413_v3 = vrot.slane %v411_v51, 4  ;;  %v416_v5 = vrot.slane %v414_v52, 5  ;;  %v280_v62 = vld [vmem:[%s6141_s5 + $0x44] sm:$0x1] }
  0x35   : > { %2134 = vrot.lane.b32.xlu0 %v1783_v44, %s6060_s6  ;;  %v368_v6 = vrot.slane %v366_v58, 5  ;;  %v1852_v7 = vshll.u32 %v5122_v57, 16  ;;  %v1807_v4 = vsel %vm6152_vm2, %v1802_v49, %v6203_v38  ;;  %v385_v9 = vsel %vm6152_vm2, %v380_v53, %v384_v50  ;;  %v5843_v53 = vld [vmem:[%s8533_s1 + $0x48] sm:$0xff]  ;;  %v850_v8 = vld [vmem:[%s6141_s5 + $0x5c] sm:$0x1] }
  0x36   : > { %704 = vrot.lane.b32.xlu2 %v361_v42, %s6060_s6  ;;  %v6237_v10 = vrot.slane %v393_v54, 4  ;;  %v1856_v11 = vshrl.u32 %v5122_v57, 16  ;;  %v6241_v15 = vrot.slane %v420_v55, 5  ;;  %v6244_v18 = vrot.slane %v1828_v59, 5  ;;  %v848_v42 = vld [vmem:[%s6141_s5 + $0x54] sm:$0xe] }
  0x37   : > { %v369_v16 = vor.u32 %v368_v6, %v365_v2  ;;  %v1834_v19 = vrot.slane %v1832_v60, 4  ;;  %v409_v20 = vsel %vm6152_vm2, %v6224_v0, %v6226_v1  ;;  %v6250_v21 = vrot.slane %v1852_v7, 5 }
  0x38   : > { %v1858_v22 = vrot.slane %v1856_v11, 4  ;;  %v1810_v23 = vrot.slane %v1808_v63, 4  ;;  %v417_v27 = vor.u32 %v416_v5, %v413_v3  ;;  %v1814_v30 = vshll.u32 %v5117_v12, 16  ;;  %v849_v3 = vld [vmem:[%s6141_s5 + $0x58] sm:$0xf] }
  0x39   : > { %v370_v28 = vrot.slane %v369_v16, 4  ;;  %v1843_v31 = vshrl.u32 %v5121_v13, 16  ;;  %v399_v32 = vsel %vm6152_vm2, %v6237_v10, %v6190_v26  ;;  %v1838_v33 = vshll.u32 %v5120_v17, 16  ;;  %v5844_v26 = vld [vmem:[%s8533_s1 + $0x50] sm:$0xff]  ;;  %v5179_v16 = vld [vmem:[%s6141_s5 + $0x64] sm:$0xf] }
  0x3a   : > { %v1811_v34 = vor.u32 %v1810_v23, %v6203_v38  ;;  %v1846_v35 = vshll.u32 %v5121_v13, 16  ;;  %v1835_v40 = vor.u32 %v1834_v19, %v6244_v18  ;;  %v1867_v44 = vshrl.u32 %v5124_v24, 16  ;;  %v5886_v38 = vld [vmem:[%s8533_s1 + $0xa0] sm:$0xff]  ;;  %5936 = vmatpush.bf16.msra.mxu1 %v5844_v26  ;;  %v8073_v23 = vld [vmem:[%s6141_s5 + $0xd0] sm:$0xf] }
  0x3b   : > { %v375_v39 = vsel %vm6152_vm2, %v370_v28, %v6182_v14  ;;  %v1845_v41 = vrot.slane %v1843_v31, 4  ;;  %v1859_v45 = vor.u32 %v1858_v22, %v6250_v21  ;;  %v1862_v46 = vshll.u32 %v5123_v29, 16  ;;  %5942 = vmatpush.bf16.msra.mxu3 %v5886_v38  ;;  %v5842_v17 = vld [vmem:[%s8533_s1 + $0x40] sm:$0xff] }
  0x3c   : > { %2138 = vrot.lane.b32.xlu1 %v1807_v4, %s6060_s6  ;;  %v1848_v47 = vrot.slane %v1846_v35, 5  ;;  %v1870_v14 = vshll.u32 %v5124_v24, 16  ;;  %v1812_v49 = vrot.slane %v1811_v34, 4  ;;  %v1816_v50 = vrot.slane %v1814_v30, 5 }
  0x3d   : > { %708 = vrot.lane.b32.xlu0 %v385_v9, %s6060_s6  ;;  %v1869_v51 = vrot.slane %v1867_v44, 4  ;;  %v1819_v52 = vshrl.u32 %v5118_v36, 16  ;;  %v6280_v54 = vrot.slane %v417_v27, 4  ;;  %v1876_v57 = vshll.u32 %v6267_v43, 16  ;;  %v5178_v27 = vld [vmem:[%s6141_s5 + $0x60] sm:$0xe] }
  0x3e   : > { %706 = vrot.lane.b32.xlu2 %v375_v39, %s6060_s6  ;;  %v1849_v55 = vor.u32 %v1848_v47, %v1845_v41  ;;  %v1872_v56 = vrot.slane %v1870_v14, 5  ;;  %v6285_v58 = vrot.slane %v1835_v40, 4  ;;  %v6287_v59 = vrot.slane %v1838_v33, 5  ;;  %5937 = vmatpush.bf16.msra.mxu1 %v5843_v53  ;;  %v282_v33 = vld [vmem:[%s6141_s5 + $0x4c] sm:$0xf] }
  0x3f   : > { %v1821_v60 = vrot.slane %v1819_v52, 4  ;;  %v1822_v61 = vshll.u32 %v5118_v36, 16  ;;  %v6290_v63 = vrot.slane %v1862_v46, 5  ;;  %v444_v1 = vshll.u32 %v279_v48, 16  ;;  %v5539_v39 = vld [vmem:[%s6141_s5 + $0x70] sm:$0xf] }
  0x40   : > { %v1873_v0 = vor.u32 %v1872_v56, %v1869_v51  ;;  %v448_v2 = vshrl.u32 %v279_v48, 16  ;;  %v6293_v5 = vrot.slane %v1859_v45, 4  ;;  %v1817_v6 = vsel %vm6152_vm2, %v1812_v49, %v1816_v50  ;;  %v281_v40 = vld [vmem:[%s6141_s5 + $0x48] sm:$0xf]  ;;  %v5538_v45 = vld [vmem:[%s6141_s5 + $0x6c] sm:$0xe] }
  0x41   : > { %v1824_v7 = vrot.slane %v1822_v61, 5  ;;  %v6299_v4 = vrot.slane %v1849_v55, 4  ;;  %v6301_v9 = vrot.slane %v1876_v57, 5  ;;  %v454_v10 = vshll.u32 %v280_v62, 16  ;;  %v277_v46 = vld [vmem:[%s6141_s5 + $0x38] sm:$0x1] }
  0x42   : > { %v4876_v12 = vrot.slane %v848_v42, 9  ;;  %v977_v13 = vrot.slane %v849_v3, 5  ;;  %v6308_v19 = vrot.slane %v1873_v0, 4  ;;  %v450_v22 = vrot.slane %v448_v2, 4  ;;  %5938 = vmatpush.bf16.msra.mxu1 %v5842_v17  ;;  %v5540_v49 = vld [vmem:[%s6141_s5 + $0x74] sm:$0x1] }
  0x43   : > { %v1825_v11 = vor.u32 %v1824_v7, %v1821_v60  ;;  %v980_v24 = vrot.slane %v850_v8, 5  ;;  %v423_v28 = vsel %vm6152_vm2, %v6280_v54, %v6241_v15  ;;  %v424_v29 = vshrl.u32 %v6201_v37, 16  ;;  %v284_v55 = vld [vmem:[%s6141_s5 + $0x54] sm:$0xf]  ;;  %v283_v57 = vld [vmem:[%s6141_s5 + $0x50] sm:$0x1] }
  0x44   : > { %712 = vrot.lane.b32.xlu1 %v409_v20, %s6060_s6  ;;  %v6310_v20 = vrot.slane %v444_v1, 5  ;;  %v978_v30 = vsel %vm6313_vm6, %v4876_v12, %v977_v13  ;;  %v979_v31 = vrot.slane %v977_v13, 4  ;;  %v1841_v34 = vsel %vm6152_vm2, %v6285_v58, %v6287_v59  ;;  %v278_v7 = vld [vmem:[%s6141_s5 + $0x3c] sm:$0xf]  ;;  %v6373_v12 = vld [vmem:[%s6141_s5 + $0x58] sm:$0xf] }
  0x45   : > { %710 = vrot.lane.b32.xlu0 %v399_v32, %s6060_s6  ;;  %v5180_v32 = vld [vmem:[%s6141_s5 + $0x68] sm:$0x1]  ;;  %v1865_v35 = vsel %vm6152_vm2, %v6293_v5, %v6290_v63  ;;  %v1880_v37 = vshrl.u32 %v6267_v43, 16  ;;  %1084 = vst.msk [vmem:[#allocation2 + $0x74] sm:$0xf] %vm230_vm4, %v978_v30  ;;  %v2405_v36 = vrot.slane %v5179_v16, 5  ;;  %v1855_v41 = vsel %vm6152_vm2, %v6299_v4, %v6250_v21 }
  0x46   : > { %2140 = vrot.lane.b32.xlu2 %v1817_v6, %s6060_s6  ;;  %v1826_v44 = vrot.slane %v1825_v11, 4  ;;  %v981_v26 = vsel %vm6313_vm6, %v979_v31, %v980_v24  ;;  %v5212_v38 = vrot.slane %v5178_v27, 9  ;;  %v1879_v47 = vsel %vm6152_vm2, %v6308_v19, %v6301_v9  ;;  %v5128_v24 = vld [vmem:[%s6141_s5 + $0x58] sm:$0xf]  ;;  %v851_v27 = vld [vmem:[%s6141_s5 + $0x60] sm:$0xe] }
  0x47   : > { %v451_v14 = vor.u32 %v450_v22, %v6310_v20  ;;  %v6353_v48 = vrot.slane %v454_v10, 5  ;;  %1085 = vst.msk [vmem:[#allocation2 + $0x7c] sm:$0xf] %vm230_vm4, %v981_v26  ;;  %v468_v50 = vshll.u32 %v282_v33, 16  ;;  %v2407_v51 = vrot.slane %v2405_v36, 4 }
  0x48   : > { %v2408_v52 = vrot.slane %v5180_v32, 5  ;;  %v3897_v53 = vrot.slane %v5539_v39, 5  ;;  %v472_v54 = vshrl.u32 %v282_v33, 16  ;;  %v5572_v56 = vrot.slane %v5538_v45, 9 }
  0x49   : > { %v6360_v42 = vrot.slane %v468_v50, 5  ;;  %v426_v58 = vrot.slane %v424_v29, 4  ;;  %v430_v59 = vshll.u32 %v277_v46, 16  ;;  %v1831_v60 = vsel %vm6152_vm2, %v1826_v44, %v6244_v18  ;;  %v853_v44 = vld [vmem:[%s6141_s5 + $0x68] sm:$0x1] }
  0x4a   : > { %v2406_v61 = vsel %vm6313_vm6, %v5212_v38, %v2405_v36  ;;  %v474_v62 = vrot.slane %v472_v54, 4  ;;  %v459_v0 = vshrl.u32 %v281_v40, 16  ;;  %v3900_v1 = vrot.slane %v5540_v49, 5  ;;  %v5129_v46 = vld [vmem:[%s6141_s5 + $0x5c] sm:$0x1] }
  0x4b   : > { %v427_v2 = vor.u32 %v426_v58, %v6241_v15  ;;  %v462_v3 = vshll.u32 %v281_v40, 16  ;;  %v483_v6 = vshrl.u32 %v284_v55, 16  ;;  %v2409_v10 = vsel %vm6313_vm6, %v2407_v51, %v2408_v52 }
  0x4c   : > { %714 = vrot.lane.b32.xlu1 %v423_v28, %s6060_s6  ;;  %v5816_v8 = vld [vmem:[#allocation2 + $0x74] sm:$0xf]  ;;  %v3899_v11 = vrot.slane %v3897_v53, 4  ;;  %v478_v18 = vshll.u32 %v283_v57, 16  ;;  %v486_v13 = vshll.u32 %v284_v55, 16  ;;  %v6376_v16 = vrot.slane %v451_v14, 4 }
  0x4d   : > { %2144 = vrot.lane.b32.xlu0 %v1841_v34, %s6060_s6  ;;  %2512 = vst.msk [vmem:[#allocation2 + $0x74] sm:$0xf] %vm230_vm4, %v2406_v61  ;;  %v3898_v15 = vsel %vm6313_vm6, %v5572_v56, %v3897_v53  ;;  %v475_v17 = vor.u32 %v474_v62, %v6360_v42  ;;  %v432_v22 = vrot.slane %v430_v59, 5  ;;  %v852_v28 = vld [vmem:[%s6141_s5 + $0x64] sm:$0xf]  ;;  %v428_v30 = vrot.slane %v427_v2, 4 }
  0x4e   : > { %2142 = vrot.lane.b32.xlu2 %v1831_v60, %s6060_s6  ;;  %v4945_v29 = vld [vmem:[#allocation2 + $0x78] sm:$0xf0]  ;;  %v461_v31 = vrot.slane %v459_v0, 4  ;;  %v464_v32 = vrot.slane %v462_v3, 5  ;;  %v435_v33 = vshrl.u32 %v278_v7, 16  ;;  %v485_v36 = vrot.slane %v483_v6, 4 }
  0x4f   : > { %2513 = vst.msk [vmem:[#allocation2 + $0x7c] sm:$0xf] %vm230_vm4, %v2409_v10  ;;  %v4948_v34 = vor.u32 %v5816_v8, %v4945_v29  ;;  %v488_v39 = vrot.slane %v486_v13, 5  ;;  %v438_v40 = vshll.u32 %v278_v7, 16  ;;  %v3901_v26 = vsel %vm6313_vm6, %v3899_v11, %v3900_v1  ;;  %v5181_v53 = vld [vmem:[%s6141_s5 + $0x6c] sm:$0xe] }
  0x50   : > { %v6389_v38 = vrot.slane %v478_v18, 5  ;;  %v437_v45 = vrot.slane %v435_v33, 4  ;;  %v1900_v14 = vshll.u32 %v5128_v24, 16  ;;  %v6398_v49 = vrot.slane %v475_v17, 4  ;;  %v5182_v55 = vld [vmem:[%s6141_s5 + $0x70] sm:$0xf] }
  0x51   : > { %5068 = vmatmul.msk.bf16.vlgmr.msra.gmra.mxu1 %vm1374_vm7, %v4948_v34  ;;  %v492_v50 = vshll.u32 %v6373_v12, 16  ;;  %v440_v51 = vrot.slane %v438_v40, 5  ;;  %v1904_v52 = vshrl.u32 %v5128_v24, 16  ;;  %v433_v63 = vsel %vm6152_vm2, %v428_v30, %v432_v22  ;;  %v5183_v60 = vld [vmem:[%s6141_s5 + $0x74] sm:$0x1] }
  0x52   : > { %v6411_v5 = vrot.slane %v1900_v14, 5  ;;  %v984_v54 = vrot.slane %v852_v28, 5  ;;  %v465_v56 = vor.u32 %v464_v32, %v461_v31  ;;  %v489_v57 = vor.u32 %v488_v39, %v485_v36  ;;  %v6416_v61 = vld [vmem:[%s6141_s5 + $0x78] sm:$0xe]  ;;  %v5131_v62 = vld [vmem:[%s6141_s5 + $0x64] sm:$0xf] }
  0x53   : > { %v441_v58 = vor.u32 %v440_v51, %v437_v45  ;;  %v1906_v59 = vrot.slane %v1904_v52, 4  ;;  %v1910_v21 = vshll.u32 %v5129_v46, 16  ;;  %v987_v1 = vrot.slane %v853_v44, 5  ;;  %v6422_v2 = vld [vmem:[%s6141_s5 + $0x7c] sm:$0xf] }
  0x54   : > { %2148 = vrot.lane.b32.xlu1 %v1865_v35, %s6060_s6  ;;  %v4877_v35 = vrot.slane %v851_v27, 9  ;;  %v5860_v0 = vld [vmem:[#allocation2 + $0x74] sm:$0xf]  ;;  %v457_v3 = vsel %vm6152_vm2, %v6376_v16, %v6353_v48  ;;  %v6430_v6 = vrot.slane %v492_v50, 5  ;;  %v496_v7 = vshrl.u32 %v6373_v12, 16 }
  0x55   : > { %2146 = vrot.lane.b32.xlu0 %v1855_v41, %s6060_s6  ;;  %v986_v41 = vrot.slane %v984_v54, 4  ;;  %4004 = vst.msk [vmem:[#allocation2 + $0x74] sm:$0xf] %vm230_vm4, %v3898_v15  ;;  %v2412_v8 = vrot.slane %v5182_v55, 5  ;;  %v442_v11 = vrot.slane %v441_v58, 4  ;;  %v1907_v18 = vor.u32 %v1906_v59, %v6411_v5 }
  0x56   : > { %v985_v4 = vsel %vm6313_vm6, %v4877_v35, %v984_v54  ;;  %716 = vrot.lane.b32.xlu2 %v433_v63, %s6060_s6  ;;  %v5305_v10 = vld [vmem:[#allocation2 + $0x78] sm:$0xf0]  ;;  %v5213_v48 = vrot.slane %v5181_v53, 9  ;;  %v6438_v16 = vld [vmem:[%s6141_s5 + $0x80] sm:$0x1]  ;;  %v481_v17 = vsel %vm6152_vm2, %v6398_v49, %v6389_v38  ;;  %v6445_v22 = vrot.slane %v465_v56, 4 }
  0x57   : > { %v988_v13 = vsel %vm6313_vm6, %v986_v41, %v987_v1  ;;  %1086 = vst.msk [vmem:[#allocation2 + $0x84] sm:$0xf] %vm230_vm4, %v985_v4  ;;  %v5308_v15 = vor.u32 %v5860_v0, %v5305_v10  ;;  %v6447_v24 = vrot.slane %v489_v57, 4  ;;  %v5132_v27 = vld [vmem:[%s6141_s5 + $0x68] sm:$0x1]  ;;  %v6452_v30 = vrot.slane %v1910_v21, 5 }
  0x58   : > { %4005 = vst.msk [vmem:[#allocation2 + $0x7c] sm:$0xf] %vm230_vm4, %v3901_v26  ;;  %v5126_v28 = vld [vmem:[%s6141_s5 + $0x50] sm:$0x1]  ;;  %v5130_v29 = vld [vmem:[%s6141_s5 + $0x60] sm:$0xf]  ;;  %v447_v26 = vsel %vm6152_vm2, %v442_v11, %v6310_v20 }
  0x59   : > { %1087 = vst.msk [vmem:[#allocation2 + $0x8c] sm:$0xf] %vm230_vm4, %v988_v13  ;;  %v2415_v31 = vrot.slane %v5183_v60, 5  ;;  %v5573_v32 = vrot.slane %v6416_v61, 9  ;;  %v1924_v33 = vshll.u32 %v5131_v62, 16  ;;  %5428 = vmatmul.msk.bf16.vlgmr.msra.gmra.mxu3 %vm1374_vm7, %v5308_v15  ;;  %v2414_v34 = vrot.slane %v2412_v8, 4 }
  0x5a   : > { %v3904_v36 = vrot.slane %v6422_v2, 5  ;;  %v1928_v39 = vshrl.u32 %v5131_v62, 16  ;;  %v1882_v40 = vrot.slane %v1880_v37, 4  ;;  %v5469_v44 = vld [vmem:[%s6141_s5 + $0x18] sm:$0xf]  ;;  %v6471_v19 = vrot.slane %v1907_v18, 4 }
  0x5b   : > { %v6475_v38 = vrot.slane %v1924_v33, 5  ;;  %v3907_v45 = vrot.slane %v6438_v16, 5  ;;  %v1886_v46 = vshll.u32 %v5126_v28, 16  ;;  %v6480_v14 = vld [vmem:[%s6141_s5 + $0x1c] sm:$0xf]  ;;  %v1934_v49 = vshll.u32 %v5132_v27, 16 }
  0x5c   : > { %2150 = vrot.lane.b32.xlu1 %v1879_v47, %s6060_s6  ;;  %v2413_v47 = vsel %vm6313_vm6, %v5213_v48, %v2412_v8  ;;  %v1930_v43 = vrot.slane %v1928_v39, 4  ;;  %v1883_v37 = vor.u32 %v1882_v40, %v6301_v9  ;;  %v1915_v50 = vshrl.u32 %v5130_v29, 16  ;;  %v5127_v52 = vld [vmem:[%s6141_s5 + $0x54] sm:$0xf]  ;;  %v288_v55 = vld [vmem:[%s6141_s5 + $0x64] sm:$0xf] }
  0x5d   : > { %720 = vrot.lane.b32.xlu0 %v457_v3, %s6060_s6  ;;  %v1918_v51 = vshll.u32 %v5130_v29, 16  ;;  %v3239_v20 = vshrl.u32 %v5469_v44, 16  ;;  %v2416_v63 = vsel %vm6313_vm6, %v2414_v34, %v2415_v31  ;;  %v3906_v35 = vrot.slane %v3904_v36, 4  ;;  %v6497_v4 = vld [vmem:[%s6141_s5 + $0x68] sm:$0x1] }
  0x5e   : > { %718 = vrot.lane.b32.xlu2 %v447_v26, %s6060_s6  ;;  %v5818_v53 = vld [vmem:[#allocation2 + $0x84] sm:$0xf]  ;;  %v1931_v54 = vor.u32 %v1930_v43, %v6475_v38  ;;  %v3242_v9 = vshll.u32 %v5469_v44, 16  ;;  %v1884_v56 = vrot.slane %v1883_v37, 4  ;;  %v1888_v57 = vrot.slane %v1886_v46, 5  ;;  %v5841_v26 = vld [vmem:[%s8533_s1 + $0x38] sm:$0xff] }
  0x5f   : > { %2514 = vst.msk [vmem:[#allocation2 + $0x84] sm:$0xf] %vm230_vm4, %v2413_v47  ;;  %v1917_v58 = vrot.slane %v1915_v50, 4  ;;  %v1920_v59 = vrot.slane %v1918_v51, 5  ;;  %v471_v60 = vsel %vm6152_vm2, %v6445_v22, %v6360_v42  ;;  %v3905_v62 = vsel %vm6313_vm6, %v5573_v32, %v3904_v36  ;;  %v854_v41 = vld [vmem:[%s6141_s5 + $0x6c] sm:$0xe]  ;;  %1423 = vmatpush.bf16.msra.mxu0 %v5841_v26 }
  0x60   : > { %v4953_v61 = vld [vmem:[#allocation2 + $0x88] sm:$0xf0]  ;;  %v3241_v0 = vrot.slane %v3239_v20, 4  ;;  %v3248_v21 = vshll.u32 %v6480_v14, 16  ;;  %v3244_v3 = vrot.slane %v3242_v9, 5  ;;  %v1891_v8 = vshrl.u32 %v5127_v52, 16 }
  0x61   : > { %2515 = vst.msk [vmem:[#allocation2 + $0x8c] sm:$0xf] %vm230_vm4, %v2416_v63  ;;  %v1921_v1 = vor.u32 %v1920_v59, %v1917_v58  ;;  %v4956_v2 = vor.u32 %v5818_v53, %v4953_v61  ;;  %v855_v10 = vld [vmem:[%s6141_s5 + $0x70] sm:$0xf]  ;;  %v3908_v42 = vsel %vm6313_vm6, %v3906_v35, %v3907_v45  ;;  %v6505_v11 = vrot.slane %v1934_v49, 5 }
  0x62   : > { %v1894_v18 = vshll.u32 %v5127_v52, 16  ;;  %v516_v13 = vshll.u32 %v288_v55, 16  ;;  %v856_v48 = vld [vmem:[%s6141_s5 + $0x74] sm:$0x1]  ;;  %v6509_v16 = vrot.slane %v1931_v54, 4  ;;  %v1889_v15 = vsel %vm6152_vm2, %v1884_v56, %v1888_v57 }
  0x63   : > { %5069 = vmatmul.msk.bf16.gmra.mxu1 %vm1374_vm7, %v4956_v2  ;;  %v520_v22 = vshrl.u32 %v288_v55, 16  ;;  %v5184_v27 = vld [vmem:[%s6141_s5 + $0x78] sm:$0xe]  ;;  %v6515_v28 = vrot.slane %v3248_v21, 5  ;;  %v3252_v29 = vshrl.u32 %v6480_v14, 16  ;;  %v4878_v32 = vrot.slane %v854_v41, 9 }
  0x64   : > { %724 = vrot.lane.b32.xlu1 %v481_v17, %s6060_s6  ;;  %v1893_v17 = vrot.slane %v1891_v8, 4  ;;  %v1896_v31 = vrot.slane %v1894_v18, 5  ;;  %v5185_v33 = vld [vmem:[%s6141_s5 + $0x7c] sm:$0xf]  ;;  %v6519_v34 = vrot.slane %v1921_v1, 4  ;;  %v3245_v36 = vor.u32 %v3244_v3, %v3241_v0  ;;  %v5840_v41 = vld [vmem:[%s8533_s1 + $0x30] sm:$0xff] }
  0x65   : > { %722 = vrot.lane.b32.xlu0 %v471_v60, %s6060_s6  ;;  %v526_v39 = vshll.u32 %v6497_v4, 16  ;;  %v991_v40 = vrot.slane %v855_v10, 5  ;;  %v6523_v44 = vld [vmem:[%s6141_s5 + $0x80] sm:$0x1]  ;;  %v6529_v43 = vrot.slane %v516_v13, 5  ;;  %v522_v37 = vrot.slane %v520_v22, 4  ;;  %1424 = vmatpush.bf16.msra.mxu0 %v5840_v41 }
  0x66   : > { %v5862_v47 = vld [vmem:[#allocation2 + $0x84] sm:$0xf]  ;;  %2152 = vrot.lane.b32.xlu2 %v1889_v15, %s6060_s6  ;;  %v1897_v45 = vor.u32 %v1896_v31, %v1893_v17  ;;  %v994_v46 = vrot.slane %v856_v48, 5  ;;  %v495_v49 = vsel %vm6152_vm2, %v6447_v24, %v6430_v6  ;;  %v2419_v20 = vrot.slane %v5185_v33, 5  ;;  %v5134_v53 = vld [vmem:[%s6141_s5 + $0x70] sm:$0xf] }
  0x67   : > { %4006 = vst.msk [vmem:[#allocation2 + $0x84] sm:$0xf] %vm230_vm4, %v3905_v62  ;;  %v992_v50 = vsel %vm6313_vm6, %v4878_v32, %v991_v40  ;;  %v993_v51 = vrot.slane %v991_v40, 4  ;;  %v6539_v52 = vld [vmem:[%s6141_s5 + $0x84] sm:$0xe]  ;;  %v1913_v63 = vsel %vm6152_vm2, %v6471_v19, %v6452_v30  ;;  %v5214_v54 = vrot.slane %v5184_v27, 9 }
  0x68   : > { %v5313_v24 = vld [vmem:[#allocation2 + $0x88] sm:$0xf0]  ;;  %v1898_v35 = vrot.slane %v1897_v45, 4  ;;  %1088 = vst.msk [vmem:[#allocation2 + $0x94] sm:$0xf] %vm230_vm4, %v992_v50  ;;  %v1937_v30 = vsel %vm6152_vm2, %v6509_v16, %v6505_v11  ;;  %v6557_v19 = vrot.slane %v3245_v36, 4  ;;  %v523_v58 = vor.u32 %v522_v37, %v6529_v43 }
  0x69   : > { %v5316_v9 = vor.u32 %v5862_v47, %v5313_v24  ;;  %4007 = vst.msk [vmem:[#allocation2 + $0x8c] sm:$0xf] %vm230_vm4, %v3908_v42  ;;  %v995_v55 = vsel %vm6313_vm6, %v993_v51, %v994_v46  ;;  %v5545_v56 = vld [vmem:[%s6141_s5 + $0x88] sm:$0xf]  ;;  %v5135_v57 = vld [vmem:[%s6141_s5 + $0x74] sm:$0x1]  ;;  %v1927_v1 = vsel %vm6152_vm2, %v6519_v34, %v6475_v38  ;;  %v2420_v3 = vsel %vm6313_vm6, %v5214_v54, %v2419_v20 }
  0x6a   : > { %1089 = vst.msk [vmem:[#allocation2 + $0x9c] sm:$0xf] %vm230_vm4, %v995_v55  ;;  %v2422_v59 = vrot.slane %v6523_v44, 5  ;;  %v286_v60 = vld [vmem:[%s6141_s5 + $0x5c] sm:$0x1]  ;;  %v1903_v61 = vsel %vm6152_vm2, %v1898_v35, %v6411_v5  ;;  %v2421_v62 = vrot.slane %v2419_v20, 4 }
  0x6b   : > { %5429 = vmatmul.msk.bf16.gmra.mxu3 %vm1374_vm7, %v5316_v9  ;;  %v1948_v0 = vshll.u32 %v5134_v53, 16  ;;  %v1952_v21 = vshrl.u32 %v5134_v53, 16  ;;  %v5133_v4 = vld [vmem:[%s6141_s5 + $0x6c] sm:$0xf]  ;;  %v6576_v2 = vrot.slane %v526_v39, 5  ;;  %v5574_v8 = vrot.slane %v6539_v52, 9 }
  0x6c   : > { %726 = vrot.lane.b32.xlu1 %v495_v49, %s6060_s6  ;;  %v6581_v5 = vld [vmem:[%s6141_s5 + $0x8c] sm:$0x1]  ;;  %v5472_v10 = vld [vmem:[%s6141_s5 + $0x24] sm:$0xf]  ;;  %v3911_v42 = vrot.slane %v5545_v56, 5  ;;  %v1958_v11 = vshll.u32 %v5135_v57, 16  ;;  %v2423_v32 = vsel %vm6313_vm6, %v2421_v62, %v2422_v59 }
  0x6d   : > { %2156 = vrot.lane.b32.xlu0 %v1913_v63, %s6060_s6  ;;  %v498_v18 = vrot.slane %v496_v7, 4  ;;  %v502_v13 = vshll.u32 %v286_v60, 16  ;;  %v5839_v38 = vld [vmem:[%s8533_s1 + $0x28] sm:$0xff]  ;;  %v5885_v48 = vld [vmem:[%s8533_s1 + $0x98] sm:$0xff]  ;;  %v6594_v16 = vrot.slane %v1948_v0, 5  ;;  %v6596_v15 = vrot.slane %v1952_v21, 4 }
  0x6e   : > { %2154 = vrot.lane.b32.xlu2 %v1903_v61, %s6060_s6  ;;  %v1939_v17 = vshrl.u32 %v5133_v4, 16  ;;  %v1942_v12 = vshll.u32 %v5133_v4, 16  ;;  %v6599_v7 = vld [vmem:[%s6141_s5 + $0x28] sm:$0xf]  ;;  %v5933_v22 = vld [vmem:[%s8533_s1 + $0x118] sm:$0xff]  ;;  %v6604_v27 = vrot.slane %v523_v58, 4  ;;  %2851 = vmatpush.bf16.msra.mxu2 %v5885_v48  ;;  %v3912_v45 = vsel %vm6313_vm6, %v5574_v8, %v3911_v42 }
  0x6f   : > { %v5820_v31 = vld [vmem:[#allocation2 + $0x94] sm:$0xf]  ;;  %v499_v33 = vor.u32 %v498_v18, %v6430_v6  ;;  %v504_v34 = vrot.slane %v502_v13, 5  ;;  %v287_v36 = vld [vmem:[%s6141_s5 + $0x60] sm:$0xf]  ;;  %v3914_v39 = vrot.slane %v6581_v5, 5  ;;  %4436 = vmatpush.bf16.msrb.mxu3 %v5933_v22  ;;  %1425 = vmatpush.bf16.msra.mxu0 %v5839_v38  ;;  %v1955_v50 = vor.u32 %v6596_v15, %v6594_v16 }
  0x70   : > { %2516 = vst.msk [vmem:[#allocation2 + $0x94] sm:$0xf] %vm230_vm4, %v2420_v3  ;;  %v1941_v40 = vrot.slane %v1939_v17, 4  ;;  %v1944_v44 = vrot.slane %v1942_v12, 5  ;;  %v3263_v26 = vshrl.u32 %v5472_v10, 16  ;;  %v3266_v46 = vshll.u32 %v5472_v10, 16 }
  0x71   : > { %v4961_v47 = vld [vmem:[#allocation2 + $0x98] sm:$0xf0]  ;;  %v500_v37 = vrot.slane %v499_v33, 4  ;;  %v291_v6 = vld [vmem:[%s6141_s5 + $0x70] sm:$0xf]  ;;  %v3913_v49 = vrot.slane %v3911_v42, 4  ;;  %v3251_v21 = vsel %vm6152_vm2, %v6557_v19, %v6515_v28  ;;  %v529_v13 = vsel %vm6152_vm2, %v6604_v27, %v6576_v2 }
  0x72   : > { %2517 = vst.msk [vmem:[#allocation2 + $0x9c] sm:$0xf] %vm230_vm4, %v2423_v32  ;;  %v6619_v51 = vrot.slane %v1958_v11, 5  ;;  %v4964_v20 = vor.u32 %v5820_v31, %v4961_v47  ;;  %v857_v52 = vld [vmem:[%s6141_s5 + $0x78] sm:$0xe]  ;;  %v3272_v63 = vshll.u32 %v6599_v7, 16  ;;  %v1945_v9 = vor.u32 %v1944_v44, %v1941_v40 }
  0x73   : > { %v505_v53 = vsel %vm6152_vm2, %v500_v37, %v504_v34  ;;  %v507_v24 = vshrl.u32 %v287_v36, 16  ;;  %v510_v35 = vshll.u32 %v287_v36, 16  ;;  %v858_v54 = vld [vmem:[%s6141_s5 + $0x7c] sm:$0xf]  ;;  %v6628_v55 = vrot.slane %v3263_v26, 4  ;;  %v5838_v58 = vld [vmem:[%s8533_s1 + $0x20] sm:$0xff] }
  0x74   : > { %2160 = vrot.lane.b32.xlu1 %v1937_v30, %s6060_s6  ;;  %5070 = vmatmul.msk.bf16.gmra.mxu1 %vm1374_vm7, %v4964_v20  ;;  %v540_v56 = vshll.u32 %v291_v6, 16  ;;  %v544_v57 = vshrl.u32 %v291_v6, 16  ;;  %v859_v30 = vld [vmem:[%s6141_s5 + $0x80] sm:$0x1]  ;;  %v3268_v59 = vrot.slane %v3266_v46, 5  ;;  %v4879_v0 = vrot.slane %v857_v52, 9 }
  0x75   : > { %2158 = vrot.lane.b32.xlu0 %v1927_v1, %s6060_s6  ;;  %v509_v60 = vrot.slane %v507_v24, 4  ;;  %v512_v61 = vrot.slane %v510_v35, 5  ;;  %v6635_v62 = vld [vmem:[%s6141_s5 + $0x74] sm:$0x1]  ;;  %v3915_v4 = vsel %vm6313_vm6, %v3913_v49, %v3914_v39  ;;  %v5187_v1 = vld [vmem:[%s6141_s5 + $0x84] sm:$0xe]  ;;  %1426 = vmatpush.bf16.msra.mxu0 %v5838_v58 }
  0x76   : > { %728 = vrot.lane.b32.xlu2 %v505_v53, %s6060_s6  ;;  %v6644_v41 = vrot.slane %v540_v56, 5  ;;  %v5188_v3 = vld [vmem:[%s6141_s5 + $0x88] sm:$0xf]  ;;  %v5884_v5 = vld [vmem:[%s8533_s1 + $0x90] sm:$0xff]  ;;  %v546_v42 = vrot.slane %v544_v57, 4  ;;  %v998_v11 = vrot.slane %v858_v54, 5  ;;  %v3269_v33 = vor.u32 %v3268_v59, %v6628_v55 }
  0x77   : > { %v5864_v8 = vld [vmem:[#allocation2 + $0x94] sm:$0xf]  ;;  %v513_v10 = vor.u32 %v512_v61, %v509_v60  ;;  %v1001_v19 = vrot.slane %v859_v30, 5  ;;  %v5837_v18 = vld [vmem:[%s8533_s1 + $0x18] sm:$0xff]  ;;  %v6659_v38 = vrot.slane %v1955_v50, 4  ;;  %v6661_v48 = vrot.slane %v1945_v9, 4  ;;  %2852 = vmatpush.bf16.msra.mxu2 %v5884_v5 }
  0x78   : > { %4008 = vst.msk [vmem:[#allocation2 + $0x94] sm:$0xf] %vm230_vm4, %v3912_v45  ;;  %v5189_v15 = vld [vmem:[%s6141_s5 + $0x8c] sm:$0x1]  ;;  %v999_v22 = vsel %vm6313_vm6, %v4879_v0, %v998_v11  ;;  %v1000_v31 = vrot.slane %v998_v11, 4  ;;  %v2426_v32 = vrot.slane %v5188_v3, 5  ;;  %v547_v44 = vor.u32 %v546_v42, %v6644_v41 }
  0x79   : > { %v5321_v17 = vld [vmem:[#allocation2 + $0x98] sm:$0xf0]  ;;  %v514_v12 = vrot.slane %v513_v10, 4  ;;  %v5883_v2 = vld [vmem:[%s8533_s1 + $0x88] sm:$0xff]  ;;  %v3276_v34 = vshrl.u32 %v6599_v7, 16  ;;  %v550_v36 = vshll.u32 %v6635_v62, 16  ;;  %1427 = vmatpush.bf16.msra.mxu0 %v5837_v18  ;;  %v1951_v50 = vsel %vm6152_vm2, %v6661_v48, %v6594_v16 }
  0x7a   : > { %v5324_v27 = vor.u32 %v5864_v8, %v5321_v17  ;;  %4009 = vst.msk [vmem:[#allocation2 + $0x9c] sm:$0xf] %vm230_vm4, %v3915_v4  ;;  %v5137_v39 = vld [vmem:[%s6141_s5 + $0x7c] sm:$0xf]  ;;  %v1002_v26 = vsel %vm6313_vm6, %v1000_v31, %v1001_v19  ;;  %v5215_v47 = vrot.slane %v5187_v1, 9  ;;  %v6694_v46 = vrot.slane %v3272_v63, 5 }
  0x7b   : > { %v519_v40 = vsel %vm6152_vm2, %v514_v12, %v6529_v43  ;;  %1090 = vst.msk [vmem:[#allocation2 + $0xa4] sm:$0xf] %vm230_vm4, %v999_v22  ;;  %v6684_v45 = vld [vmem:[%s6141_s5 + $0x90] sm:$0xe]  ;;  %v6687_v37 = vld [vmem:[%s6141_s5 + $0x94] sm:$0xf]  ;;  %v1961_v43 = vsel %vm6152_vm2, %v6659_v38, %v6619_v51  ;;  %2853 = vmatpush.bf16.msra.mxu2 %v5883_v2 }
  0x7c   : > { %3622 = vrot.lane.b32.xlu1 %v3251_v21, %s6060_s6  ;;  %5430 = vmatmul.msk.bf16.gmra.mxu3 %vm1374_vm7, %v5324_v27  ;;  %1091 = vst.msk [vmem:[#allocation2 + $0xac] sm:$0xf] %vm230_vm4, %v1002_v26  ;;  %v2429_v6 = vrot.slane %v5189_v15, 5  ;;  %v5471_v49 = vld [vmem:[%s6141_s5 + $0x20] sm:$0x1]  ;;  %v2428_v20 = vrot.slane %v2426_v32, 4  ;;  %v2427_v57 = vsel %vm6313_vm6, %v5215_v47, %v2426_v32 }
  0x7d   : > { %732 = vrot.lane.b32.xlu0 %v529_v13, %s6060_s6  ;;  %v1972_v52 = vshll.u32 %v5137_v39, 16  ;;  %v1976_v53 = vshrl.u32 %v5137_v39, 16  ;;  %v5136_v24 = vld [vmem:[%s6141_s5 + $0x78] sm:$0xf]  ;;  %v5836_v51 = vld [vmem:[%s8533_s1 + $0x10] sm:$0xff]  ;;  %v6706_v63 = vrot.slane %v3269_v33, 4 }
  0x7e   : > { %730 = vrot.lane.b32.xlu2 %v519_v40, %s6060_s6  ;;  %v5138_v35 = vld [vmem:[%s6141_s5 + $0x80] sm:$0x1]  ;;  %v3254_v54 = vrot.slane %v3252_v29, 4  ;;  %v3258_v9 = vshll.u32 %v5471_v49, 16  ;;  %v1963_v55 = vshrl.u32 %v5136_v24, 16  ;;  %v6712_v16 = vrot.slane %v547_v44, 4  ;;  %1428 = vmatpush.bf16.msra.mxu0 %v5836_v51 }
  0x7f   : > { %v6714_v56 = vrot.slane %v550_v36, 5  ;;  %v6719_v30 = vld [vmem:[%s6141_s5 + $0x98] sm:$0x1]  ;;  %v1966_v58 = vshll.u32 %v5136_v24, 16  ;;  %v200_v59 = vld [vmem:[%s6141_s5 + $0xc] sm:$0xf]  ;;  %v2430_v21 = vsel %vm6313_vm6, %v2428_v20, %v2429_v6  ;;  %v3275_v11 = vsel %vm6152_vm2, %v6706_v63, %v6694_v46 }
  0x80   : > { %v5929_v60 = vld [vmem:[%s8533_s1 + $0xf8] sm:$0xff]  ;;  %v5575_v14 = vrot.slane %v6684_v45, 9  ;;  %v3918_v29 = vrot.slane %v6687_v37, 5  ;;  %v3255_v61 = vor.u32 %v3254_v54, %v6515_v28  ;;  %v3260_v62 = vrot.slane %v3258_v9, 5  ;;  %233 = vst.msk [vmem:[#allocation2 + $0x10] sm:$0xf] %vm230_vm4, %v200_v59 }
  0x81   : > { %v5882_v0 = vld [vmem:[%s8533_s1 + $0x80] sm:$0xff]  ;;  %v6734_v4 = vrot.slane %v1972_v52, 5  ;;  %v6736_v1 = vrot.slane %v1976_v53, 4  ;;  %v1982_v3 = vshll.u32 %v5138_v35, 16  ;;  %4343 = vmatpush.bf16.msrb.mxu1 %v5929_v60  ;;  %v5835_v28 = vld [vmem:[%s8533_s1 + $0x8] sm:$0xff]  ;;  %v1965_v42 = vrot.slane %v1963_v55, 4 }
  0x82   : > { %v198_v5 = vld [vmem:[%s6141_s5] sm:$0xf]  ;;  %v5822_v8 = vld [vmem:[#allocation2 + $0xa4] sm:$0xf]  ;;  %v3256_v10 = vrot.slane %v3255_v61, 4  ;;  %2854 = vmatpush.bf16.msra.mxu2 %v5882_v0  ;;  %v553_v19 = vsel %vm6152_vm2, %v6712_v16, %v6714_v56  ;;  %v1968_v13 = vrot.slane %v1966_v58, 5  ;;  %1429 = vmatpush.bf16.msra.mxu0 %v5835_v28  ;;  %v3919_v33 = vsel %vm6313_vm6, %v5575_v14, %v3918_v29 }
  0x83   : > { %231 = vst.msk [vmem:[#allocation2] sm:$0xf] %vm230_vm4, %v198_v5  ;;  %v4969_v18 = vld [vmem:[#allocation2 + $0xa8] sm:$0xf0]  ;;  %v5881_v38 = vld [vmem:[%s8533_s1 + $0x78] sm:$0xff]  ;;  %v3920_v48 = vrot.slane %v3918_v29, 4  ;;  %v1979_v36 = vor.u32 %v6736_v1, %v6734_v4 }
  0x84   : > { %2164 = vrot.lane.b32.xlu1 %v1961_v43, %s6060_s6  ;;  %2518 = vst.msk [vmem:[#allocation2 + $0xa4] sm:$0xf] %vm230_vm4, %v2427_v57  ;;  %v3921_v15 = vrot.slane %v6719_v30, 5  ;;  %v3261_v17 = vsel %vm6152_vm2, %v3256_v10, %v3260_v62  ;;  %v4972_v12 = vor.u32 %v5822_v8, %v4969_v18  ;;  %v5475_v22 = vld [vmem:[%s6141_s5 + $0x30] sm:$0xf]  ;;  %v6762_v31 = vrot.slane %v1982_v3, 5 }
  0x85   : > { %2162 = vrot.lane.b32.xlu0 %v1951_v50, %s6060_s6  ;;  %2519 = vst.msk [vmem:[#allocation2 + $0xac] sm:$0xf] %vm230_vm4, %v2430_v21  ;;  %v3287_v32 = vshrl.u32 %v5475_v22, 16  ;;  %v3290_v2 = vshll.u32 %v5475_v22, 16  ;;  %v290_v27 = vld [vmem:[%s6141_s5 + $0x6c] sm:$0xf]  ;;  %v1969_v47 = vor.u32 %v1968_v13, %v1965_v42 }
  0x86   : > { %3624 = vrot.lane.b32.xlu2 %v3261_v17, %s6060_s6  ;;  %5071 = vmatmul.msk.bf16.gmra.mxu1 %vm1374_vm7, %v4972_v12  ;;  %v6772_v39 = vld [vmem:[%s6141_s5 + $0x34] sm:$0xf]  ;;  %v531_v40 = vshrl.u32 %v290_v27, 16  ;;  %v534_v44 = vshll.u32 %v290_v27, 16  ;;  %v294_v26 = vld [vmem:[%s6141_s5 + $0x7c] sm:$0xf]  ;;  %v3922_v51 = vsel %vm6313_vm6, %v3920_v48, %v3921_v15 }
  0x87   : > { %v3289_v45 = vrot.slane %v3287_v32, 4  ;;  %v564_v37 = vshll.u32 %v294_v26, 16  ;;  %2855 = vmatpush.bf16.msra.mxu2 %v5881_v38  ;;  %v6777_v43 = vrot.slane %v3276_v34, 4  ;;  %v5834_v6 = vld [vmem:[%s8533_s1] sm:$0xff]  ;;  %v3292_v50 = vrot.slane %v3290_v2, 5  ;;  %v5880_v55 = vld [vmem:[%s8533_s1 + $0x70] sm:$0xff] }
  0x88   : > { %v703_v49 = vpop.permute.xlu2 %702  ;;  %v533_v20 = vrot.slane %v531_v40, 4  ;;  %v536_v52 = vrot.slane %v534_v44, 5  ;;  %v295_v53 = vld [vmem:[%s6141_s5 + $0x80] sm:$0x1]  ;;  %v568_v24 = vshrl.u32 %v294_v26, 16  ;;  %v3296_v63 = vshll.u32 %v6772_v39, 16  ;;  %1430 = vmatpush.bf16.msra.mxu0 %v5834_v6 }
  0x89   : > { %797 = vst.msk [vmem:[#allocation2 + $0x10] sm:$0xf] %vm794_vm8, %v703_v49  ;;  %v6787_v7 = vrot.slane %v564_v37, 5  ;;  %v201_v34 = vld [vmem:[%s6141_s5 + $0x10] sm:$0xf]  ;;  %v5988_v16 = vld [vmem:[%s8533_s1 + $0x58] sm:$0xff]  ;;  %v3293_v60 = vor.u32 %v3292_v50, %v3289_v45  ;;  %v3279_v21 = vor.u32 %v6777_v43, %v6694_v46 }
  0x8a   : > { %v537_v54 = vor.u32 %v536_v52, %v533_v20  ;;  %v570_v9 = vrot.slane %v568_v24, 4  ;;  %234 = vst.msk [vmem:[#allocation2 + $0x18] sm:$0xf] %vm230_vm4, %v201_v34  ;;  %v1980_v57 = vrot.slane %v1979_v36, 4  ;;  %v1970_v30 = vrot.slane %v1969_v47, 4  ;;  %v5989_v10 = vld [vmem:[%s8533_s1 + $0x50] sm:$0xff] }
  0x8b   : > { %v5866_v35 = vld [vmem:[#allocation2 + $0xa4] sm:$0xf]  ;;  %v5079_v59 = vld [vmem:[%s6141_s5 + $0x18] sm:$0xf]  ;;  %v574_v29 = vshll.u32 %v295_v53, 16  ;;  %2856 = vmatpush.bf16.msra.mxu2 %v5880_v55  ;;  %v6808_v1 = vrot.slane %v3296_v63, 5 }
  0x8c   : > { %3626 = vrot.lane.b32.xlu1 %v3275_v11, %s6060_s6  ;;  %1516 = vmatpush.bf16.msrb.mxu0 %v5988_v16  ;;  %v5329_v56 = vld [vmem:[#allocation2 + $0xa8] sm:$0xf0]  ;;  %4010 = vst.msk [vmem:[#allocation2 + $0xa4] sm:$0xf] %vm230_vm4, %v3919_v33  ;;  %v538_v14 = vrot.slane %v537_v54, 4  ;;  %v571_v5 = vor.u32 %v570_v9, %v6787_v7  ;;  %v1985_v46 = vsel %vm6152_vm2, %v1980_v57, %v6762_v31  ;;  %v3294_v38 = vrot.slane %v3293_v60, 4 }
  0x8d   : > { %736 = vrot.lane.b32.xlu0 %v553_v19, %s6060_s6  ;;  %v5332_v58 = vor.u32 %v5866_v35, %v5329_v56  ;;  %4011 = vst.msk [vmem:[#allocation2 + $0xac] sm:$0xf] %vm230_vm4, %v3922_v51  ;;  %v199_v61 = vld [vmem:[%s6141_s5 + $0x4] sm:$0xf]  ;;  %v861_v0 = vld [vmem:[%s6141_s5 + $0x88] sm:$0xf]  ;;  %v1975_v18 = vsel %vm6152_vm2, %v1970_v30, %v6734_v4 }
  0x8e   : > { %v860_v62 = vld [vmem:[%s6141_s5 + $0x84] sm:$0xe]  ;;  %v543_v3 = vsel %vm6152_vm2, %v538_v14, %v6644_v41  ;;  %232 = vst.msk [vmem:[#allocation2 + $0x8] sm:$0xf] %vm230_vm4, %v199_v61  ;;  %v862_v28 = vld [vmem:[%s6141_s5 + $0x8c] sm:$0x1]  ;;  %v3299_v51 = vsel %vm6152_vm2, %v3294_v38, %v6808_v1 }
  0x8f   : > { %5431 = vmatmul.msk.bf16.gmra.mxu3 %vm1374_vm7, %v5332_v58  ;;  %v4880_v8 = vrot.slane %v860_v62, 9  ;;  %734 = vrot.lane.b32.xlu2 %v543_v3, %s6060_s6  ;;  %v1005_v42 = vrot.slane %v861_v0, 5  ;;  %v1008_v41 = vrot.slane %v862_v28, 5  ;;  %v5190_v11 = vld [vmem:[%s6141_s5 + $0x90] sm:$0xe]  ;;  %v6832_v17 = vrot.slane %v574_v29, 5 }
  0x90   : > { %1517 = vmatpush.bf16.msrb.mxu0 %v5989_v10  ;;  %v5191_v19 = vld [vmem:[%s6141_s5 + $0x94] sm:$0xf]  ;;  %v6828_v13 = vld [vmem:[#allocation2 + $0x10] sm:$0xf]  ;;  %v5192_v48 = vld [vmem:[%s6141_s5 + $0x98] sm:$0x1]  ;;  %v705_v12 = vpop.permute.xlu2 %704 }
  0x91   : > { %v2433_v15 = vrot.slane %v5191_v19, 5  ;;  %1668 = vst.msk [vmem:[#allocation2 + $0x10] sm:$0xf] %vm230_vm4, %v5079_v59  ;;  %v1006_v22 = vsel %vm6313_vm6, %v4880_v8, %v1005_v42  ;;  %v1007_v31 = vrot.slane %v1005_v42, 4  ;;  %v6836_v32 = vrot.slane %v3279_v21, 4  ;;  %v5990_v33 = vld [vmem:[%s8533_s1 + $0x48] sm:$0xff] }
  0x92   : > { %v572_v4 = vrot.slane %v571_v5, 4  ;;  %798 = vst.msk [vmem:[#allocation2 + $0x18] sm:$0xf] %vm794_vm8, %v705_v12  ;;  %v5216_v2 = vrot.slane %v5190_v11, 9  ;;  %v6841_v27 = vld [vmem:[%s6141_s5 + $0xa0] sm:$0xf] }
  0x93   : > { %v1009_v36 = vsel %vm6313_vm6, %v1007_v31, %v1008_v41  ;;  %1092 = vst.msk [vmem:[#allocation2 + $0xb4] sm:$0xf] %vm230_vm4, %v1006_v22  ;;  %v2436_v40 = vrot.slane %v5192_v48, 5  ;;  %v6851_v44 = vld [vmem:[%s6141_s5 + $0x9c] sm:$0xe]  ;;  %v5879_v47 = vld [vmem:[%s8533_s1 + $0x68] sm:$0xff] }
  0x94   : > { %2168 = vrot.lane.b32.xlu1 %v1985_v46, %s6060_s6  ;;  %1518 = vmatpush.bf16.msrb.mxu0 %v5990_v33  ;;  %v6854_v26 = vld [vmem:[%s6141_s5 + $0xa4] sm:$0x1]  ;;  %1093 = vst.msk [vmem:[#allocation2 + $0xbc] sm:$0xf] %vm230_vm4, %v1009_v36  ;;  %v2435_v37 = vrot.slane %v2433_v15, 4  ;;  %v5928_v6 = vld [vmem:[%s8533_s1 + $0xf0] sm:$0xff]  ;;  %v577_v63 = vsel %vm6152_vm2, %v572_v4, %v6832_v17  ;;  %v2434_v35 = vsel %vm6313_vm6, %v5216_v2, %v2433_v15 }
  0x95   : > { %2166 = vrot.lane.b32.xlu0 %v1975_v18, %s6060_s6  ;;  %v5140_v43 = vld [vmem:[%s6141_s5 + $0x88] sm:$0xf]  ;;  %v3925_v50 = vrot.slane %v6841_v27, 5  ;;  %v5141_v20 = vld [vmem:[%s6141_s5 + $0x8c] sm:$0x1]  ;;  %2857 = vmatpush.bf16.msra.mxu2 %v5879_v47  ;;  %v5878_v24 = vld [vmem:[%s8533_s1 + $0x60] sm:$0xff] }
  0x96   : > { %v6859_v45 = vpop.permute.xlu1 %2130  ;;  %v1996_v52 = vshll.u32 %v5140_v43, 16  ;;  %v2000_v53 = vshrl.u32 %v5140_v43, 16  ;;  %v5080_v34 = vld [vmem:[%s6141_s5 + $0x1c] sm:$0xf]  ;;  %v5474_v54 = vld [vmem:[%s6141_s5 + $0x2c] sm:$0x1]  ;;  %4344 = vmatpush.bf16.msrb.mxu1 %v5928_v6  ;;  %v2437_v62 = vsel %vm6313_vm6, %v2435_v37, %v2436_v40 }
  0x97   : > { %v699_v49 = vpop.permute.xlu0 %698  ;;  %v5991_v9 = vld [vmem:[%s8533_s1 + $0x40] sm:$0xff]  ;;  %v2006_v56 = vshll.u32 %v5141_v20, 16  ;;  %v3282_v57 = vshll.u32 %v5474_v54, 16  ;;  %v5576_v58 = vrot.slane %v6851_v44, 9  ;;  %v3928_v59 = vrot.slane %v6854_v26, 5  ;;  %v5992_v46 = vld [vmem:[%s8533_s1 + $0xb8] sm:$0xff] }
  0x98   : > { %795 = vst.msk [vmem:[#allocation2] sm:$0xf] %vm794_vm8, %v699_v49  ;;  %1519 = vmatpush.bf16.msrb.mxu0 %v5991_v9  ;;  %v6885_v55 = vrot.slane %v1996_v52, 5  ;;  %v2002_v16 = vrot.slane %v2000_v53, 4  ;;  %v5139_v30 = vld [vmem:[%s6141_s5 + $0x84] sm:$0xf]  ;;  %v707_v43 = vpop.permute.xlu2 %706 }
  0x99   : > { %v1987_v60 = vshrl.u32 %v5139_v30, 16  ;;  %v1990_v14 = vshll.u32 %v5139_v30, 16  ;;  %v5077_v29 = vld [vmem:[%s6141_s5 + $0xc] sm:$0xf]  ;;  %v6891_v61 = vld [vmem:[#allocation2 + $0x14] sm:$0xf0]  ;;  %2858 = vmatpush.bf16.msra.mxu2 %v5878_v24 }
  0x9a   : > { %v3927_v0 = vrot.slane %v3925_v50, 4  ;;  %v2003_v21 = vor.u32 %v2002_v16, %v6885_v55  ;;  %v3284_v3 = vrot.slane %v3282_v57, 5  ;;  %v202_v5 = vld [vmem:[%s6141_s5 + $0x18] sm:$0xf]  ;;  %1669 = vst.msk [vmem:[#allocation2 + $0x18] sm:$0xf] %vm230_vm4, %v5080_v34 }
  0x9b   : > { %v5824_v28 = vld [vmem:[#allocation2 + $0xb4] sm:$0xf]  ;;  %v1989_v8 = vrot.slane %v1987_v60, 4  ;;  %v1992_v10 = vrot.slane %v1990_v14, 5  ;;  %v4977_v42 = vld [vmem:[#allocation2 + $0xb8] sm:$0xf0] }
  0x9c   : > { %3630 = vrot.lane.b32.xlu1 %v3299_v51, %s6060_s6  ;;  %2520 = vst.msk [vmem:[#allocation2 + $0xb4] sm:$0xf] %vm230_vm4, %v2434_v35  ;;  %v2004_v41 = vrot.slane %v2003_v21, 4  ;;  %v2008_v11 = vrot.slane %v2006_v56, 5  ;;  %v3285_v19 = vsel %vm6152_vm2, %v6836_v32, %v3284_v3  ;;  %v4980_v48 = vor.u32 %v5824_v28, %v4977_v42  ;;  %v5478_v15 = vld [vmem:[%s6141_s5 + $0x3c] sm:$0xf] }
  0x9d   : > { %2944 = vmatpush.bf16.msrb.mxu2 %v5992_v46  ;;  %740 = vrot.lane.b32.xlu0 %v577_v63, %s6060_s6  ;;  %2521 = vst.msk [vmem:[#allocation2 + $0xbc] sm:$0xf] %vm230_vm4, %v2437_v62  ;;  %v1993_v38 = vor.u32 %v1992_v10, %v1989_v8  ;;  %v6915_v17 = vld [vmem:[%s6141_s5 + $0x40] sm:$0xf]  ;;  %v3311_v31 = vshrl.u32 %v5478_v15, 16  ;;  %v3314_v4 = vshll.u32 %v5478_v15, 16  ;;  %v3929_v49 = vsel %vm6313_vm6, %v3927_v0, %v3928_v59 }
  0x9e   : > { %v6909_v18 = vpop.permute.xlu1 %2132  ;;  %3628 = vrot.lane.b32.xlu2 %v3285_v19, %s6060_s6  ;;  %235 = vst.msk [vmem:[#allocation2 + $0x20] sm:$0xf] %vm230_vm4, %v202_v5  ;;  %v3300_v32 = vshrl.u32 %v6772_v39, 16  ;;  %5072 = vmatmul.msk.bf16.gmra.mxu1 %vm1374_vm7, %v4980_v48  ;;  %v3320_v33 = vshll.u32 %v6915_v17, 16  ;;  %v5993_v36 = vld [vmem:[%s8533_s1 + $0xb0] sm:$0xff]  ;;  %v3926_v39 = vsel %vm6313_vm6, %v5576_v58, %v3925_v50  ;;  %v2009_v40 = vsel %vm6152_vm2, %v2004_v41, %v2008_v11  ;;  %v5994_v35 = vld [vmem:[%s8533_s1 + $0xa8] sm:$0xff] }
  0x9f   : > { %v6917_v12 = vld [vmem:[#allocation2] sm:$0xf]  ;;  %v701_v22 = vpop.permute.xlu0 %700  ;;  %v1994_v2 = vrot.slane %v1993_v38, 4  ;;  %v3313_v44 = vrot.slane %v3311_v31, 4  ;;  %v3316_v26 = vrot.slane %v3314_v4, 5  ;;  %v5932_v5 = vld [vmem:[%s8533_s1 + $0x110] sm:$0xff] }
  0xa0   : > { %1666 = vst.msk [vmem:[#allocation2] sm:$0xf] %vm230_vm4, %v5077_v29  ;;  %v293_v47 = vld [vmem:[%s6141_s5 + $0x78] sm:$0xf]  ;;  %v297_v20 = vld [vmem:[%s6141_s5 + $0x88] sm:$0xf]  ;;  %4437 = vmatpush.bf16.msrb.mxu3 %v5932_v5 }
  0xa1   : > { %2945 = vmatpush.bf16.msrb.mxu2 %v5993_v36  ;;  %2226 = vst.msk [vmem:[#allocation2] sm:$0xf] %vm794_vm8, %v6859_v45  ;;  %v1999_v37 = vsel %vm6152_vm2, %v1994_v2, %v6885_v55  ;;  %v6940_v45 = vrot.slane %v3320_v33, 5  ;;  %v555_v27 = vshrl.u32 %v293_v47, 16  ;;  %v558_v6 = vshll.u32 %v293_v47, 16  ;;  %v5995_v28 = vld [vmem:[%s8533_s1 + $0xa0] sm:$0xff] }
  0xa2   : > { %796 = vst.msk [vmem:[#allocation2 + $0x8] sm:$0xf] %vm794_vm8, %v701_v22  ;;  %v3317_v50 = vor.u32 %v3316_v26, %v3313_v44  ;;  %v298_v52 = vld [vmem:[%s6141_s5 + $0x8c] sm:$0x1]  ;;  %v588_v63 = vshll.u32 %v297_v20, 16  ;;  %v592_v34 = vshrl.u32 %v297_v20, 16 }
  0xa3   : > { %799 = vst.msk [vmem:[#allocation2 + $0x20] sm:$0xf] %vm794_vm8, %v707_v43  ;;  %v5868_v53 = vld [vmem:[#allocation2 + $0xb4] sm:$0xf]  ;;  %v557_v24 = vrot.slane %v555_v27, 4  ;;  %v560_v51 = vrot.slane %v558_v6, 5 }
  0xa4   : > { %2172 = vrot.lane.b32.xlu1 %v2009_v40, %s6060_s6  ;;  %v5337_v54 = vld [vmem:[#allocation2 + $0xb8] sm:$0xf0]  ;;  %4012 = vst.msk [vmem:[#allocation2 + $0xb4] sm:$0xf] %vm230_vm4, %v3926_v39  ;;  %v3318_v9 = vrot.slane %v3317_v50, 4  ;;  %v598_v55 = vshll.u32 %v298_v52, 16 }
  0xa5   : > { %2946 = vmatpush.bf16.msrb.mxu2 %v5994_v35  ;;  %2170 = vrot.lane.b32.xlu0 %v1999_v37, %s6060_s6  ;;  %v5078_v16 = vld [vmem:[%s6141_s5 + $0x10] sm:$0xf]  ;;  %v5340_v56 = vor.u32 %v5868_v53, %v5337_v54  ;;  %4013 = vst.msk [vmem:[#allocation2 + $0xbc] sm:$0xf] %vm230_vm4, %v3929_v49  ;;  %v561_v30 = vor.u32 %v560_v51, %v557_v24  ;;  %v6955_v58 = vrot.slane %v588_v63, 5  ;;  %v594_v59 = vrot.slane %v592_v34, 4 }
  0xa6   : > { %v2137_v57 = vpop.permute.xlu1 %2136  ;;  %v5081_v60 = vld [vmem:[%s6141_s5 + $0x24] sm:$0xf]  ;;  %v203_v29 = vld [vmem:[%s6141_s5 + $0x1c] sm:$0xf]  ;;  %v600_v21 = vrot.slane %v598_v55, 5  ;;  %v3302_v3 = vrot.slane %v3300_v32, 4  ;;  %v3323_v10 = vsel %vm6152_vm2, %v3318_v9, %v6940_v45  ;;  %v2141_v55 = vpop.permute.xlu2 %2140 }
  0xa7   : > { %2229 = vst.msk [vmem:[#allocation2 + $0x18] sm:$0xf] %vm794_vm8, %v2137_v57  ;;  %v2135_v14 = vpop.permute.xlu0 %2134  ;;  %5432 = vmatmul.msk.bf16.gmra.mxu3 %vm1374_vm7, %v5340_v56  ;;  %v562_v62 = vrot.slane %v561_v30, 4  ;;  %v595_v0 = vor.u32 %v594_v59, %v6955_v58  ;;  %v5437_v46 = vld [vmem:[%s6141_s5 + $0x18] sm:$0xf]  ;;  %v5927_v38 = vld [vmem:[%s8533_s1 + $0xe8] sm:$0xff] }
  0xa8   : > { %2228 = vst.msk [vmem:[#allocation2 + $0x10] sm:$0xf] %vm794_vm8, %v2135_v14  ;;  %v5247_v48 = vld [vmem:[#allocation2] sm:$0xf]  ;;  %v863_v15 = vld [vmem:[%s6141_s5 + $0x90] sm:$0xe]  ;;  %v3303_v31 = vor.u32 %v3302_v3, %v6808_v1  ;;  %4345 = vmatpush.bf16.msrb.mxu1 %v5927_v38 }
  0xa9   : > { %2947 = vmatpush.bf16.msrb.mxu2 %v5995_v28  ;;  %v5803_v8 = vld [vmem:[#allocation2 + $0x4] sm:$0xf0]  ;;  %236 = vst.msk [vmem:[#allocation2 + $0x28] sm:$0xf] %vm230_vm4, %v203_v29  ;;  %v567_v11 = vsel %vm6152_vm2, %v562_v62, %v6787_v7  ;;  %v596_v19 = vrot.slane %v595_v0, 4 }
  0xaa   : > { %1667 = vst.msk [vmem:[#allocation2 + $0x8] sm:$0xf] %vm230_vm4, %v5078_v16  ;;  %v6975_v42 = vld [vmem:[#allocation2 + $0x20] sm:$0xf]  ;;  %v4888_v41 = vor.u32 %v5803_v8, %v6917_v12  ;;  %738 = vrot.lane.b32.xlu2 %v567_v11, %s6060_s6  ;;  %v864_v12 = vld [vmem:[%s6141_s5 + $0x94] sm:$0xf] }
  0xab   : > { %2227 = vst.msk [vmem:[#allocation2 + $0x8] sm:$0xf] %vm794_vm8, %v6909_v18  ;;  %v601_v7 = vsel %vm6152_vm2, %v596_v19, %v600_v21  ;;  %v865_v22 = vld [vmem:[%s6141_s5 + $0x98] sm:$0x1]  ;;  %v4881_v18 = vrot.slane %v863_v15, 9  ;;  %v1012_v4 = vrot.slane %v864_v12, 5  ;;  %v4896_v15 = vor.u32 %v6891_v61, %v6828_v13 }
  0xac   : > { %1670 = vst.msk [vmem:[#allocation2 + $0x20] sm:$0xf] %vm230_vm4, %v5081_v60  ;;  %1431 = vmatmul.bf16.vlgmr.msra.gmra.mxu0 %v4888_v41  ;;  %3634 = vrot.lane.b32.xlu1 %v3323_v10, %s6060_s6  ;;  %v1015_v32 = vrot.slane %v865_v22, 5  ;;  %v5193_v33 = vld [vmem:[%s6141_s5 + $0x9c] sm:$0xe]  ;;  %v3304_v37 = vrot.slane %v3303_v31, 4 }
  0xad   : > { %744 = vrot.lane.b32.xlu0 %v601_v7, %s6060_s6  ;;  %3158 = vst.msk [vmem:[#allocation2] sm:$0xf] %vm230_vm4, %v5437_v46  ;;  %v5194_v36 = vld [vmem:[%s6141_s5 + $0xa0] sm:$0xf]  ;;  %v5195_v39 = vld [vmem:[%s6141_s5 + $0xa4] sm:$0x1]  ;;  %v1013_v1 = vsel %vm6313_vm6, %v4881_v18, %v1012_v4 }
  0xae   : > { %v2139_v2 = vpop.permute.xlu1 %2138  ;;  %v1014_v44 = vrot.slane %v1012_v4, 4  ;;  %v2440_v26 = vrot.slane %v5194_v36, 5  ;;  %v5438_v47 = vld [vmem:[%s6141_s5 + $0x1c] sm:$0xf]  ;;  %1094 = vst.msk [vmem:[#allocation2 + $0xc4] sm:$0xf] %vm230_vm4, %v1013_v1 }
  0xaf   : > { %2230 = vst.msk [vmem:[#allocation2 + $0x20] sm:$0xf] %vm794_vm8, %v2139_v2  ;;  %v709_v40 = vpop.permute.xlu0 %708  ;;  %v5217_v27 = vrot.slane %v5193_v33, 9  ;;  %v2443_v49 = vrot.slane %v5195_v39, 5  ;;  %v7010_v20 = vld [vmem:[%s6141_s5 + $0xa8] sm:$0xe] }
  0xb0   : > { %800 = vst.msk [vmem:[#allocation2 + $0x28] sm:$0xf] %vm794_vm8, %v709_v40  ;;  %v1016_v43 = vsel %vm6313_vm6, %v1014_v44, %v1015_v32  ;;  %v2442_v6 = vrot.slane %v2440_v26, 4  ;;  %v7013_v52 = vld [vmem:[%s6141_s5 + $0xac] sm:$0xf]  ;;  %v5577_v21 = vrot.slane %v7010_v20, 9 }
  0xb1   : > { %1095 = vst.msk [vmem:[#allocation2 + $0xcc] sm:$0xf] %vm230_vm4, %v1016_v43  ;;  %v5082_v53 = vld [vmem:[%s6141_s5 + $0x28] sm:$0xf]  ;;  %v7018_v51 = vld [vmem:[%s6141_s5 + $0xb0] sm:$0x1]  ;;  %v2441_v16 = vsel %vm6313_vm6, %v5217_v27, %v2440_v26 }
  0xb2   : > { %v5847_v50 = vld [vmem:[#allocation2 + $0x4] sm:$0xf0]  ;;  %v5143_v63 = vld [vmem:[%s6141_s5 + $0x94] sm:$0xf]  ;;  %v5144_v34 = vld [vmem:[%s6141_s5 + $0x98] sm:$0x1]  ;;  %v2444_v10 = vsel %vm6313_vm6, %v2442_v6, %v2443_v49  ;;  %v2143_v6 = vpop.permute.xlu2 %2142 }
  0xb3   : > { %v5248_v24 = vor.u32 %v5847_v50, %v5247_v48  ;;  %3159 = vst.msk [vmem:[#allocation2 + $0x8] sm:$0xf] %vm230_vm4, %v5438_v47  ;;  %v2020_v35 = vshll.u32 %v5143_v63, 16  ;;  %v2024_v54 = vshrl.u32 %v5143_v63, 16  ;;  %v5477_v9 = vld [vmem:[%s6141_s5 + $0x38] sm:$0x1] }
  0xb4   : > { %v3932_v56 = vrot.slane %v7013_v52, 5  ;;  %v2030_v57 = vshll.u32 %v5144_v34, 16  ;;  %v3306_v30 = vshll.u32 %v5477_v9, 16  ;;  %v5142_v59 = vld [vmem:[%s6141_s5 + $0x90] sm:$0xf]  ;;  %v3935_v3 = vrot.slane %v7018_v51, 5 }
  0xb5   : > { %2859 = vmatmul.bf16.vlgmr.msra.gmra.mxu2 %v5248_v24  ;;  %v2022_v60 = vrot.slane %v2020_v35, 5  ;;  %v2026_v14 = vrot.slane %v2024_v54, 4  ;;  %v2011_v29 = vshrl.u32 %v5142_v59, 16  ;;  %v2014_v62 = vshll.u32 %v5142_v59, 16  ;;  %v5826_v8 = vld [vmem:[#allocation2 + $0xc4] sm:$0xf] }
  0xb6   : > { %v2032_v5 = vrot.slane %v2030_v57, 5  ;;  %v3308_v28 = vrot.slane %v3306_v30, 5  ;;  %v205_v48 = vld [vmem:[%s6141_s5 + $0x28] sm:$0xf]  ;;  %2522 = vst.msk [vmem:[#allocation2 + $0xc4] sm:$0xf] %vm230_vm4, %v2441_v16  ;;  %v713_v4 = vpop.permute.xlu1 %712 }
  0xb7   : > { %v7027_v0 = vld [vmem:[#allocation2 + $0x24] sm:$0xf0]  ;;  %v2027_v46 = vor.u32 %v2026_v14, %v2022_v60  ;;  %v2013_v41 = vrot.slane %v2011_v29, 4  ;;  %v2016_v11 = vrot.slane %v2014_v62, 5  ;;  %v3934_v7 = vrot.slane %v3932_v56, 4  ;;  %v711_v26 = vpop.permute.xlu0 %710 }
  0xb8   : > { %1671 = vst.msk [vmem:[#allocation2 + $0x28] sm:$0xf] %vm230_vm4, %v5082_v53  ;;  %v4985_v19 = vld [vmem:[#allocation2 + $0xc8] sm:$0xf0]  ;;  %v3309_v38 = vsel %vm6152_vm2, %v3304_v37, %v3308_v28  ;;  %v204_v31 = vld [vmem:[%s6141_s5 + $0x24] sm:$0xf] }
  0xb9   : > { %2231 = vst.msk [vmem:[#allocation2 + $0x28] sm:$0xf] %vm794_vm8, %v2141_v55  ;;  %v2028_v12 = vrot.slane %v2027_v46, 4  ;;  %3632 = vrot.lane.b32.xlu2 %v3309_v38, %s6060_s6  ;;  %v2017_v22 = vor.u32 %v2016_v11, %v2013_v41  ;;  %v4988_v18 = vor.u32 %v5826_v8, %v4985_v19  ;;  %v5481_v32 = vld [vmem:[%s6141_s5 + $0x48] sm:$0xf]  ;;  %v3324_v39 = vshrl.u32 %v6915_v17, 16 }
  0xba   : > { %2523 = vst.msk [vmem:[#allocation2 + $0xcc] sm:$0xf] %vm230_vm4, %v2444_v10  ;;  %v7046_v2 = vld [vmem:[%s6141_s5 + $0x4c] sm:$0xf]  ;;  %v3335_v61 = vshrl.u32 %v5481_v32, 16  ;;  %v3338_v36 = vshll.u32 %v5481_v32, 16  ;;  %v3933_v17 = vsel %vm6313_vm6, %v5577_v21, %v3932_v56  ;;  %v3936_v27 = vsel %vm6313_vm6, %v3934_v7, %v3935_v3 }
  0xbb   : > { %v2033_v33 = vsel %vm6152_vm2, %v2028_v12, %v2032_v5  ;;  %v2018_v13 = vrot.slane %v2017_v22, 4  ;;  %238 = vst.msk [vmem:[#allocation2 + $0x38] sm:$0xf] %vm230_vm4, %v205_v48  ;;  %5073 = vmatmul.msk.bf16.gmra.mxu1 %vm1374_vm7, %v4988_v18  ;;  %v3344_v40 = vshll.u32 %v7046_v2, 16  ;;  %v296_v1 = vld [vmem:[%s6141_s5 + $0x84] sm:$0xf]  ;;  %v4904_v12 = vor.u32 %v7027_v0, %v6975_v42  ;;  %v717_v18 = vpop.permute.xlu2 %716 }
  0xbc   : > { %1436 = vmatmul.bf16.gmra.mxu0 %v4896_v15  ;;  %2176 = vrot.lane.b32.xlu1 %v2033_v33, %s6060_s6  ;;  %802 = vst.msk [vmem:[#allocation2 + $0x38] sm:$0xf] %vm794_vm8, %v713_v4  ;;  %v3337_v47 = vrot.slane %v3335_v61, 4  ;;  %v3340_v37 = vrot.slane %v3338_v36, 5  ;;  %v579_v43 = vshrl.u32 %v296_v1, 16  ;;  %v582_v50 = vshll.u32 %v296_v1, 16 }
  0xbd   : > { %v2023_v44 = vsel %vm6152_vm2, %v2018_v13, %v2022_v60  ;;  %237 = vst.msk [vmem:[#allocation2 + $0x30] sm:$0xf] %vm230_vm4, %v204_v31  ;;  %v7066_v49 = vrot.slane %v3344_v40, 5  ;;  %v300_v20 = vld [vmem:[%s6141_s5 + $0x94] sm:$0xf]  ;;  %v3326_v10 = vrot.slane %v3324_v39, 4 }
  0xbe   : > { %2174 = vrot.lane.b32.xlu0 %v2023_v44, %s6060_s6  ;;  %801 = vst.msk [vmem:[#allocation2 + $0x30] sm:$0xf] %vm794_vm8, %v711_v26  ;;  %v3341_v52 = vor.u32 %v3340_v37, %v3337_v47  ;;  %v581_v53 = vrot.slane %v579_v43, 4  ;;  %v301_v24 = vld [vmem:[%s6141_s5 + $0x98] sm:$0x1]  ;;  %v612_v51 = vshll.u32 %v300_v20, 16  ;;  %v715_v28 = vpop.permute.xlu1 %714 }
  0xbf   : > { %v616_v63 = vshrl.u32 %v300_v20, 16  ;;  %v5870_v34 = vld [vmem:[#allocation2 + $0xc4] sm:$0xf]  ;;  %v5084_v35 = vld [vmem:[%s6141_s5 + $0x34] sm:$0xf]  ;;  %v584_v54 = vrot.slane %v582_v50, 5  ;;  %v2145_v32 = vpop.permute.xlu0 %2144  ;;  %v3327_v13 = vor.u32 %v3326_v10, %v6940_v45 }
  0xc0   : > { %v622_v9 = vshll.u32 %v301_v24, 16  ;;  %4014 = vst.msk [vmem:[#allocation2 + $0xc4] sm:$0xf] %vm230_vm4, %v3933_v17  ;;  %v5083_v16 = vld [vmem:[%s6141_s5 + $0x30] sm:$0xf]  ;;  %v3342_v56 = vrot.slane %v3341_v52, 4 }
  0xc1   : > { %v5345_v55 = vld [vmem:[#allocation2 + $0xc8] sm:$0xf0]  ;;  %v7073_v57 = vrot.slane %v612_v51, 5  ;;  %v585_v59 = vor.u32 %v584_v54, %v581_v53  ;;  %v618_v60 = vrot.slane %v616_v63, 4  ;;  %v206_v14 = vld [vmem:[%s6141_s5 + $0x30] sm:$0xf] }
  0xc2   : > { %v5348_v30 = vor.u32 %v5870_v34, %v5345_v55  ;;  %4015 = vst.msk [vmem:[#allocation2 + $0xcc] sm:$0xf] %vm230_vm4, %v3936_v27  ;;  %v3347_v62 = vsel %vm6152_vm2, %v3342_v56, %v7066_v49  ;;  %v624_v21 = vrot.slane %v622_v9, 5  ;;  %v207_v8 = vld [vmem:[%s6141_s5 + $0x34] sm:$0xf]  ;;  %v3328_v17 = vrot.slane %v3327_v13, 4 }
  0xc3   : > { %v7077_v29 = vld [vmem:[#allocation2 + $0x34] sm:$0xf0]  ;;  %239 = vst.msk [vmem:[#allocation2 + $0x40] sm:$0xf] %vm230_vm4, %v206_v14  ;;  %v586_v3 = vrot.slane %v585_v59, 4  ;;  %v619_v5 = vor.u32 %v618_v60, %v7073_v57  ;;  %v5926_v52 = vld [vmem:[%s8533_s1 + $0xe0] sm:$0xff] }
  0xc4   : > { %5433 = vmatmul.msk.bf16.gmra.mxu3 %vm1374_vm7, %v5348_v30  ;;  %1673 = vst.msk [vmem:[#allocation2 + $0x38] sm:$0xf] %vm230_vm4, %v5084_v35  ;;  %3638 = vrot.lane.b32.xlu1 %v3347_v62, %s6060_s6  ;;  %v5255_v41 = vld [vmem:[#allocation2 + $0x10] sm:$0xf]  ;;  %v5849_v38 = vld [vmem:[#allocation2 + $0x14] sm:$0xf0] }
  0xc5   : > { %v7088_v46 = vld [vmem:[#allocation2 + $0x30] sm:$0xf]  ;;  %803 = vst.msk [vmem:[#allocation2 + $0x40] sm:$0xf] %vm794_vm8, %v715_v28  ;;  %v591_v11 = vsel %vm6152_vm2, %v586_v3, %v6955_v58  ;;  %v620_v19 = vrot.slane %v619_v5, 4  ;;  %v5256_v48 = vor.u32 %v5849_v38, %v5255_v41  ;;  %4346 = vmatpush.bf16.msrb.mxu1 %v5926_v52  ;;  %v3348_v13 = vshrl.u32 %v7046_v2, 16 }
  0xc6   : > { %1672 = vst.msk [vmem:[#allocation2 + $0x30] sm:$0xf] %vm230_vm4, %v5083_v16  ;;  %742 = vrot.lane.b32.xlu2 %v591_v11, %s6060_s6  ;;  %v5439_v15 = vld [vmem:[%s6141_s5 + $0x24] sm:$0xf]  ;;  %v5440_v7 = vld [vmem:[%s6141_s5 + $0x28] sm:$0xf]  ;;  %v2149_v59 = vpop.permute.xlu1 %2148 }
  0xc7   : > { %2232 = vst.msk [vmem:[#allocation2 + $0x30] sm:$0xf] %vm794_vm8, %v2143_v6  ;;  %v625_v22 = vsel %vm6152_vm2, %v620_v19, %v624_v21  ;;  %v5085_v31 = vld [vmem:[%s6141_s5 + $0x3c] sm:$0xf]  ;;  %v867_v4 = vld [vmem:[%s6141_s5 + $0xa0] sm:$0xf]  ;;  %2864 = vmatmul.bf16.gmra.mxu2 %v5256_v48 }
  0xc8   : > { %240 = vst.msk [vmem:[#allocation2 + $0x48] sm:$0xf] %vm230_vm4, %v207_v8  ;;  %v866_v58 = vld [vmem:[%s6141_s5 + $0x9c] sm:$0xe]  ;;  %748 = vrot.lane.b32.xlu0 %v625_v22, %s6060_s6  ;;  %v868_v42 = vld [vmem:[%s6141_s5 + $0xa4] sm:$0x1] }
  0xc9   : > { %804 = vst.msk [vmem:[#allocation2 + $0x48] sm:$0xf] %vm794_vm8, %v717_v18  ;;  %v4882_v0 = vrot.slane %v866_v58, 9  ;;  %v1019_v33 = vrot.slane %v867_v4, 5  ;;  %v1022_v61 = vrot.slane %v868_v42, 5  ;;  %v2147_v42 = vpop.permute.xlu0 %2146 }
  0xca   : > { %2233 = vst.msk [vmem:[#allocation2 + $0x38] sm:$0xf] %vm794_vm8, %v2145_v32  ;;  %v5196_v36 = vld [vmem:[%s6141_s5 + $0xa8] sm:$0xe]  ;;  %v5197_v1 = vld [vmem:[%s6141_s5 + $0xac] sm:$0xf]  ;;  %v719_v32 = vpop.permute.xlu2 %718 }
  0xcb   : > { %3160 = vst.msk [vmem:[#allocation2 + $0x10] sm:$0xf] %vm230_vm4, %v5439_v15  ;;  %v1020_v39 = vsel %vm6313_vm6, %v4882_v0, %v1019_v33  ;;  %v1021_v40 = vrot.slane %v1019_v33, 4  ;;  %v5086_v26 = vld [vmem:[%s6141_s5 + $0x40] sm:$0xf]  ;;  %v5218_v37 = vrot.slane %v5196_v36, 9 }
  0xcc   : > { %1441 = vmatmul.bf16.gmra.mxu0 %v4904_v12  ;;  %v7117_v44 = vld [vmem:[#allocation2 + $0x40] sm:$0xf]  ;;  %3161 = vst.msk [vmem:[#allocation2 + $0x18] sm:$0xf] %vm230_vm4, %v5440_v7  ;;  %v5198_v45 = vld [vmem:[%s6141_s5 + $0xb0] sm:$0x1] }
  0xcd   : > { %1674 = vst.msk [vmem:[#allocation2 + $0x40] sm:$0xf] %vm230_vm4, %v5085_v31  ;;  %v1023_v47 = vsel %vm6313_vm6, %v1021_v40, %v1022_v61  ;;  %v2447_v43 = vrot.slane %v5197_v1, 5  ;;  %v5556_v27 = vld [vmem:[%s6141_s5 + $0xb4] sm:$0xe]  ;;  %v2450_v50 = vrot.slane %v5198_v45, 5 }
  0xce   : > { %1096 = vst.msk [vmem:[#allocation2 + $0xd4] sm:$0xf] %vm230_vm4, %v1020_v39  ;;  %v5557_v6 = vld [vmem:[%s6141_s5 + $0xb8] sm:$0xf]  ;;  %v5558_v20 = vld [vmem:[%s6141_s5 + $0xbc] sm:$0x1] }
  0xcf   : > { %1097 = vst.msk [vmem:[#allocation2 + $0xdc] sm:$0xf] %vm230_vm4, %v1023_v47  ;;  %v2449_v24 = vrot.slane %v2447_v43, 4  ;;  %v3939_v51 = vrot.slane %v5557_v6, 5  ;;  %v5146_v63 = vld [vmem:[%s6141_s5 + $0xa0] sm:$0xf]  ;;  %v2448_v9 = vsel %vm6313_vm6, %v5218_v37, %v2447_v43 }
  0xd0   : > { %v7133_v53 = vld [vmem:[#allocation2 + $0x44] sm:$0xf0]  ;;  %v5578_v34 = vrot.slane %v5556_v27, 9  ;;  %v5147_v35 = vld [vmem:[%s6141_s5 + $0xa4] sm:$0x1]  ;;  %v2044_v54 = vshll.u32 %v5146_v63, 16 }
  0xd1   : > { %1675 = vst.msk [vmem:[#allocation2 + $0x48] sm:$0xf] %vm230_vm4, %v5086_v26  ;;  %v2048_v55 = vshrl.u32 %v5146_v63, 16  ;;  %v2054_v16 = vshll.u32 %v5147_v35, 16  ;;  %v5480_v56 = vld [vmem:[%s6141_s5 + $0x44] sm:$0x1]  ;;  %v2451_v3 = vsel %vm6313_vm6, %v2449_v24, %v2450_v50 }
  0xd2   : > { %v5145_v30 = vld [vmem:[%s6141_s5 + $0x9c] sm:$0xf]  ;;  %v3942_v60 = vrot.slane %v5558_v20, 5  ;;  %v2046_v14 = vrot.slane %v2044_v54, 5  ;;  %v3330_v62 = vshll.u32 %v5480_v56, 16  ;;  %v3941_v5 = vrot.slane %v3939_v51, 4 }
  0xd3   : > { %v2035_v21 = vshrl.u32 %v5145_v30, 16  ;;  %2235 = vst.msk [vmem:[#allocation2 + $0x48] sm:$0xf] %vm794_vm8, %v2149_v59  ;;  %v2050_v28 = vrot.slane %v2048_v55, 4  ;;  %v2038_v8 = vshll.u32 %v5145_v30, 16  ;;  %v2056_v15 = vrot.slane %v2054_v16, 5 }
  0xd4   : > { %v3332_v41 = vrot.slane %v3330_v62, 5  ;;  %v208_v19 = vld [vmem:[%s6141_s5 + $0x3c] sm:$0xf]  ;;  %v5484_v31 = vld [vmem:[%s6141_s5 + $0x54] sm:$0xf]  ;;  %v3940_v61 = vsel %vm6313_vm6, %v5578_v34, %v3939_v51  ;;  %v3943_v45 = vsel %vm6313_vm6, %v3941_v5, %v3942_v60  ;;  %v4912_v54 = vor.u32 %v7077_v29, %v7088_v46 }
  0xd5   : > { %v5828_v10 = vld [vmem:[#allocation2 + $0xd4] sm:$0xf]  ;;  %v2037_v11 = vrot.slane %v2035_v21, 4  ;;  %v2051_v48 = vor.u32 %v2050_v28, %v2046_v14  ;;  %v2040_v7 = vrot.slane %v2038_v8, 5  ;;  %v7152_v18 = vld [vmem:[%s6141_s5 + $0x58] sm:$0xf]  ;;  %v2151_v8 = vpop.permute.xlu1 %2150 }
  0xd6   : > { %v4993_v38 = vld [vmem:[#allocation2 + $0xd8] sm:$0xf0]  ;;  %2524 = vst.msk [vmem:[#allocation2 + $0xd4] sm:$0xf] %vm230_vm4, %v2448_v9  ;;  %v3333_v12 = vsel %vm6152_vm2, %v3328_v17, %v3332_v41  ;;  %v3359_v0 = vshrl.u32 %v5484_v31, 16  ;;  %v3362_v33 = vshll.u32 %v5484_v31, 16  ;;  %v721_v41 = vpop.permute.xlu0 %720 }
  0xd7   : > { %2525 = vst.msk [vmem:[#allocation2 + $0xdc] sm:$0xf] %vm230_vm4, %v2451_v3  ;;  %v4996_v22 = vor.u32 %v5828_v10, %v4993_v38  ;;  %v2052_v58 = vrot.slane %v2051_v48, 4  ;;  %3636 = vrot.lane.b32.xlu2 %v3333_v12, %s6060_s6  ;;  %v2041_v4 = vor.u32 %v2040_v7, %v2037_v11  ;;  %v3368_v36 = vshll.u32 %v7152_v18, 16  ;;  %v299_v39 = vld [vmem:[%s6141_s5 + $0x90] sm:$0xf] }
  0xd8   : > { %241 = vst.msk [vmem:[#allocation2 + $0x50] sm:$0xf] %vm230_vm4, %v208_v19  ;;  %v3361_v2 = vrot.slane %v3359_v0, 4  ;;  %v3364_v26 = vrot.slane %v3362_v33, 5  ;;  %v603_v37 = vshrl.u32 %v299_v39, 16  ;;  %v606_v43 = vshll.u32 %v299_v39, 16 }
  0xd9   : > { %805 = vst.msk [vmem:[#allocation2 + $0x50] sm:$0xf] %vm794_vm8, %v719_v32  ;;  %5074 = vmatmul.msk.bf16.gmra.mxu1 %vm1374_vm7, %v4996_v22  ;;  %v2057_v40 = vsel %vm6152_vm2, %v2052_v58, %v2056_v15  ;;  %v2042_v1 = vrot.slane %v2041_v4, 4  ;;  %v7169_v47 = vrot.slane %v3368_v36, 5  ;;  %v303_v17 = vld [vmem:[%s6141_s5 + $0xa0] sm:$0xf] }
  0xda   : > { %2234 = vst.msk [vmem:[#allocation2 + $0x40] sm:$0xf] %vm794_vm8, %v2147_v42  ;;  %2180 = vrot.lane.b32.xlu1 %v2057_v40, %s6060_s6  ;;  %v5087_v6 = vld [vmem:[%s6141_s5 + $0x48] sm:$0xf]  ;;  %v3365_v50 = vor.u32 %v3364_v26, %v3361_v2  ;;  %v304_v20 = vld [vmem:[%s6141_s5 + $0xa4] sm:$0x1] }
  0xdb   : > { %v2047_v27 = vsel %vm6152_vm2, %v2042_v1, %v2046_v14  ;;  %v636_v52 = vshll.u32 %v303_v17, 16  ;;  %v640_v24 = vshrl.u32 %v303_v17, 16  ;;  %v605_v63 = vrot.slane %v603_v37, 4  ;;  %v5931_v9 = vld [vmem:[%s8533_s1 + $0x108] sm:$0xff]  ;;  %v209_v14 = vld [vmem:[%s6141_s5 + $0x40] sm:$0xf]  ;;  %v2153_v17 = vpop.permute.xlu2 %2152 }
  0xdc   : > { %2178 = vrot.lane.b32.xlu0 %v2047_v27, %s6060_s6  ;;  %v608_v34 = vrot.slane %v606_v43, 5  ;;  %v646_v35 = vshll.u32 %v304_v20, 16  ;;  %v3366_v16 = vrot.slane %v3365_v50, 4  ;;  %v3350_v62 = vrot.slane %v3348_v13, 4  ;;  %1446 = vmatmul.bf16.gmra.mxu0 %v4912_v54  ;;  %242 = vst.msk [vmem:[#allocation2 + $0x58] sm:$0xf] %vm230_vm4, %v209_v14 }
  0xdd   : > { %v5872_v51 = vld [vmem:[#allocation2 + $0xd4] sm:$0xf]  ;;  %v7183_v56 = vrot.slane %v636_v52, 5  ;;  %v642_v60 = vrot.slane %v640_v24, 4  ;;  %4438 = vmatpush.bf16.msrb.mxu3 %v5931_v9  ;;  %v5263_v21 = vld [vmem:[#allocation2 + $0x20] sm:$0xf] }
  0xde   : > { %v5353_v55 = vld [vmem:[#allocation2 + $0xd8] sm:$0xf0]  ;;  %4016 = vst.msk [vmem:[#allocation2 + $0xd4] sm:$0xf] %vm230_vm4, %v3940_v61  ;;  %v609_v59 = vor.u32 %v608_v34, %v605_v63  ;;  %v3371_v46 = vsel %vm6152_vm2, %v3366_v16, %v7169_v47  ;;  %v648_v28 = vrot.slane %v646_v35, 5  ;;  %v3351_v31 = vor.u32 %v3350_v62, %v7066_v49 }
  0xdf   : > { %v5356_v30 = vor.u32 %v5872_v51, %v5353_v55  ;;  %4017 = vst.msk [vmem:[#allocation2 + $0xdc] sm:$0xf] %vm230_vm4, %v3943_v45  ;;  %v643_v5 = vor.u32 %v642_v60, %v7183_v56  ;;  %v5851_v10 = vld [vmem:[#allocation2 + $0x24] sm:$0xf0]  ;;  %v5441_v19 = vld [vmem:[%s6141_s5 + $0x30] sm:$0xf] }
  0xe0   : > { %v7187_v29 = vld [vmem:[#allocation2 + $0x50] sm:$0xf]  ;;  %v610_v3 = vrot.slane %v609_v59, 4  ;;  %v5264_v11 = vor.u32 %v5851_v10, %v5263_v21  ;;  %v5442_v38 = vld [vmem:[%s6141_s5 + $0x34] sm:$0xf]  ;;  %v3352_v26 = vrot.slane %v3351_v31, 4 }
  0xe1   : > { %5434 = vmatmul.msk.bf16.gmra.mxu3 %vm1374_vm7, %v5356_v30  ;;  %1676 = vst.msk [vmem:[#allocation2 + $0x50] sm:$0xf] %vm230_vm4, %v5087_v6  ;;  %v644_v15 = vrot.slane %v643_v5, 4  ;;  %v869_v7 = vld [vmem:[%s6141_s5 + $0xa8] sm:$0xe]  ;;  %v3372_v16 = vshrl.u32 %v7152_v18, 16 }
  0xe2   : > { %2236 = vst.msk [vmem:[#allocation2 + $0x50] sm:$0xf] %vm794_vm8, %v2151_v8  ;;  %3642 = vrot.lane.b32.xlu1 %v3371_v46, %s6060_s6  ;;  %v615_v48 = vsel %vm6152_vm2, %v610_v3, %v7073_v57  ;;  %2869 = vmatmul.bf16.gmra.mxu2 %v5264_v11  ;;  %v870_v12 = vld [vmem:[%s6141_s5 + $0xac] sm:$0xf]  ;;  %v871_v22 = vld [vmem:[%s6141_s5 + $0xb0] sm:$0x1]  ;;  %v725_v11 = vpop.permute.xlu1 %724 }
  0xe3   : > { %806 = vst.msk [vmem:[#allocation2 + $0x58] sm:$0xf] %vm794_vm8, %v721_v41  ;;  %746 = vrot.lane.b32.xlu2 %v615_v48, %s6060_s6  ;;  %v649_v57 = vsel %vm6152_vm2, %v644_v15, %v648_v28  ;;  %v4883_v58 = vrot.slane %v869_v7, 9  ;;  %v1026_v4 = vrot.slane %v870_v12, 5  ;;  %v1029_v32 = vrot.slane %v871_v22, 5  ;;  %v5925_v14 = vld [vmem:[%s8533_s1 + $0xd8] sm:$0xff] }
  0xe4   : > { %3162 = vst.msk [vmem:[#allocation2 + $0x20] sm:$0xf] %vm230_vm4, %v5441_v19  ;;  %752 = vrot.lane.b32.xlu0 %v649_v57, %s6060_s6  ;;  %v5199_v42 = vld [vmem:[%s6141_s5 + $0xb4] sm:$0xe]  ;;  %v5200_v0 = vld [vmem:[%s6141_s5 + $0xb8] sm:$0xf]  ;;  %4347 = vmatpush.bf16.msrb.mxu1 %v5925_v14 }
  0xe5   : > { %3163 = vst.msk [vmem:[#allocation2 + $0x28] sm:$0xf] %vm230_vm4, %v5442_v38  ;;  %v1027_v33 = vsel %vm6313_vm6, %v4883_v58, %v1026_v4  ;;  %v1028_v13 = vrot.slane %v1026_v4, 4  ;;  %v5201_v61 = vld [vmem:[%s6141_s5 + $0xbc] sm:$0x1]  ;;  %v2454_v49 = vrot.slane %v5200_v0, 5  ;;  %v723_v58 = vpop.permute.xlu0 %722 }
  0xe6   : > { %v5088_v36 = vld [vmem:[%s6141_s5 + $0x4c] sm:$0xf]  ;;  %1098 = vst.msk [vmem:[#allocation2 + $0xe4] sm:$0xf] %vm230_vm4, %v1027_v33  ;;  %v5219_v40 = vrot.slane %v5199_v42, 9  ;;  %v2457_v37 = vrot.slane %v5201_v61, 5 }
  0xe7   : > { %v1030_v39 = vsel %vm6313_vm6, %v1028_v13, %v1029_v32  ;;  %v7224_v1 = vld [vmem:[%s6141_s5 + $0xc4] sm:$0xf]  ;;  %v5149_v2 = vld [vmem:[%s6141_s5 + $0xac] sm:$0xf]  ;;  %v2456_v27 = vrot.slane %v2454_v49, 4 }
  0xe8   : > { %1099 = vst.msk [vmem:[#allocation2 + $0xec] sm:$0xf] %vm230_vm4, %v1030_v39  ;;  %v2068_v43 = vshll.u32 %v5149_v2, 16  ;;  %v5559_v6 = vld [vmem:[%s6141_s5 + $0xc0] sm:$0xe]  ;;  %v2072_v52 = vshrl.u32 %v5149_v2, 16  ;;  %v2455_v34 = vsel %vm6313_vm6, %v5219_v40, %v2454_v49 }
  0xe9   : > { %v5561_v50 = vld [vmem:[%s6141_s5 + $0xc8] sm:$0x1]  ;;  %v5150_v20 = vld [vmem:[%s6141_s5 + $0xb0] sm:$0x1]  ;;  %v3946_v35 = vrot.slane %v7224_v1, 5  ;;  %v2458_v46 = vsel %vm6313_vm6, %v2456_v27, %v2457_v37  ;;  %v5579_v28 = vrot.slane %v5559_v6, 9 }
  0xea   : > { %v7227_v45 = vld [vmem:[#allocation2 + $0x54] sm:$0xf0]  ;;  %v2070_v24 = vrot.slane %v2068_v43, 5  ;;  %v2078_v51 = vshll.u32 %v5150_v20, 16  ;;  %v5483_v63 = vld [vmem:[%s6141_s5 + $0x50] sm:$0x1] }
  0xeb   : > { %1677 = vst.msk [vmem:[#allocation2 + $0x58] sm:$0xf] %vm230_vm4, %v5088_v36  ;;  %v2074_v54 = vrot.slane %v2072_v52, 4  ;;  %v3354_v9 = vshll.u32 %v5483_v63, 16  ;;  %v5148_v55 = vld [vmem:[%s6141_s5 + $0xa8] sm:$0xf]  ;;  %v3947_v61 = vsel %vm6313_vm6, %v5579_v28, %v3946_v35 }
  0xec   : > { %2237 = vst.msk [vmem:[#allocation2 + $0x58] sm:$0xf] %vm794_vm8, %v2153_v17  ;;  %v2059_v30 = vshrl.u32 %v5148_v55, 16  ;;  %v2062_v59 = vshll.u32 %v5148_v55, 16  ;;  %v211_v60 = vld [vmem:[%s6141_s5 + $0x4c] sm:$0xf] }
  0xed   : > { %v5830_v62 = vld [vmem:[#allocation2 + $0xe4] sm:$0xf]  ;;  %v2075_v21 = vor.u32 %v2074_v54, %v2070_v24  ;;  %v2080_v3 = vrot.slane %v2078_v51, 5  ;;  %v3356_v5 = vrot.slane %v3354_v9, 5  ;;  %244 = vst.msk [vmem:[#allocation2 + $0x68] sm:$0xf] %vm230_vm4, %v211_v60  ;;  %v4920_v54 = vor.u32 %v7133_v53, %v7117_v44 }
  0xee   : > { %2526 = vst.msk [vmem:[#allocation2 + $0xe4] sm:$0xf] %vm230_vm4, %v2455_v34  ;;  %v3949_v8 = vrot.slane %v5561_v50, 5  ;;  %v2061_v10 = vrot.slane %v2059_v30, 4  ;;  %v2064_v41 = vrot.slane %v2062_v59, 5  ;;  %v3948_v38 = vrot.slane %v3946_v35, 4 }
  0xef   : > { %v5001_v19 = vld [vmem:[#allocation2 + $0xe8] sm:$0xf0]  ;;  %v2076_v48 = vrot.slane %v2075_v21, 4  ;;  %v3357_v15 = vsel %vm6152_vm2, %v3352_v26, %v3356_v5  ;;  %808 = vst.msk [vmem:[#allocation2 + $0x68] sm:$0xf] %vm794_vm8, %v725_v11  ;;  %v2155_v26 = vpop.permute.xlu2 %2154  ;;  %1451 = vmatmul.bf16.gmra.mxu0 %v4920_v54  ;;  %v3374_v53 = vrot.slane %v3372_v16, 4 }
  0xf0   : > { %2527 = vst.msk [vmem:[#allocation2 + $0xec] sm:$0xf] %vm230_vm4, %v2458_v46  ;;  %3640 = vrot.lane.b32.xlu2 %v3357_v15, %s6060_s6  ;;  %v2065_v7 = vor.u32 %v2064_v41, %v2061_v10  ;;  %v210_v12 = vld [vmem:[%s6141_s5 + $0x48] sm:$0xf]  ;;  %v5004_v22 = vor.u32 %v5830_v62, %v5001_v19  ;;  %v5487_v31 = vld [vmem:[%s6141_s5 + $0x60] sm:$0xf]  ;;  %v3950_v49 = vsel %vm6313_vm6, %v3948_v38, %v3949_v8  ;;  %v727_v8 = vpop.permute.xlu1 %726 }
  0xf1   : > { %v2081_v57 = vsel %vm6152_vm2, %v2076_v48, %v2080_v3  ;;  %243 = vst.msk [vmem:[#allocation2 + $0x60] sm:$0xf] %vm230_vm4, %v210_v12  ;;  %v7260_v4 = vld [vmem:[%s6141_s5 + $0x64] sm:$0xf]  ;;  %v3383_v32 = vshrl.u32 %v5487_v31, 16  ;;  %v3386_v42 = vshll.u32 %v5487_v31, 16  ;;  %v3375_v31 = vor.u32 %v3374_v53, %v7169_v47 }
  0xf2   : > { %2184 = vrot.lane.b32.xlu1 %v2081_v57, %s6060_s6  ;;  %v2066_v0 = vrot.slane %v2065_v7, 4  ;;  %v5090_v33 = vld [vmem:[%s6141_s5 + $0x58] sm:$0xf]  ;;  %807 = vst.msk [vmem:[#allocation2 + $0x60] sm:$0xf] %vm794_vm8, %v723_v58  ;;  %5075 = vmatmul.msk.bf16.gmra.mxu1 %vm1374_vm7, %v5004_v22  ;;  %v3392_v13 = vshll.u32 %v7260_v4, 16  ;;  %v2157_v57 = vpop.permute.xlu0 %2156 }
  0xf3   : > { %v3385_v36 = vrot.slane %v3383_v32, 4  ;;  %v3388_v39 = vrot.slane %v3386_v42, 5  ;;  %v302_v40 = vld [vmem:[%s6141_s5 + $0x9c] sm:$0xf]  ;;  %v306_v1 = vld [vmem:[%s6141_s5 + $0xac] sm:$0xf] }
  0xf4   : > { %v2071_v2 = vsel %vm6152_vm2, %v2066_v0, %v2070_v24  ;;  %v7275_v37 = vrot.slane %v3392_v13, 5  ;;  %v627_v43 = vshrl.u32 %v302_v40, 16  ;;  %v630_v17 = vshll.u32 %v302_v40, 16  ;;  %v307_v27 = vld [vmem:[%s6141_s5 + $0xb0] sm:$0x1] }
  0xf5   : > { %v5874_v6 = vld [vmem:[#allocation2 + $0xe4] sm:$0xf]  ;;  %2182 = vrot.lane.b32.xlu0 %v2071_v2, %s6060_s6  ;;  %v5089_v50 = vld [vmem:[%s6141_s5 + $0x54] sm:$0xf]  ;;  %v3389_v20 = vor.u32 %v3388_v39, %v3385_v36  ;;  %v660_v52 = vshll.u32 %v306_v1, 16  ;;  %v664_v51 = vshrl.u32 %v306_v1, 16 }
  0xf6   : > { %v670_v63 = vshll.u32 %v307_v27, 16  ;;  %4018 = vst.msk [vmem:[#allocation2 + $0xe4] sm:$0xf] %vm230_vm4, %v3947_v61  ;;  %v7281_v34 = vld [vmem:[#allocation2 + $0x64] sm:$0xf0]  ;;  %v629_v24 = vrot.slane %v627_v43, 4 }
  0xf7   : > { %v632_v35 = vrot.slane %v630_v17, 5  ;;  %v5361_v9 = vld [vmem:[#allocation2 + $0xe8] sm:$0xf0]  ;;  %1679 = vst.msk [vmem:[#allocation2 + $0x68] sm:$0xf] %vm230_vm4, %v5090_v33  ;;  %v3390_v55 = vrot.slane %v3389_v20, 4 }
  0xf8   : > { %v7286_v30 = vrot.slane %v660_v52, 5  ;;  %v5364_v59 = vor.u32 %v5874_v6, %v5361_v9  ;;  %4019 = vst.msk [vmem:[#allocation2 + $0xec] sm:$0xf] %vm230_vm4, %v3950_v49  ;;  %v666_v14 = vrot.slane %v664_v51, 4  ;;  %v212_v44 = vld [vmem:[%s6141_s5 + $0x54] sm:$0xf]  ;;  %v2161_v51 = vpop.permute.xlu1 %2160 }
  0xf9   : > { %v633_v60 = vor.u32 %v632_v35, %v629_v24  ;;  %v7289_v62 = vld [vmem:[#allocation2 + $0x60] sm:$0xf]  ;;  %v3395_v46 = vsel %vm6152_vm2, %v3390_v55, %v7275_v37  ;;  %v672_v5 = vrot.slane %v670_v63, 5  ;;  %v213_v28 = vld [vmem:[%s6141_s5 + $0x58] sm:$0xf]  ;;  %v5924_v38 = vld [vmem:[%s8533_s1 + $0xd0] sm:$0xff] }
  0xfa   : > { %5435 = vmatmul.msk.bf16.gmra.mxu3 %vm1374_vm7, %v5364_v59  ;;  %1678 = vst.msk [vmem:[#allocation2 + $0x60] sm:$0xf] %vm230_vm4, %v5089_v50  ;;  %3646 = vrot.lane.b32.xlu1 %v3395_v46, %s6060_s6  ;;  %v667_v3 = vor.u32 %v666_v14, %v7286_v30  ;;  %v5271_v10 = vld [vmem:[#allocation2 + $0x30] sm:$0xf]  ;;  %v5853_v18 = vld [vmem:[#allocation2 + $0x34] sm:$0xf0] }
  0xfb   : > { %v634_v21 = vrot.slane %v633_v60, 4  ;;  %2238 = vst.msk [vmem:[#allocation2 + $0x60] sm:$0xf] %vm794_vm8, %v2155_v26  ;;  %v5272_v11 = vor.u32 %v5853_v18, %v5271_v10  ;;  %v5443_v19 = vld [vmem:[%s6141_s5 + $0x3c] sm:$0xf]  ;;  %4348 = vmatpush.bf16.msrb.mxu1 %v5924_v38  ;;  %v3376_v2 = vrot.slane %v3375_v31, 4 }
  0xfc   : > { %v668_v41 = vrot.slane %v667_v3, 4  ;;  %245 = vst.msk [vmem:[#allocation2 + $0x70] sm:$0xf] %vm230_vm4, %v212_v44  ;;  %v5444_v48 = vld [vmem:[%s6141_s5 + $0x40] sm:$0xf]  ;;  %v5923_v18 = vld [vmem:[%s8533_s1 + $0xc8] sm:$0xff] }
  0xfd   : > { %v639_v16 = vsel %vm6152_vm2, %v634_v21, %v7183_v56  ;;  %809 = vst.msk [vmem:[#allocation2 + $0x70] sm:$0xf] %vm794_vm8, %v727_v8  ;;  %v872_v15 = vld [vmem:[%s6141_s5 + $0xb4] sm:$0xe]  ;;  %v729_v56 = vpop.permute.xlu2 %728  ;;  %2874 = vmatmul.bf16.gmra.mxu2 %v5272_v11  ;;  %v873_v12 = vld [vmem:[%s6141_s5 + $0xb8] sm:$0xf] }
  0xfe   : > { %750 = vrot.lane.b32.xlu2 %v639_v16, %s6060_s6  ;;  %v673_v7 = vsel %vm6152_vm2, %v668_v41, %v672_v5  ;;  %246 = vst.msk [vmem:[#allocation2 + $0x78] sm:$0xf] %vm230_vm4, %v213_v28  ;;  %v874_v22 = vld [vmem:[%s6141_s5 + $0xbc] sm:$0x1]  ;;  %v4884_v58 = vrot.slane %v872_v15, 9  ;;  %v1033_v32 = vrot.slane %v873_v12, 5 }
  0xff   : > { %756 = vrot.lane.b32.xlu0 %v673_v7, %s6060_s6  ;;  %810 = vst.msk [vmem:[#allocation2 + $0x78] sm:$0xf] %vm794_vm8, %v729_v56  ;;  %v1036_v42 = vrot.slane %v874_v22, 5  ;;  %v5091_v0 = vld [vmem:[%s6141_s5 + $0x60] sm:$0xf]  ;;  %4349 = vmatpush.bf16.msrb.mxu1 %v5923_v18 }
 0x100   : > { %2239 = vst.msk [vmem:[#allocation2 + $0x68] sm:$0xf] %vm794_vm8, %v2157_v57  ;;  %v5202_v33 = vld [vmem:[%s6141_s5 + $0xc0] sm:$0xe]  ;;  %v5203_v13 = vld [vmem:[%s6141_s5 + $0xc4] sm:$0xf]  ;;  %v1034_v47 = vsel %vm6313_vm6, %v4884_v58, %v1033_v32  ;;  %v2159_v58 = vpop.permute.xlu0 %2158 }
 0x101   : > { %3164 = vst.msk [vmem:[#allocation2 + $0x30] sm:$0xf] %vm230_vm4, %v5443_v19  ;;  %v1035_v61 = vrot.slane %v1033_v32, 4  ;;  %v5204_v49 = vld [vmem:[%s6141_s5 + $0xc8] sm:$0x1]  ;;  %v5220_v39 = vrot.slane %v5202_v33, 9 }
 0x102   : > { %v5092_v36 = vld [vmem:[%s6141_s5 + $0x64] sm:$0xf]  ;;  %3165 = vst.msk [vmem:[#allocation2 + $0x38] sm:$0xf] %vm230_vm4, %v5444_v48  ;;  %v2461_v40 = vrot.slane %v5203_v13, 5  ;;  %v2464_v1 = vrot.slane %v5204_v49, 5 }
 0x103   : > { %v1037_v26 = vsel %vm6313_vm6, %v1035_v61, %v1036_v42  ;;  %1100 = vst.msk [vmem:[#allocation2 + $0xf4] sm:$0xf] %vm230_vm4, %v1034_v47  ;;  %v5562_v43 = vld [vmem:[%s6141_s5 + $0xcc] sm:$0xe]  ;;  %v5563_v17 = vld [vmem:[%s6141_s5 + $0xd0] sm:$0xf] }
 0x104   : > { %v7338_v27 = vld [vmem:[#allocation2 + $0x70] sm:$0xf]  ;;  %1101 = vst.msk [vmem:[#allocation2 + $0xfc] sm:$0xf] %vm230_vm4, %v1037_v26  ;;  %v5564_v6 = vld [vmem:[%s6141_s5 + $0xd4] sm:$0x1]  ;;  %v2462_v60 = vsel %vm6313_vm6, %v5220_v39, %v2461_v40 }
 0x105   : > { %1680 = vst.msk [vmem:[#allocation2 + $0x70] sm:$0xf] %vm230_vm4, %v5091_v0  ;;  %v2463_v50 = vrot.slane %v2461_v40, 4  ;;  %v3953_v20 = vrot.slane %v5563_v17, 5  ;;  %v5152_v52 = vld [vmem:[%s6141_s5 + $0xb8] sm:$0xf]  ;;  %v731_v21 = vpop.permute.xlu2 %730 }
 0x106   : > { %v7344_v63 = vld [vmem:[#allocation2 + $0x74] sm:$0xf0]  ;;  %v5153_v24 = vld [vmem:[%s6141_s5 + $0xbc] sm:$0x1]  ;;  %v2092_v35 = vshll.u32 %v5152_v52, 16  ;;  %v2096_v54 = vshrl.u32 %v5152_v52, 16 }
 0x107   : > { %1681 = vst.msk [vmem:[#allocation2 + $0x78] sm:$0xf] %vm230_vm4, %v5092_v36  ;;  %v5580_v9 = vrot.slane %v5562_v43, 9  ;;  %v2102_v55 = vshll.u32 %v5153_v24, 16  ;;  %v5486_v59 = vld [vmem:[%s6141_s5 + $0x5c] sm:$0x1]  ;;  %v2465_v5 = vsel %vm6313_vm6, %v2463_v50, %v2464_v1  ;;  %v3623_v1 = vpop.permute.xlu1 %3622 }
 0x108   : > { %v2094_v14 = vrot.slane %v2092_v35, 5  ;;  %v2098_v46 = vrot.slane %v2096_v54, 4  ;;  %v3378_v44 = vshll.u32 %v5486_v59, 16  ;;  %v5151_v53 = vld [vmem:[%s6141_s5 + $0xb4] sm:$0xf]  ;;  %v5930_v3 = vld [vmem:[%s8533_s1 + $0x100] sm:$0xff] }
 0x109   : > { %v3956_v28 = vrot.slane %v5564_v6, 5  ;;  %v2083_v8 = vshrl.u32 %v5151_v53, 16  ;;  %v2086_v10 = vshll.u32 %v5151_v53, 16  ;;  %2241 = vst.msk [vmem:[#allocation2 + $0x78] sm:$0xf] %vm794_vm8, %v2161_v51  ;;  %v3955_v41 = vrot.slane %v3953_v20, 4  ;;  %4439 = vmatpush.bf16.msrb.mxu3 %v5930_v3 }
 0x10a   : > { %v5832_v16 = vld [vmem:[#allocation2 + $0xf4] sm:$0xf]  ;;  %v2099_v11 = vor.u32 %v2098_v46, %v2094_v14  ;;  %v2104_v19 = vrot.slane %v2102_v55, 5  ;;  %v3380_v38 = vrot.slane %v3378_v44, 5  ;;  %v214_v22 = vld [vmem:[%s6141_s5 + $0x60] sm:$0xf]  ;;  %v3954_v49 = vsel %vm6313_vm6, %v5580_v9, %v3953_v20  ;;  %v7392_v20 = vpop.f32.mrf.mxu3 }
 0x10b   : > { %v5009_v48 = vld [vmem:[#allocation2 + $0xf8] sm:$0xf0]  ;;  %2528 = vst.msk [vmem:[#allocation2 + $0xf4] sm:$0xf] %vm230_vm4, %v2462_v60  ;;  %v2085_v15 = vrot.slane %v2083_v8, 4  ;;  %v2088_v7 = vrot.slane %v2086_v10, 5  ;;  %v3957_v36 = vsel %vm6313_vm6, %v3955_v41, %v3956_v28 }
 0x10c   : > { %2529 = vst.msk [vmem:[#allocation2 + $0xfc] sm:$0xf] %vm230_vm4, %v2465_v5  ;;  %v2100_v56 = vrot.slane %v2099_v11, 4  ;;  %v3381_v12 = vsel %vm6152_vm2, %v3376_v2, %v3380_v38  ;;  %v5012_v31 = vor.u32 %v5832_v16, %v5009_v48  ;;  %v5490_v32 = vld [vmem:[%s6141_s5 + $0x6c] sm:$0xf]  ;;  %v3396_v61 = vshrl.u32 %v7260_v4, 16  ;;  %v7385_v2 = vpop.f32.mrf.mxu1  ;;  %v733_v38 = vpop.permute.xlu0 %732 }
 0x10d   : > { %3644 = vrot.lane.b32.xlu2 %v3381_v12, %s6060_s6  ;;  %v2089_v57 = vor.u32 %v2088_v7, %v2085_v15  ;;  %247 = vst.msk [vmem:[#allocation2 + $0x80] sm:$0xf] %vm230_vm4, %v214_v22  ;;  %v7370_v42 = vld [vmem:[%s6141_s5 + $0x70] sm:$0xf]  ;;  %v3407_v33 = vshrl.u32 %v5490_v32, 16  ;;  %v3410_v13 = vshll.u32 %v5490_v32, 16  ;;  %v3625_v46 = vpop.permute.xlu2 %3624 }
 0x10e   : > { %v2105_v0 = vsel %vm6152_vm2, %v2100_v56, %v2104_v19  ;;  %811 = vst.msk [vmem:[#allocation2 + $0x80] sm:$0xf] %vm794_vm8, %v731_v21  ;;  %5076 = vmatmul.msk.bf16.gmra.mxu1 %vm1374_vm7, %v5012_v31  ;;  %v3416_v47 = vshll.u32 %v7370_v42, 16  ;;  %v305_v40 = vld [vmem:[%s6141_s5 + $0xa8] sm:$0xf]  ;;  %v3398_v15 = vrot.slane %v3396_v61, 4 }
 0x10f   : > { %2188 = vrot.lane.b32.xlu1 %v2105_v0, %s6060_s6  ;;  %v2090_v39 = vrot.slane %v2089_v57, 4  ;;  %2240 = vst.msk [vmem:[#allocation2 + $0x70] sm:$0xf] %vm794_vm8, %v2159_v58  ;;  %v3409_v26 = vrot.slane %v3407_v33, 4  ;;  %v3412_v43 = vrot.slane %v3410_v13, 5  ;;  %v651_v17 = vshrl.u32 %v305_v40, 16 }
 0x110   : > { %v7387_v4 = vrot.slane %v3416_v47, 5  ;;  %v309_v6 = vld [vmem:[%s6141_s5 + $0xb8] sm:$0xf]  ;;  %v5093_v52 = vld [vmem:[%s6141_s5 + $0x6c] sm:$0xf]  ;;  %v654_v51 = vshll.u32 %v305_v40, 16  ;;  %v3399_v58 = vor.u32 %v3398_v15, %v7275_v37 }
 0x111   : > { %v2095_v50 = vsel %vm6152_vm2, %v2090_v39, %v2094_v14  ;;  %v310_v24 = vld [vmem:[%s6141_s5 + $0xbc] sm:$0x1]  ;;  %v684_v35 = vshll.u32 %v309_v6, 16  ;;  %v688_v54 = vshrl.u32 %v309_v6, 16  ;;  %v3413_v55 = vor.u32 %v3412_v43, %v3409_v26  ;;  %3718 = vst.msk [vmem:[#allocation2] sm:$0xf] %vm794_vm8, %v3623_v1 }
 0x112   : > { %v5876_v9 = vld [vmem:[#allocation2 + $0xf4] sm:$0xf]  ;;  %2186 = vrot.lane.b32.xlu0 %v2095_v50, %s6060_s6  ;;  %v653_v59 = vrot.slane %v651_v17, 4  ;;  %v694_v60 = vshll.u32 %v310_v24, 16  ;;  %v656_v14 = vrot.slane %v654_v51, 5  ;;  %v7432_v13 = vpop.f32.mrf.mxu3  ;;  %v5922_v1 = vld [vmem:[%s8533_s1 + $0xc0] sm:$0xff]  ;;  %v4928_v26 = vor.u32 %v7227_v45, %v7187_v29  ;;  %v2165_v51 = vpop.permute.xlu1 %2164 }
 0x113   : > { %v5369_v44 = vld [vmem:[#allocation2 + $0xf8] sm:$0xf0]  ;;  %4020 = vst.msk [vmem:[#allocation2 + $0xf4] sm:$0xf] %vm230_vm4, %v3954_v49  ;;  %v7399_v53 = vrot.slane %v684_v35, 5  ;;  %v3414_v3 = vrot.slane %v3413_v55, 4  ;;  %4350 = vmatpush.bf16.msrb.mxu1 %v5922_v1 }
 0x114   : > { %v5372_v21 = vor.u32 %v5876_v9, %v5369_v44  ;;  %4021 = vst.msk [vmem:[#allocation2 + $0xfc] sm:$0xf] %vm230_vm4, %v3957_v36  ;;  %v690_v5 = vrot.slane %v688_v54, 4  ;;  %v657_v8 = vor.u32 %v656_v14, %v653_v59  ;;  %v696_v10 = vrot.slane %v694_v60, 5  ;;  %v215_v41 = vld [vmem:[%s6141_s5 + $0x64] sm:$0xf]  ;;  %v7426_v0 = vpop.f32.mrf.mxu1  ;;  %1456 = vmatmul.bf16.gmra.mxu0 %v4928_v26 }
 0x115   : > { %v7402_v28 = vld [vmem:[#allocation2 + $0x80] sm:$0xf]  ;;  %3719 = vst.msk [vmem:[#allocation2 + $0x8] sm:$0xf] %vm794_vm8, %v3625_v46  ;;  %v3419_v18 = vsel %vm6152_vm2, %v3414_v3, %v7387_v4  ;;  %v5855_v48 = vld [vmem:[#allocation2 + $0x44] sm:$0xf0]  ;;  %v735_v29 = vpop.permute.xlu2 %734 }
 0x116   : > { %5436 = vmatmul.msk.bf16.gmra.mxu3 %vm1374_vm7, %v5372_v21  ;;  %1682 = vst.msk [vmem:[#allocation2 + $0x80] sm:$0xf] %vm230_vm4, %v5093_v52  ;;  %v691_v16 = vor.u32 %v690_v5, %v7399_v53  ;;  %v5279_v11 = vld [vmem:[#allocation2 + $0x40] sm:$0xf]  ;;  %v658_v19 = vrot.slane %v657_v8, 4  ;;  %v3420_v36 = vshrl.u32 %v7370_v42, 16 }
 0x117   : > { %3650 = vrot.lane.b32.xlu1 %v3419_v18, %s6060_s6  ;;  %248 = vst.msk [vmem:[#allocation2 + $0x88] sm:$0xf] %vm230_vm4, %v215_v41  ;;  %v5280_v56 = vor.u32 %v5855_v48, %v5279_v11  ;;  %v5445_v12 = vld [vmem:[%s6141_s5 + $0x48] sm:$0xf]  ;;  %v5446_v31 = vld [vmem:[%s6141_s5 + $0x4c] sm:$0xf] }
 0x118   : > { %v692_v7 = vrot.slane %v691_v16, 4  ;;  %812 = vst.msk [vmem:[#allocation2 + $0x88] sm:$0xf] %vm794_vm8, %v733_v38  ;;  %v663_v22 = vsel %vm6152_vm2, %v658_v19, %v7286_v30  ;;  %v827_v57 = vld [vmem:[%s6141_s5] sm:$0xe]  ;;  %v3400_v52 = vrot.slane %v3399_v58, 4  ;;  %v2163_v38 = vpop.permute.xlu0 %2162 }
 0x119   : > { %3166 = vst.msk [vmem:[#allocation2 + $0x40] sm:$0xf] %vm230_vm4, %v5445_v12  ;;  %754 = vrot.lane.b32.xlu2 %v663_v22, %s6060_s6  ;;  %2879 = vmatmul.bf16.gmra.mxu2 %v5280_v56  ;;  %v828_v30 = vld [vmem:[%s6141_s5 + $0x4] sm:$0xf]  ;;  %v829_v33 = vld [vmem:[%s6141_s5 + $0x8] sm:$0x1] }
 0x11a   : > { %v697_v32 = vsel %vm6152_vm2, %v692_v7, %v696_v10  ;;  %3167 = vst.msk [vmem:[#allocation2 + $0x48] sm:$0xf] %vm230_vm4, %v5446_v31  ;;  %v4869_v47 = vrot.slane %v827_v57, 9  ;;  %v928_v37 = vrot.slane %v828_v30, 5  ;;  %v931_v61 = vrot.slane %v829_v33, 5  ;;  %v7480_v58 = vpop.f32.mrf.mxu3 }
 0x11b   : > { %760 = vrot.lane.b32.xlu0 %v697_v32, %s6060_s6  ;;  %v5157_v49 = vld [vmem:[%s6141_s5 + $0xc] sm:$0xe]  ;;  %v5158_v39 = vld [vmem:[%s6141_s5 + $0x10] sm:$0xf]  ;;  %v5159_v40 = vld [vmem:[%s6141_s5 + $0x14] sm:$0x1] }
 0x11c   : > { %v5094_v43 = vld [vmem:[%s6141_s5 + $0x70] sm:$0xf]  ;;  %v929_v17 = vsel %vm6313_vm6, %v4869_v47, %v928_v37  ;;  %v930_v6 = vrot.slane %v928_v37, 4  ;;  %v5205_v50 = vrot.slane %v5157_v49, 9  ;;  %v2356_v24 = vrot.slane %v5158_v39, 5  ;;  %v7471_v56 = vpop.f32.mrf.mxu1  ;;  %v3627_v39 = vpop.permute.xlu1 %3626 }
 0x11d   : > { %1070 = vst.msk [vmem:[#allocation2 + $0x4] sm:$0xf] %vm230_vm4, %v929_v17  ;;  %v2359_v35 = vrot.slane %v5159_v40, 5  ;;  %v5518_v54 = vld [vmem:[%s6141_s5 + $0x1c] sm:$0xf]  ;;  %v3629_v17 = vpop.permute.xlu2 %3628 }
 0x11e   : > { %v932_v9 = vsel %vm6313_vm6, %v930_v6, %v931_v61  ;;  %v5517_v55 = vld [vmem:[%s6141_s5 + $0x18] sm:$0xe]  ;;  %v5489_v59 = vld [vmem:[%s6141_s5 + $0x68] sm:$0x1]  ;;  %v7456_v60 = vld [vmem:[%s6141_s5 + $0x20] sm:$0x1]  ;;  %v2357_v14 = vsel %vm6313_vm6, %v5205_v50, %v2356_v24 }
 0x11f   : > { %v7448_v45 = vld [vmem:[#allocation2 + $0x84] sm:$0xf0]  ;;  %v3848_v46 = vrot.slane %v5518_v54, 5  ;;  %v3402_v44 = vshll.u32 %v5489_v59, 16  ;;  %1071 = vst.msk [vmem:[#allocation2 + $0xc] sm:$0xf] %vm230_vm4, %v932_v9 }
 0x120   : > { %1683 = vst.msk [vmem:[#allocation2 + $0x88] sm:$0xf] %vm230_vm4, %v5094_v43  ;;  %v5154_v21 = vld [vmem:[%s6141_s5 + $0xc0] sm:$0xf]  ;;  %v7463_v3 = vld [vmem:[%s6141_s5 + $0xc4] sm:$0xf] }
 0x121   : > { %v2358_v5 = vrot.slane %v2356_v24, 4  ;;  %v5565_v8 = vrot.slane %v5517_v55, 9  ;;  %v3404_v10 = vrot.slane %v3402_v44, 5  ;;  %v2107_v18 = vshrl.u32 %v5154_v21, 16  ;;  %2243 = vst.msk [vmem:[#allocation2 + $0x88] sm:$0xf] %vm794_vm8, %v2165_v51 }
 0x122   : > { %v3850_v16 = vrot.slane %v3848_v46, 4  ;;  %v3851_v41 = vrot.slane %v7456_v60, 5  ;;  %v2110_v11 = vshll.u32 %v5154_v21, 16  ;;  %v2116_v19 = vshll.u32 %v7463_v3, 16  ;;  %v216_v12 = vld [vmem:[%s6141_s5 + $0x6c] sm:$0xf] }
 0x123   : > { %v3405_v48 = vsel %vm6152_vm2, %v3400_v52, %v3404_v10  ;;  %v2109_v15 = vrot.slane %v2107_v18, 4  ;;  %v2120_v7 = vshrl.u32 %v7463_v3, 16  ;;  %2242 = vst.msk [vmem:[#allocation2 + $0x80] sm:$0xf] %vm794_vm8, %v2163_v38  ;;  %v2360_v32 = vsel %vm6313_vm6, %v2358_v5, %v2359_v35  ;;  %v5607_v30 = vld [vmem:[#allocation2] sm:$0xf] }
 0x124   : > { %v7475_v22 = vld [vmem:[#allocation2 + $0x4] sm:$0xf]  ;;  %3648 = vrot.lane.b32.xlu2 %v3405_v48, %s6060_s6  ;;  %v2112_v31 = vrot.slane %v2110_v11, 5  ;;  %v7478_v57 = vrot.slane %v2116_v19, 5  ;;  %249 = vst.msk [vmem:[#allocation2 + $0x90] sm:$0xf] %vm230_vm4, %v216_v12  ;;  %v3849_v24 = vsel %vm6313_vm6, %v5565_v8, %v3848_v46  ;;  %v3852_v18 = vsel %vm6313_vm6, %v3850_v16, %v3851_v41  ;;  %v7515_v38 = vpop.f32.mrf.mxu1  ;;  %v737_v48 = vpop.permute.xlu0 %736 }
 0x125   : > { %2498 = vst.msk [vmem:[#allocation2 + $0x4] sm:$0xf] %vm230_vm4, %v2357_v14  ;;  %v5891_v33 = vld [vmem:[#allocation2 + $0x4] sm:$0xf0]  ;;  %v308_v61 = vld [vmem:[%s6141_s5 + $0xb4] sm:$0xf] }
 0x126   : > { %v2113_v47 = vor.u32 %v2112_v31, %v2109_v15  ;;  %813 = vst.msk [vmem:[#allocation2 + $0x90] sm:$0xf] %vm794_vm8, %v735_v29  ;;  %v5608_v37 = vor.u32 %v5891_v33, %v5607_v30  ;;  %v5494_v49 = vld [vmem:[%s6141_s5 + $0x7c] sm:$0xf]  ;;  %v7489_v40 = vld [vmem:[#allocation2 + $0x8] sm:$0xf0]  ;;  %v7518_v31 = vpop.f32.mrf.mxu3 }
 0x127   : > { %v675_v1 = vshrl.u32 %v308_v61, 16  ;;  %v678_v26 = vshll.u32 %v308_v61, 16  ;;  %v5495_v43 = vld [vmem:[%s6141_s5 + $0x80] sm:$0x1]  ;;  %2499 = vst.msk [vmem:[#allocation2 + $0xc] sm:$0xf] %vm230_vm4, %v2360_v32 }
 0x128   : > { %v2114_v6 = vrot.slane %v2113_v47, 4  ;;  %4351 = vmatmul.bf16.vlgmr.msrb.gmra.mxu1 %v5608_v37  ;;  %v3440_v50 = vshll.u32 %v5494_v49, 16  ;;  %v3444_v52 = vshrl.u32 %v5494_v49, 16  ;;  %v3450_v51 = vshll.u32 %v5495_v43, 16  ;;  %v5095_v35 = vld [vmem:[%s6141_s5 + $0x78] sm:$0xf] }
 0x129   : > { %v677_v54 = vrot.slane %v675_v1, 4  ;;  %v680_v29 = vrot.slane %v678_v26, 5  ;;  %3720 = vst.msk [vmem:[#allocation2 + $0x10] sm:$0xf] %vm794_vm8, %v3627_v39  ;;  %v217_v46 = vld [vmem:[%s6141_s5 + $0x70] sm:$0xf]  ;;  %v4936_v47 = vor.u32 %v7281_v34, %v7289_v62  ;;  %v2169_v1 = vpop.permute.xlu1 %2168 }
 0x12a   : > { %v2119_v9 = vsel %vm6152_vm2, %v2114_v6, %v7478_v57  ;;  %v7500_v55 = vrot.slane %v3440_v50, 5  ;;  %v3446_v59 = vrot.slane %v3444_v52, 4  ;;  %v3452_v60 = vrot.slane %v3450_v51, 5  ;;  %3721 = vst.msk [vmem:[#allocation2 + $0x18] sm:$0xf] %vm794_vm8, %v3629_v17  ;;  %v739_v17 = vpop.permute.xlu2 %738 }
 0x12b   : > { %2190 = vrot.lane.b32.xlu0 %v2119_v9, %s6060_s6  ;;  %v681_v44 = vor.u32 %v680_v29, %v677_v54  ;;  %v5287_v14 = vld [vmem:[#allocation2 + $0x50] sm:$0xf]  ;;  %v5857_v21 = vld [vmem:[#allocation2 + $0x54] sm:$0xf0]  ;;  %250 = vst.msk [vmem:[#allocation2 + $0x98] sm:$0xf] %vm230_vm4, %v217_v46  ;;  %1461 = vmatmul.bf16.gmra.mxu0 %v4936_v47 }
 0x12c   : > { %v7505_v3 = vld [vmem:[#allocation2 + $0x4] sm:$0xf]  ;;  %v3447_v5 = vor.u32 %v3446_v59, %v7500_v55  ;;  %v5288_v8 = vor.u32 %v5857_v21, %v5287_v14  ;;  %v5447_v10 = vld [vmem:[%s6141_s5 + $0x54] sm:$0xf]  ;;  %v2122_v15 = vrot.slane %v2120_v7, 4  ;;  %v3422_v16 = vrot.slane %v3420_v36, 4 }
 0x12d   : > { %3990 = vst.msk [vmem:[#allocation2 + $0x4] sm:$0xf] %vm230_vm4, %v3849_v24  ;;  %v7513_v11 = vld [vmem:[#allocation2 + $0x90] sm:$0xf]  ;;  %v682_v19 = vrot.slane %v681_v44, 4  ;;  %v7558_v44 = vpop.f32.mrf.mxu1 }
 0x12e   : > { %1684 = vst.msk [vmem:[#allocation2 + $0x90] sm:$0xf] %vm230_vm4, %v5095_v35  ;;  %v3448_v12 = vrot.slane %v3447_v5, 4  ;;  %2884 = vmatmul.bf16.gmra.mxu2 %v5288_v8  ;;  %v5448_v32 = vld [vmem:[%s6141_s5 + $0x58] sm:$0xf]  ;;  %v2123_v50 = vor.u32 %v2122_v15, %v7478_v57  ;;  %v3423_v52 = vor.u32 %v3422_v16, %v7387_v4  ;;  %v2167_v4 = vpop.permute.xlu0 %2166  ;;  %v7562_v8 = vpop.f32.mrf.mxu3 }
 0x12f   : > { %v7523_v41 = vld [vmem:[#allocation2 + $0x8] sm:$0xf0]  ;;  %v687_v30 = vsel %vm6152_vm2, %v682_v19, %v7399_v53  ;;  %814 = vst.msk [vmem:[#allocation2 + $0x98] sm:$0xf] %vm794_vm8, %v737_v48  ;;  %v831_v42 = vld [vmem:[%s6141_s5 + $0x10] sm:$0xf] }
 0x130   : > { %v830_v7 = vld [vmem:[%s6141_s5 + $0xc] sm:$0xe]  ;;  %3991 = vst.msk [vmem:[#allocation2 + $0xc] sm:$0xf] %vm230_vm4, %v3852_v18  ;;  %758 = vrot.lane.b32.xlu2 %v687_v30, %s6060_s6  ;;  %v3453_v33 = vsel %vm6152_vm2, %v3448_v12, %v3452_v60  ;;  %v832_v36 = vld [vmem:[%s6141_s5 + $0x14] sm:$0x1] }
 0x131   : > { %3168 = vst.msk [vmem:[#allocation2 + $0x50] sm:$0xf] %vm230_vm4, %v5447_v10  ;;  %v4870_v53 = vrot.slane %v830_v7, 9  ;;  %v935_v37 = vrot.slane %v831_v42, 5  ;;  %v938_v61 = vrot.slane %v832_v36, 5  ;;  %v2124_v21 = vrot.slane %v2123_v50, 4 }
 0x132   : > { %3169 = vst.msk [vmem:[#allocation2 + $0x58] sm:$0xf] %vm230_vm4, %v5448_v32  ;;  %v5160_v49 = vld [vmem:[%s6141_s5 + $0x18] sm:$0xe]  ;;  %v5161_v39 = vld [vmem:[%s6141_s5 + $0x1c] sm:$0xf] }
 0x133   : > { %3656 = vrot.lane.b32.xlu0 %v3453_v33, %s6060_s6  ;;  %v936_v26 = vsel %vm6313_vm6, %v4870_v53, %v935_v37  ;;  %v937_v43 = vrot.slane %v935_v37, 4  ;;  %v5162_v34 = vld [vmem:[%s6141_s5 + $0x20] sm:$0x1]  ;;  %v2363_v62 = vrot.slane %v5161_v39, 5  ;;  %v5096_v6 = vld [vmem:[%s6141_s5 + $0x7c] sm:$0xf]  ;;  %v3631_v53 = vpop.permute.xlu1 %3630 }
 0x134   : > { %1072 = vst.msk [vmem:[#allocation2 + $0x14] sm:$0xf] %vm230_vm4, %v936_v26  ;;  %v5890_v51 = vld [vmem:[#allocation2 + $0x4] sm:$0xf]  ;;  %v5206_v35 = vrot.slane %v5160_v49, 9  ;;  %v2366_v29 = vrot.slane %v5162_v34, 5  ;;  %v3633_v26 = vpop.permute.xlu2 %3632 }
 0x135   : > { %v939_v24 = vsel %vm6313_vm6, %v937_v43, %v938_v61  ;;  %v2365_v54 = vrot.slane %v2363_v62, 4  ;;  %v5520_v59 = vld [vmem:[%s6141_s5 + $0x24] sm:$0xe]  ;;  %v5521_v57 = vld [vmem:[%s6141_s5 + $0x28] sm:$0xf]  ;;  %v3424_v19 = vrot.slane %v3423_v52, 4 }
 0x136   : > { %v7552_v9 = vld [vmem:[#allocation2 + $0x94] sm:$0xf0]  ;;  %1073 = vst.msk [vmem:[#allocation2 + $0x1c] sm:$0xf] %vm230_vm4, %v939_v24  ;;  %v5156_v14 = vld [vmem:[%s6141_s5 + $0xc8] sm:$0x1]  ;;  %v2364_v10 = vsel %vm6313_vm6, %v5206_v35, %v2363_v62 }
 0x137   : > { %v5609_v60 = vld [vmem:[#allocation2 + $0x8] sm:$0xf0]  ;;  %1685 = vst.msk [vmem:[#allocation2 + $0x98] sm:$0xf] %vm230_vm4, %v5096_v6  ;;  %v5492_v5 = vld [vmem:[%s6141_s5 + $0x74] sm:$0x1]  ;;  %v2367_v7 = vsel %vm6313_vm6, %v2365_v54, %v2366_v29 }
 0x138   : > { %v5612_v46 = vor.u32 %v5890_v51, %v5609_v60  ;;  %v2126_v18 = vshll.u32 %v5156_v14, 16  ;;  %v3426_v48 = vshll.u32 %v5492_v5, 16  ;;  %2245 = vst.msk [vmem:[#allocation2 + $0x98] sm:$0xf] %vm794_vm8, %v2169_v1  ;;  %v5522_v15 = vld [vmem:[%s6141_s5 + $0x2c] sm:$0x1]  ;;  %v741_v60 = vpop.permute.xlu0 %740 }
 0x139   : > { %v5566_v12 = vrot.slane %v5520_v59, 9  ;;  %v3855_v32 = vrot.slane %v5521_v57, 5  ;;  %v218_v16 = vld [vmem:[%s6141_s5 + $0x78] sm:$0xf]  ;;  %2244 = vst.msk [vmem:[#allocation2 + $0x90] sm:$0xf] %vm794_vm8, %v2167_v4  ;;  %v7600_v59 = vpop.f32.mrf.mxu1 }
 0x13a   : > { %5781 = vmatmul.msk.bf16.vlgmr.msrb.gmra.mxu3 %vm1374_vm7, %v5612_v46  ;;  %v2128_v33 = vrot.slane %v2126_v18, 5  ;;  %v3428_v42 = vrot.slane %v3426_v48, 5  ;;  %251 = vst.msk [vmem:[#allocation2 + $0xa0] sm:$0xf] %vm230_vm4, %v218_v16  ;;  %v5615_v36 = vld [vmem:[#allocation2 + $0x10] sm:$0xf]  ;;  %v7603_v46 = vpop.f32.mrf.mxu3 }
 0x13b   : > { %v7571_v30 = vld [vmem:[#allocation2 + $0x14] sm:$0xf]  ;;  %v5893_v47 = vld [vmem:[#allocation2 + $0x14] sm:$0xf0]  ;;  %815 = vst.msk [vmem:[#allocation2 + $0xa0] sm:$0xf] %vm794_vm8, %v739_v17  ;;  %v3856_v54 = vsel %vm6313_vm6, %v5566_v12, %v3855_v32 }
 0x13c   : > { %2500 = vst.msk [vmem:[#allocation2 + $0x14] sm:$0xf] %vm230_vm4, %v2364_v10  ;;  %v2129_v61 = vsel %vm6152_vm2, %v2124_v21, %v2128_v33  ;;  %v3429_v49 = vsel %vm6152_vm2, %v3424_v19, %v3428_v42  ;;  %v5616_v39 = vor.u32 %v5893_v47, %v5615_v36  ;;  %v5496_v1 = vld [vmem:[%s6141_s5 + $0x84] sm:$0xf]  ;;  %v7589_v43 = vld [vmem:[%s6141_s5 + $0x88] sm:$0xf]  ;;  %v4944_v36 = vor.u32 %v7344_v63, %v7338_v27  ;;  %v743_v63 = vpop.permute.xlu2 %742 }
 0x13d   : > { %v7577_v37 = vld [vmem:[#allocation2 + $0x18] sm:$0xf0]  ;;  %2192 = vrot.lane.b32.xlu1 %v2129_v61, %s6060_s6  ;;  %3652 = vrot.lane.b32.xlu2 %v3429_v49, %s6060_s6  ;;  %v3455_v34 = vshrl.u32 %v5496_v1, 16  ;;  %v3458_v62 = vshll.u32 %v5496_v1, 16  ;;  %v3857_v6 = vrot.slane %v3855_v32, 4  ;;  %v3858_v50 = vrot.slane %v5522_v15, 5 }
 0x13e   : > { %2501 = vst.msk [vmem:[#allocation2 + $0x1c] sm:$0xf] %vm230_vm4, %v2367_v7  ;;  %4356 = vmatmul.bf16.gmra.mxu1 %v5616_v39  ;;  %v3464_v52 = vshll.u32 %v7589_v43, 16  ;;  %v5097_v17 = vld [vmem:[%s6141_s5 + $0x84] sm:$0xf]  ;;  %v2173_v39 = vpop.permute.xlu1 %2172  ;;  %1466 = vmatmul.bf16.gmra.mxu0 %v4944_v36 }
 0x13f   : > { %3722 = vst.msk [vmem:[#allocation2 + $0x20] sm:$0xf] %vm794_vm8, %v3631_v53  ;;  %v3457_v51 = vrot.slane %v3455_v34, 4  ;;  %v3460_v24 = vrot.slane %v3458_v62, 5  ;;  %v219_v35 = vld [vmem:[%s6141_s5 + $0x7c] sm:$0xf]  ;;  %v3859_v10 = vsel %vm6313_vm6, %v3857_v6, %v3858_v50 }
 0x140   : > { %3723 = vst.msk [vmem:[#allocation2 + $0x28] sm:$0xf] %vm794_vm8, %v3633_v26  ;;  %v7598_v29 = vrot.slane %v3464_v52, 5  ;;  %v5295_v57 = vld [vmem:[#allocation2 + $0x60] sm:$0xf] }
 0x141   : > { %252 = vst.msk [vmem:[#allocation2 + $0xa8] sm:$0xf] %vm230_vm4, %v219_v35  ;;  %v3461_v4 = vor.u32 %v3460_v24, %v3457_v51  ;;  %v5859_v14 = vld [vmem:[#allocation2 + $0x64] sm:$0xf0]  ;;  %v5449_v21 = vld [vmem:[%s6141_s5 + $0x60] sm:$0xf] }
 0x142   : > { %816 = vst.msk [vmem:[#allocation2 + $0xa8] sm:$0xf] %vm794_vm8, %v741_v60  ;;  %v5296_v18 = vor.u32 %v5859_v14, %v5295_v57  ;;  %v5450_v19 = vld [vmem:[%s6141_s5 + $0x64] sm:$0xf]  ;;  %v7614_v48 = vld [vmem:[#allocation2 + $0xa0] sm:$0xf]  ;;  %v7646_v35 = vpop.f32.mrf.mxu3  ;;  %v2171_v14 = vpop.permute.xlu0 %2170 }
 0x143   : > { %v7607_v5 = vld [vmem:[#allocation2 + $0x14] sm:$0xf]  ;;  %3170 = vst.msk [vmem:[#allocation2 + $0x60] sm:$0xf] %vm230_vm4, %v5449_v21  ;;  %v3462_v15 = vrot.slane %v3461_v4, 4 }
 0x144   : > { %3992 = vst.msk [vmem:[#allocation2 + $0x14] sm:$0xf] %vm230_vm4, %v3856_v54  ;;  %v5098_v32 = vld [vmem:[%s6141_s5 + $0x88] sm:$0xf]  ;;  %2889 = vmatmul.bf16.gmra.mxu2 %v5296_v18  ;;  %v833_v16 = vld [vmem:[%s6141_s5 + $0x18] sm:$0xe] }
 0x145   : > { %v7616_v12 = vld [vmem:[#allocation2 + $0x18] sm:$0xf0]  ;;  %1686 = vst.msk [vmem:[#allocation2 + $0xa0] sm:$0xf] %vm230_vm4, %v5097_v17  ;;  %v3467_v7 = vsel %vm6152_vm2, %v3462_v15, %v7598_v29  ;;  %v835_v42 = vld [vmem:[%s6141_s5 + $0x20] sm:$0x1]  ;;  %v7642_v17 = vpop.f32.mrf.mxu1 }
 0x146   : > { %3993 = vst.msk [vmem:[#allocation2 + $0x1c] sm:$0xf] %vm230_vm4, %v3859_v10  ;;  %v834_v33 = vld [vmem:[%s6141_s5 + $0x1c] sm:$0xf]  ;;  %3658 = vrot.lane.b32.xlu1 %v3467_v7, %s6060_s6  ;;  %v4871_v47 = vrot.slane %v833_v16, 9  ;;  %v945_v61 = vrot.slane %v835_v42, 5 }
 0x147   : > { %3171 = vst.msk [vmem:[#allocation2 + $0x68] sm:$0xf] %vm230_vm4, %v5450_v19  ;;  %v942_v53 = vrot.slane %v834_v33, 5  ;;  %v5164_v49 = vld [vmem:[%s6141_s5 + $0x28] sm:$0xf] }
 0x148   : > { %v5163_v62 = vld [vmem:[%s6141_s5 + $0x24] sm:$0xe]  ;;  %v2370_v27 = vrot.slane %v5164_v49, 5  ;;  %v5165_v6 = vld [vmem:[%s6141_s5 + $0x2c] sm:$0x1] }
 0x149   : > { %v7632_v1 = vld [vmem:[#allocation2 + $0xa4] sm:$0xf0]  ;;  %v943_v26 = vsel %vm6313_vm6, %v4871_v47, %v942_v53  ;;  %v944_v34 = vrot.slane %v942_v53, 4  ;;  %v5207_v51 = vrot.slane %v5163_v62, 9  ;;  %v5524_v24 = vld [vmem:[%s6141_s5 + $0x34] sm:$0xf] }
 0x14a   : > { %1687 = vst.msk [vmem:[#allocation2 + $0xa8] sm:$0xf] %vm230_vm4, %v5098_v32  ;;  %v2372_v60 = vrot.slane %v2370_v27, 4  ;;  %v2373_v57 = vrot.slane %v5165_v6, 5  ;;  %v5493_v4 = vld [vmem:[%s6141_s5 + $0x78] sm:$0xf]  ;;  %v3635_v6 = vpop.permute.xlu1 %3634 }
 0x14b   : > { %v5892_v50 = vld [vmem:[#allocation2 + $0x14] sm:$0xf]  ;;  %v946_v52 = vsel %vm6313_vm6, %v944_v34, %v945_v61  ;;  %1074 = vst.msk [vmem:[#allocation2 + $0x24] sm:$0xf] %vm230_vm4, %v943_v26  ;;  %v5523_v10 = vld [vmem:[%s6141_s5 + $0x30] sm:$0xe]  ;;  %v2371_v7 = vsel %vm6313_vm6, %v5207_v51, %v2370_v27 }
 0x14c   : > { %1075 = vst.msk [vmem:[#allocation2 + $0x2c] sm:$0xf] %vm230_vm4, %v946_v52  ;;  %v3431_v18 = vshrl.u32 %v5493_v4, 16  ;;  %v3434_v19 = vshll.u32 %v5493_v4, 16  ;;  %v5525_v15 = vld [vmem:[%s6141_s5 + $0x38] sm:$0x1]  ;;  %v2374_v47 = vsel %vm6313_vm6, %v2372_v60, %v2373_v57 }
 0x14d   : > { %v5617_v54 = vld [vmem:[#allocation2 + $0x18] sm:$0xf0]  ;;  %2247 = vst.msk [vmem:[#allocation2 + $0xa8] sm:$0xf] %vm794_vm8, %v2173_v39  ;;  %v3862_v32 = vrot.slane %v5524_v24, 5  ;;  %v5567_v52 = vrot.slane %v5523_v10, 9  ;;  %v3637_v24 = vpop.permute.xlu2 %3636 }
 0x14e   : > { %v5620_v21 = vor.u32 %v5892_v50, %v5617_v54  ;;  %v220_v16 = vld [vmem:[%s6141_s5 + $0x84] sm:$0xf]  ;;  %2246 = vst.msk [vmem:[#allocation2 + $0xa0] sm:$0xf] %vm794_vm8, %v2171_v14  ;;  %v3433_v33 = vrot.slane %v3431_v18, 4  ;;  %v3436_v42 = vrot.slane %v3434_v19, 5  ;;  %v7670_v18 = vpop.f32.mrf.mxu1 }
 0x14f   : > { %253 = vst.msk [vmem:[#allocation2 + $0xb0] sm:$0xf] %vm230_vm4, %v220_v16  ;;  %v5623_v36 = vld [vmem:[#allocation2 + $0x20] sm:$0xf]  ;;  %v5895_v53 = vld [vmem:[#allocation2 + $0x24] sm:$0xf0] }
 0x150   : > { %5782 = vmatmul.msk.bf16.gmra.mxu3 %vm1374_vm7, %v5620_v21  ;;  %817 = vst.msk [vmem:[#allocation2 + $0xb0] sm:$0xf] %vm794_vm8, %v743_v63  ;;  %v5500_v61 = vld [vmem:[%s6141_s5 + $0x94] sm:$0xf]  ;;  %v3437_v39 = vor.u32 %v3436_v42, %v3433_v33  ;;  %v5624_v26 = vor.u32 %v5895_v53, %v5623_v36  ;;  %v5501_v34 = vld [vmem:[%s6141_s5 + $0x98] sm:$0x1]  ;;  %v7677_v33 = vpop.f32.mrf.mxu3  ;;  %v3863_v42 = vsel %vm6313_vm6, %v5567_v52, %v3862_v32  ;;  %v745_v36 = vpop.permute.xlu0 %744 }
 0x151   : > { %v3488_v62 = vshll.u32 %v5500_v61, 16  ;;  %v3492_v27 = vshrl.u32 %v5500_v61, 16  ;;  %v3498_v51 = vshll.u32 %v5501_v34, 16  ;;  %v3865_v63 = vrot.slane %v5525_v15, 5  ;;  %v5499_v21 = vld [vmem:[%s6141_s5 + $0x90] sm:$0xf] }
 0x152   : > { %v7662_v49 = vld [vmem:[#allocation2 + $0x24] sm:$0xf]  ;;  %v3438_v54 = vrot.slane %v3437_v39, 4  ;;  %4361 = vmatmul.bf16.gmra.mxu1 %v5624_v26  ;;  %v3864_v4 = vrot.slane %v3862_v32, 4  ;;  %3724 = vst.msk [vmem:[#allocation2 + $0x30] sm:$0xf] %vm794_vm8, %v3635_v6  ;;  %v4952_v52 = vor.u32 %v7448_v45, %v7402_v28 }
 0x153   : > { %v7665_v50 = vld [vmem:[#allocation2 + $0x28] sm:$0xf0]  ;;  %2502 = vst.msk [vmem:[#allocation2 + $0x24] sm:$0xf] %vm230_vm4, %v2371_v7  ;;  %v3490_v60 = vrot.slane %v3488_v62, 5  ;;  %v3494_v57 = vrot.slane %v3492_v27, 4 }
 0x154   : > { %2503 = vst.msk [vmem:[#allocation2 + $0x2c] sm:$0xf] %vm230_vm4, %v2374_v47  ;;  %v3500_v14 = vrot.slane %v3498_v51, 5  ;;  %v3443_v10 = vsel %vm6152_vm2, %v3438_v54, %v7500_v55  ;;  %v5099_v19 = vld [vmem:[%s6141_s5 + $0x90] sm:$0xf]  ;;  %v3479_v7 = vshrl.u32 %v5499_v21, 16  ;;  %v3866_v32 = vsel %vm6313_vm6, %v3864_v4, %v3865_v63  ;;  %1471 = vmatmul.bf16.gmra.mxu0 %v4952_v52 }
 0x155   : > { %v3495_v16 = vor.u32 %v3494_v57, %v3490_v60  ;;  %v3482_v15 = vshll.u32 %v5499_v21, 16  ;;  %8543 = vst [vmem:[#allocation7_spill] sm:$0xff] %v7677_v33  ;;  %3654 = vrot.lane.b32.xlu2 %v3443_v10, %s6060_s6  ;;  %v221_v47 = vld [vmem:[%s6141_s5 + $0x88] sm:$0xf]  ;;  %v5303_v53 = vld [vmem:[#allocation2 + $0x70] sm:$0xf] }
 0x156   : > { %3725 = vst.msk [vmem:[#allocation2 + $0x38] sm:$0xf] %vm794_vm8, %v3637_v24  ;;  %v5861_v61 = vld [vmem:[#allocation2 + $0x74] sm:$0xf0]  ;;  %v3481_v26 = vrot.slane %v3479_v7, 4  ;;  %v3468_v27 = vshrl.u32 %v7589_v43, 16 }
 0x157   : > { %v7684_v55 = vld [vmem:[#allocation2 + $0xb0] sm:$0xf]  ;;  %v3496_v39 = vrot.slane %v3495_v16, 4  ;;  %v3484_v34 = vrot.slane %v3482_v15, 5  ;;  %v5304_v62 = vor.u32 %v5861_v61, %v5303_v53  ;;  %v5451_v6 = vld [vmem:[%s6141_s5 + $0x6c] sm:$0xf]  ;;  %v2177_v15 = vpop.permute.xlu1 %2176  ;;  %v7717_v53 = vpop.f32.mrf.mxu1 }
 0x158   : > { %1688 = vst.msk [vmem:[#allocation2 + $0xb0] sm:$0xf] %vm230_vm4, %v5099_v19  ;;  %v5452_v43 = vld [vmem:[%s6141_s5 + $0x70] sm:$0xf]  ;;  %v836_v57 = vld [vmem:[%s6141_s5 + $0x24] sm:$0xe]  ;;  %v747_v61 = vpop.permute.xlu2 %746 }
 0x159   : > { %v3501_v24 = vsel %vm6152_vm2, %v3496_v39, %v3500_v14  ;;  %v3485_v54 = vor.u32 %v3484_v34, %v3481_v26  ;;  %254 = vst.msk [vmem:[#allocation2 + $0xb8] sm:$0xf] %vm230_vm4, %v221_v47  ;;  %2894 = vmatmul.bf16.gmra.mxu2 %v5304_v62  ;;  %v837_v28 = vld [vmem:[%s6141_s5 + $0x28] sm:$0xf]  ;;  %v838_v4 = vld [vmem:[%s6141_s5 + $0x2c] sm:$0x1]  ;;  %v7721_v26 = vpop.f32.mrf.mxu3 }
 0x15a   : > { %v7693_v51 = vld [vmem:[#allocation2 + $0x24] sm:$0xf]  ;;  %3664 = vrot.lane.b32.xlu1 %v3501_v24, %s6060_s6  ;;  %v4872_v14 = vrot.slane %v836_v57, 9  ;;  %818 = vst.msk [vmem:[#allocation2 + $0xb8] sm:$0xf] %vm794_vm8, %v745_v36  ;;  %v949_v21 = vrot.slane %v837_v28, 5 }
 0x15b   : > { %v7700_v63 = vld [vmem:[#allocation2 + $0x28] sm:$0xf0]  ;;  %3994 = vst.msk [vmem:[#allocation2 + $0x24] sm:$0xf] %vm230_vm4, %v3863_v42  ;;  %v3486_v45 = vrot.slane %v3485_v54, 4  ;;  %v952_v10 = vrot.slane %v838_v4, 5 }
 0x15c   : > { %3995 = vst.msk [vmem:[#allocation2 + $0x2c] sm:$0xf] %vm230_vm4, %v3866_v32  ;;  %v5166_v16 = vld [vmem:[%s6141_s5 + $0x30] sm:$0xe]  ;;  %v5167_v7 = vld [vmem:[%s6141_s5 + $0x34] sm:$0xf]  ;;  %v950_v42 = vsel %vm6313_vm6, %v4872_v14, %v949_v21 }
 0x15d   : > { %v3491_v19 = vsel %vm6152_vm2, %v3486_v45, %v3490_v60  ;;  %3172 = vst.msk [vmem:[#allocation2 + $0x70] sm:$0xf] %vm230_vm4, %v5451_v6  ;;  %v951_v36 = vrot.slane %v949_v21, 4  ;;  %v2377_v47 = vrot.slane %v5167_v7, 5  ;;  %v5168_v60 = vld [vmem:[%s6141_s5 + $0x38] sm:$0x1]  ;;  %v2175_v6 = vpop.permute.xlu0 %2174 }
 0x15e   : > { %3662 = vrot.lane.b32.xlu0 %v3491_v19, %s6060_s6  ;;  %3173 = vst.msk [vmem:[#allocation2 + $0x78] sm:$0xf] %vm230_vm4, %v5452_v43  ;;  %v3470_v39 = vrot.slane %v3468_v27, 4  ;;  %v5208_v62 = vrot.slane %v5166_v16, 9  ;;  %v5527_v32 = vld [vmem:[%s6141_s5 + $0x40] sm:$0xf]  ;;  %v7729_v43 = vpop.f32.mrf.mxu0 }
 0x15f   : > { %8544 = vst [vmem:[#allocation8_spill] sm:$0xff] %v7717_v53  ;;  %v953_v34 = vsel %vm6313_vm6, %v951_v36, %v952_v10  ;;  %v5100_v24 = vld [vmem:[%s6141_s5 + $0x94] sm:$0xf]  ;;  %v2379_v27 = vrot.slane %v2377_v47, 4  ;;  %v2380_v28 = vrot.slane %v5168_v60, 5  ;;  %v3869_v10 = vrot.slane %v5527_v32, 5 }
 0x160   : > { %1076 = vst.msk [vmem:[#allocation2 + $0x34] sm:$0xf] %vm230_vm4, %v950_v42  ;;  %v3471_v54 = vor.u32 %v3470_v39, %v7598_v29  ;;  %v5526_v45 = vld [vmem:[%s6141_s5 + $0x3c] sm:$0xe]  ;;  %v5498_v4 = vld [vmem:[%s6141_s5 + $0x8c] sm:$0x1]  ;;  %v2378_v16 = vsel %vm6313_vm6, %v5208_v62, %v2377_v47 }
 0x161   : > { %8545 = vst [vmem:[#allocation9_spill] sm:$0xff] %v7721_v26  ;;  %v7733_v21 = vld [vmem:[#allocation2 + $0xb4] sm:$0xf0]  ;;  %v222_v19 = vld [vmem:[%s6141_s5 + $0x90] sm:$0xf]  ;;  %v3474_v42 = vshll.u32 %v5498_v4, 16  ;;  %v2381_v32 = vsel %vm6313_vm6, %v2379_v27, %v2380_v28  ;;  %v3639_v4 = vpop.permute.xlu1 %3638 }
 0x162   : > { %v5894_v52 = vld [vmem:[#allocation2 + $0x24] sm:$0xf]  ;;  %1077 = vst.msk [vmem:[#allocation2 + $0x3c] sm:$0xf] %vm230_vm4, %v953_v34  ;;  %v3472_v29 = vrot.slane %v3471_v54, 4 }
 0x163   : > { %8546 = vst [vmem:[#allocation10_spill] sm:$0xff] %v7729_v43  ;;  %v5625_v57 = vld [vmem:[#allocation2 + $0x28] sm:$0xf0]  ;;  %v5528_v7 = vld [vmem:[%s6141_s5 + $0x44] sm:$0x1] }
 0x164   : > { %v5628_v14 = vor.u32 %v5894_v52, %v5625_v57  ;;  %1689 = vst.msk [vmem:[#allocation2 + $0xb8] sm:$0xf] %vm230_vm4, %v5100_v24  ;;  %v5631_v36 = vld [vmem:[#allocation2 + $0x30] sm:$0xf]  ;;  %v5897_v60 = vld [vmem:[#allocation2 + $0x34] sm:$0xf0] }
 0x165   : > { %2249 = vst.msk [vmem:[#allocation2 + $0xb8] sm:$0xf] %vm794_vm8, %v2177_v15  ;;  %v5503_v39 = vld [vmem:[%s6141_s5 + $0xa0] sm:$0xf]  ;;  %v3476_v52 = vrot.slane %v3474_v42, 5  ;;  %v5632_v47 = vor.u32 %v5897_v60, %v5631_v36  ;;  %v5568_v24 = vrot.slane %v5526_v45, 9  ;;  %v3641_v42 = vpop.permute.xlu2 %3640  ;;  %v7761_v36 = vpop.f32.mrf.mxu3 }
 0x166   : > { %5783 = vmatmul.msk.bf16.gmra.mxu3 %vm1374_vm7, %v5628_v14  ;;  %255 = vst.msk [vmem:[#allocation2 + $0xc0] sm:$0xf] %vm230_vm4, %v222_v19  ;;  %v3512_v62 = vshll.u32 %v5503_v39, 16  ;;  %v5504_v54 = vld [vmem:[%s6141_s5 + $0xa4] sm:$0x1]  ;;  %v3516_v57 = vshrl.u32 %v5503_v39, 16  ;;  %v7757_v19 = vpop.f32.mrf.mxu1  ;;  %v749_v60 = vpop.permute.xlu0 %748 }
 0x167   : > { %v7743_v34 = vld [vmem:[#allocation2 + $0x34] sm:$0xf]  ;;  %v3477_v15 = vsel %vm6152_vm2, %v3472_v29, %v3476_v52  ;;  %819 = vst.msk [vmem:[#allocation2 + $0xc0] sm:$0xf] %vm794_vm8, %v747_v61  ;;  %4366 = vmatmul.bf16.gmra.mxu1 %v5632_v47  ;;  %v3522_v28 = vshll.u32 %v5504_v54, 16  ;;  %v3872_v45 = vrot.slane %v5528_v7, 5 }
 0x168   : > { %2504 = vst.msk [vmem:[#allocation2 + $0x34] sm:$0xf] %vm230_vm4, %v2378_v16  ;;  %v7755_v27 = vrot.slane %v3512_v62, 5  ;;  %3660 = vrot.lane.b32.xlu2 %v3477_v15, %s6060_s6  ;;  %v3518_v16 = vrot.slane %v3516_v57, 4  ;;  %v3871_v29 = vrot.slane %v3869_v10, 4  ;;  %v3870_v62 = vsel %vm6313_vm6, %v5568_v24, %v3869_v10 }
 0x169   : > { %v7750_v14 = vld [vmem:[#allocation2 + $0x38] sm:$0xf0]  ;;  %8547 = vst [vmem:[#allocation11_spill] sm:$0xff] %v7757_v19  ;;  %v3524_v61 = vrot.slane %v3522_v28, 5  ;;  %v223_v39 = vld [vmem:[%s6141_s5 + $0x94] sm:$0xf]  ;;  %v4960_v57 = vor.u32 %v7552_v9, %v7513_v11 }
 0x16a   : > { %2505 = vst.msk [vmem:[#allocation2 + $0x3c] sm:$0xf] %vm230_vm4, %v2381_v32  ;;  %v3519_v52 = vor.u32 %v3518_v16, %v7755_v27  ;;  %v7767_v32 = vpop.f32.mrf.mxu0  ;;  %v5311_v7 = vld [vmem:[#allocation2 + $0x80] sm:$0xf]  ;;  %v5863_v47 = vld [vmem:[#allocation2 + $0x84] sm:$0xf0] }
 0x16b   : > { %8548 = vst [vmem:[#allocation12_spill] sm:$0xff] %v7761_v36  ;;  %v5101_v54 = vld [vmem:[%s6141_s5 + $0x9c] sm:$0xf]  ;;  %v839_v28 = vld [vmem:[%s6141_s5 + $0x30] sm:$0xe]  ;;  %1476 = vmatmul.bf16.gmra.mxu0 %v4960_v57 }
 0x16c   : > { %2248 = vst.msk [vmem:[#allocation2 + $0xb0] sm:$0xf] %vm794_vm8, %v2175_v6  ;;  %v5312_v6 = vor.u32 %v5863_v47, %v5311_v7  ;;  %v3520_v15 = vrot.slane %v3519_v52, 4  ;;  %v5454_v10 = vld [vmem:[%s6141_s5 + $0x7c] sm:$0xf]  ;;  %v7798_v47 = vpop.f32.mrf.mxu2 }
 0x16d   : > { %3726 = vst.msk [vmem:[#allocation2 + $0x40] sm:$0xf] %vm794_vm8, %v3639_v4  ;;  %v5453_v4 = vld [vmem:[%s6141_s5 + $0x78] sm:$0xf]  ;;  %v840_v24 = vld [vmem:[%s6141_s5 + $0x34] sm:$0xf] }
 0x16e   : > { %8549 = vst [vmem:[#allocation13_spill] sm:$0xff] %v7767_v32  ;;  %v3873_v32 = vsel %vm6313_vm6, %v3871_v29, %v3872_v45  ;;  %2899 = vmatmul.bf16.gmra.mxu2 %v5312_v6  ;;  %v7786_v11 = vld [vmem:[#allocation2 + $0xc0] sm:$0xf]  ;;  %v3525_v9 = vsel %vm6152_vm2, %v3520_v15, %v3524_v61  ;;  %v4873_v45 = vrot.slane %v839_v28, 9  ;;  %v956_v29 = vrot.slane %v840_v24, 5  ;;  %v7804_v57 = vpop.f32.mrf.mxu1  ;;  %v751_v15 = vpop.permute.xlu2 %750 }
 0x16f   : > { %3727 = vst.msk [vmem:[#allocation2 + $0x48] sm:$0xf] %vm794_vm8, %v3641_v42  ;;  %v7778_v16 = vld [vmem:[#allocation2 + $0x34] sm:$0xf]  ;;  %v841_v42 = vld [vmem:[%s6141_s5 + $0x38] sm:$0x1]  ;;  %3668 = vrot.lane.b32.xlu0 %v3525_v9, %s6060_s6  ;;  %v7808_v24 = vpop.f32.mrf.mxu3 }
 0x170   : > { %256 = vst.msk [vmem:[#allocation2 + $0xc8] sm:$0xf] %vm230_vm4, %v223_v39  ;;  %v959_v52 = vrot.slane %v841_v42, 5  ;;  %v5169_v7 = vld [vmem:[%s6141_s5 + $0x3c] sm:$0xe]  ;;  %v957_v61 = vsel %vm6313_vm6, %v4873_v45, %v956_v29  ;;  %v958_v6 = vrot.slane %v956_v29, 4  ;;  %v2179_v42 = vpop.permute.xlu0 %2178 }
 0x171   : > { %8550 = vst [vmem:[#allocation14_spill] sm:$0xff] %v7778_v16  ;;  %v7791_v39 = vld [vmem:[#allocation2 + $0x38] sm:$0xf0]  ;;  %v5530_v43 = vld [vmem:[%s6141_s5 + $0x4c] sm:$0xf] }
 0x172   : > { %820 = vst.msk [vmem:[#allocation2 + $0xc8] sm:$0xf] %vm794_vm8, %v749_v60  ;;  %v5102_v60 = vld [vmem:[%s6141_s5 + $0xa0] sm:$0xf]  ;;  %v960_v9 = vsel %vm6313_vm6, %v958_v6, %v959_v52  ;;  %v5103_v19 = vld [vmem:[%s6141_s5 + $0xa8] sm:$0xf] }
 0x173   : > { %3996 = vst.msk [vmem:[#allocation2 + $0x34] sm:$0xf] %vm230_vm4, %v3870_v62  ;;  %v2181_v62 = vpop.permute.xlu1 %2180  ;;  %v226_v16 = vld [vmem:[%s6141_s5 + $0xa8] sm:$0xf] }
 0x174   : > { %8551 = vst [vmem:[#allocation15_spill] sm:$0xff] %v7791_v39 }
 0x175   : > { %1690 = vst.msk [vmem:[#allocation2 + $0xc0] sm:$0xf] %vm230_vm4, %v5101_v54  ;;  %v5170_v54 = vld [vmem:[%s6141_s5 + $0x40] sm:$0xf] }
 0x176   : > { %3997 = vst.msk [vmem:[#allocation2 + $0x3c] sm:$0xf] %vm230_vm4, %v3873_v32  ;;  %v5171_v32 = vld [vmem:[%s6141_s5 + $0x44] sm:$0x1]  ;;  %v2384_v28 = vrot.slane %v5170_v54, 5 }
 0x177   : > { %8552 = vst [vmem:[#allocation16_spill] sm:$0xff] %v7798_v47  ;;  %v7816_v47 = vpop.f32.mrf.mxu0 }
 0x178   : > { %3174 = vst.msk [vmem:[#allocation2 + $0x80] sm:$0xf] %vm230_vm4, %v5453_v4  ;;  %v5209_v4 = vrot.slane %v5169_v7, 9  ;;  %v2386_v29 = vrot.slane %v2384_v28, 4 }
 0x179   : > { %8553 = vst [vmem:[#allocation17_spill] sm:$0xff] %v7804_v57  ;;  %v7813_v45 = vld [vmem:[#allocation2 + $0xc4] sm:$0xf0]  ;;  %v3876_v57 = vrot.slane %v5530_v43, 5  ;;  %v7835_v43 = vpop.f32.mrf.mxu2 }
 0x17a   : > { %3175 = vst.msk [vmem:[#allocation2 + $0x88] sm:$0xf] %vm230_vm4, %v5454_v10  ;;  %v2387_v10 = vrot.slane %v5171_v32, 5  ;;  %v5896_v54 = vld [vmem:[#allocation2 + $0x34] sm:$0xf]  ;;  %v2385_v6 = vsel %vm6313_vm6, %v5209_v4, %v2384_v28 }
 0x17b   : > { %8554 = vst [vmem:[#allocation18_spill] sm:$0xff] %v7808_v24  ;;  %v5531_v24 = vld [vmem:[%s6141_s5 + $0x50] sm:$0x1]  ;;  %v5505_v4 = vld [vmem:[%s6141_s5 + $0xa8] sm:$0xf] }
 0x17c   : > { %1078 = vst.msk [vmem:[#allocation2 + $0x44] sm:$0xf] %vm230_vm4, %v957_v61  ;;  %v5529_v61 = vld [vmem:[%s6141_s5 + $0x48] sm:$0xe]  ;;  %v2388_v32 = vsel %vm6313_vm6, %v2386_v29, %v2387_v10  ;;  %v7841_v29 = vld [vmem:[%s6141_s5 + $0xac] sm:$0xf]  ;;  %v7843_v10 = vpop.f32.mrf.mxu1 }
 0x17d   : > { %1079 = vst.msk [vmem:[#allocation2 + $0x4c] sm:$0xf] %vm230_vm4, %v960_v9  ;;  %v5633_v52 = vld [vmem:[#allocation2 + $0x38] sm:$0xf0]  ;;  %v3879_v36 = vrot.slane %v5531_v24, 5 }
 0x17e   : > { %8555 = vst [vmem:[#allocation19_spill] sm:$0xff] %v7816_v47  ;;  %v5636_v7 = vor.u32 %v5896_v54, %v5633_v52  ;;  %v224_v9 = vld [vmem:[%s6141_s5 + $0x9c] sm:$0xf]  ;;  %v3643_v54 = vpop.permute.xlu1 %3642  ;;  %v3645_v52 = vpop.permute.xlu2 %3644  ;;  %v5865_v24 = vld [vmem:[#allocation2 + $0x94] sm:$0xf0] }
 0x17f   : > { %1691 = vst.msk [vmem:[#allocation2 + $0xc8] sm:$0xf] %vm230_vm4, %v5102_v60  ;;  %v5639_v60 = vld [vmem:[#allocation2 + $0x40] sm:$0xf] }
 0x180   : > { %2251 = vst.msk [vmem:[#allocation2 + $0xc8] sm:$0xf] %vm794_vm8, %v2181_v62  ;;  %v5899_v62 = vld [vmem:[#allocation2 + $0x44] sm:$0xf0]  ;;  %5784 = vmatmul.msk.bf16.gmra.mxu3 %vm1374_vm7, %v5636_v7  ;;  %v5569_v7 = vrot.slane %v5529_v61, 9  ;;  %v7855_v61 = vpop.f32.mrf.mxu0 }
 0x181   : > { %2250 = vst.msk [vmem:[#allocation2 + $0xc0] sm:$0xf] %vm794_vm8, %v2179_v42  ;;  %v5640_v28 = vor.u32 %v5899_v62, %v5639_v60  ;;  %v3536_v60 = vshll.u32 %v7841_v29, 16  ;;  %v7847_v62 = vpop.f32.mrf.mxu3 }
 0x182   : > { %257 = vst.msk [vmem:[#allocation2 + $0xd0] sm:$0xf] %vm230_vm4, %v224_v9  ;;  %v3530_v9 = vshll.u32 %v5505_v4, 16 }
 0x183   : > { %v7831_v47 = vld [vmem:[#allocation2 + $0x44] sm:$0xf]  ;;  %821 = vst.msk [vmem:[#allocation2 + $0xd0] sm:$0xf] %vm794_vm8, %v751_v15  ;;  %4371 = vmatmul.bf16.gmra.mxu1 %v5640_v28  ;;  %v3527_v15 = vshrl.u32 %v5505_v4, 16  ;;  %v3877_v4 = vsel %vm6313_vm6, %v5569_v7, %v3876_v57 }
 0x184   : > { %8556 = vst [vmem:[#allocation20_spill] sm:$0xff] %v7831_v47  ;;  %v7837_v42 = vld [vmem:[#allocation2 + $0x48] sm:$0xf0]  ;;  %v3532_v53 = vrot.slane %v3530_v9, 5  ;;  %v5319_v28 = vld [vmem:[#allocation2 + $0x90] sm:$0xf] }
 0x185   : > { %8557 = vst [vmem:[#allocation21_spill] sm:$0xff] %v7835_v43  ;;  %v3878_v43 = vrot.slane %v3876_v57, 4  ;;  %v3529_v26 = vrot.slane %v3527_v15, 4  ;;  %v5455_v15 = vld [vmem:[%s6141_s5 + $0x84] sm:$0xf] }
 0x186   : > { %8558 = vst [vmem:[#allocation22_spill] sm:$0xff] %v7837_v42  ;;  %v5456_v9 = vld [vmem:[%s6141_s5 + $0x88] sm:$0xf]  ;;  %v842_v57 = vld [vmem:[%s6141_s5 + $0x3c] sm:$0xe] }
 0x187   : > { %2506 = vst.msk [vmem:[#allocation2 + $0x44] sm:$0xf] %vm230_vm4, %v2385_v6  ;;  %v753_v6 = vpop.permute.xlu0 %752  ;;  %v4874_v7 = vrot.slane %v842_v57, 9  ;;  %v5174_v57 = vld [vmem:[%s6141_s5 + $0x50] sm:$0x1] }
 0x188   : > { %8559 = vst [vmem:[#allocation23_spill] sm:$0xff] %v7843_v10  ;;  %v225_v10 = vld [vmem:[%s6141_s5 + $0xa0] sm:$0xf]  ;;  %v5502_v47 = vld [vmem:[%s6141_s5 + $0x9c] sm:$0xf] }
 0x189   : > { %2507 = vst.msk [vmem:[#allocation2 + $0x4c] sm:$0xf] %vm230_vm4, %v2388_v32  ;;  %v7852_v32 = vrot.slane %v3536_v60, 5  ;;  %v3880_v60 = vsel %vm6313_vm6, %v3878_v43, %v3879_v36  ;;  %v3503_v42 = vshrl.u32 %v5502_v47, 16 }
 0x18a   : > { %8560 = vst [vmem:[#allocation24_spill] sm:$0xff] %v7847_v62  ;;  %v5320_v62 = vor.u32 %v5865_v24, %v5319_v28  ;;  %v7884_v28 = vpop.f32.mrf.mxu2  ;;  %v5172_v24 = vld [vmem:[%s6141_s5 + $0x48] sm:$0xe] }
 0x18b   : > { %3728 = vst.msk [vmem:[#allocation2 + $0x50] sm:$0xf] %vm794_vm8, %v3643_v54  ;;  %v3533_v54 = vor.u32 %v3532_v53, %v3529_v26  ;;  %v3505_v39 = vrot.slane %v3503_v42, 4 }
 0x18c   : > { %3729 = vst.msk [vmem:[#allocation2 + $0x58] sm:$0xf] %vm794_vm8, %v3645_v52  ;;  %v4968_v52 = vor.u32 %v7632_v1, %v7614_v48  ;;  %2904 = vmatmul.bf16.gmra.mxu2 %v5320_v62  ;;  %v5104_v48 = vld [vmem:[%s6141_s5 + $0xac] sm:$0xf]  ;;  %v843_v1 = vld [vmem:[%s6141_s5 + $0x40] sm:$0xf] }
 0x18d   : > { %8561 = vst [vmem:[#allocation25_spill] sm:$0xff] %v7855_v61  ;;  %v3534_v26 = vrot.slane %v3533_v54, 4  ;;  %v963_v43 = vrot.slane %v843_v1, 5  ;;  %v2185_v54 = vpop.permute.xlu1 %2184  ;;  %v755_v1 = vpop.permute.xlu2 %754 }
 0x18e   : > { %258 = vst.msk [vmem:[#allocation2 + $0xd8] sm:$0xf] %vm230_vm4, %v225_v10  ;;  %v7867_v10 = vld [vmem:[#allocation2 + $0xd0] sm:$0xf]  ;;  %v7871_v53 = vld [vmem:[#allocation2 + $0x44] sm:$0xf]  ;;  %1481 = vmatmul.bf16.gmra.mxu0 %v4968_v52 }
 0x18f   : > { %822 = vst.msk [vmem:[#allocation2 + $0xd8] sm:$0xf] %vm794_vm8, %v753_v6  ;;  %v3539_v36 = vsel %vm6152_vm2, %v3534_v26, %v7852_v32  ;;  %v965_v52 = vrot.slane %v963_v43, 4  ;;  %v7895_v26 = vpop.f32.mrf.mxu3  ;;  %v2183_v61 = vpop.permute.xlu0 %2182 }
 0x190   : > { %3176 = vst.msk [vmem:[#allocation2 + $0x90] sm:$0xf] %vm230_vm4, %v5455_v15  ;;  %v7874_v6 = vld [vmem:[#allocation2 + $0x48] sm:$0xf0]  ;;  %3670 = vrot.lane.b32.xlu1 %v3539_v36, %s6060_s6  ;;  %v964_v15 = vsel %vm6313_vm6, %v4874_v7, %v963_v43  ;;  %v2394_v43 = vrot.slane %v5174_v57, 5 }
 0x191   : > { %8562 = vst [vmem:[#allocation26_spill] sm:$0xff] %v7871_v53  ;;  %v7905_v53 = vpop.f32.mrf.mxu0 }
 0x192   : > { %1692 = vst.msk [vmem:[#allocation2 + $0xd0] sm:$0xf] %vm230_vm4, %v5103_v19  ;;  %v844_v19 = vld [vmem:[%s6141_s5 + $0x44] sm:$0x1] }
 0x193   : > { %8563 = vst [vmem:[#allocation27_spill] sm:$0xff] %v7874_v6  ;;  %v966_v62 = vrot.slane %v844_v19, 5 }
 0x194   : > { %3998 = vst.msk [vmem:[#allocation2 + $0x44] sm:$0xf] %vm230_vm4, %v3877_v4  ;;  %v7889_v4 = vpop.f32.mrf.mxu1 }
 0x195   : > { %3999 = vst.msk [vmem:[#allocation2 + $0x4c] sm:$0xf] %vm230_vm4, %v3880_v60  ;;  %v5173_v60 = vld [vmem:[%s6141_s5 + $0x4c] sm:$0xf]  ;;  %v967_v7 = vsel %vm6313_vm6, %v965_v52, %v966_v62  ;;  %v3506_v62 = vshll.u32 %v5502_v47, 16 }
 0x196   : > { %8564 = vst [vmem:[#allocation28_spill] sm:$0xff] %v7884_v28  ;;  %v7897_v36 = vld [vmem:[#allocation2 + $0xd4] sm:$0xf0]  ;;  %v2391_v19 = vrot.slane %v5173_v60, 5  ;;  %v3540_v28 = vshrl.u32 %v7841_v29, 16 }
 0x197   : > { %3177 = vst.msk [vmem:[#allocation2 + $0x98] sm:$0xf] %vm230_vm4, %v5456_v9  ;;  %v5210_v9 = vrot.slane %v5172_v24, 9  ;;  %v3508_v33 = vrot.slane %v3506_v62, 5 }
 0x198   : > { %8565 = vst [vmem:[#allocation29_spill] sm:$0xff] %v7889_v4  ;;  %v5533_v4 = vld [vmem:[%s6141_s5 + $0x58] sm:$0xf]  ;;  %v2393_v60 = vrot.slane %v2391_v19, 4 }
 0x199   : > { %8566 = vst [vmem:[#allocation30_spill] sm:$0xff] %v7895_v26  ;;  %v5532_v26 = vld [vmem:[%s6141_s5 + $0x54] sm:$0xe]  ;;  %v3883_v6 = vrot.slane %v5533_v4, 5  ;;  %v5647_v4 = vld [vmem:[#allocation2 + $0x50] sm:$0xf] }
 0x19a   : > { %1080 = vst.msk [vmem:[#allocation2 + $0x54] sm:$0xf] %vm230_vm4, %v964_v15  ;;  %v7910_v15 = vld [vmem:[%s6141_s5 + $0x5c] sm:$0x1]  ;;  %v5570_v57 = vrot.slane %v5532_v26, 9  ;;  %v2395_v47 = vsel %vm6313_vm6, %v2393_v60, %v2394_v43  ;;  %v7925_v26 = vpop.f32.mrf.mxu2 }
 0x19b   : > { %1693 = vst.msk [vmem:[#allocation2 + $0xd8] sm:$0xf] %vm230_vm4, %v5104_v48  ;;  %v5898_v24 = vld [vmem:[#allocation2 + $0x44] sm:$0xf]  ;;  %v2392_v48 = vsel %vm6313_vm6, %v5210_v9, %v2391_v19  ;;  %v3509_v19 = vor.u32 %v3508_v33, %v3505_v39 }
 0x19c   : > { %8567 = vst [vmem:[#allocation31_spill] sm:$0xff] %v7905_v53  ;;  %v5641_v29 = vld [vmem:[#allocation2 + $0x48] sm:$0xf0]  ;;  %v3885_v53 = vrot.slane %v3883_v6, 4 }
 0x19d   : > { %1081 = vst.msk [vmem:[#allocation2 + $0x5c] sm:$0xf] %vm230_vm4, %v967_v7  ;;  %v5644_v52 = vor.u32 %v5898_v24, %v5641_v29  ;;  %v3886_v7 = vrot.slane %v7910_v15, 5  ;;  %v5509_v15 = vld [vmem:[%s6141_s5 + $0xb8] sm:$0xf]  ;;  %v7930_v24 = vpop.f32.mrf.mxu1  ;;  %v3647_v29 = vpop.permute.xlu1 %3646  ;;  %v3510_v33 = vrot.slane %v3509_v19, 4 }
 0x19e   : > { %2253 = vst.msk [vmem:[#allocation2 + $0xd8] sm:$0xf] %vm794_vm8, %v2185_v54  ;;  %v5901_v54 = vld [vmem:[#allocation2 + $0x54] sm:$0xf0]  ;;  %v3560_v43 = vshll.u32 %v5509_v15, 16  ;;  %v3564_v60 = vshrl.u32 %v5509_v15, 16 }
 0x19f   : > { %259 = vst.msk [vmem:[#allocation2 + $0xe0] sm:$0xf] %vm230_vm4, %v226_v16  ;;  %5785 = vmatmul.msk.bf16.gmra.mxu3 %vm1374_vm7, %v5644_v52  ;;  %v5648_v42 = vor.u32 %v5901_v54, %v5647_v4  ;;  %v5510_v16 = vld [vmem:[%s6141_s5 + $0xbc] sm:$0x1]  ;;  %v3649_v52 = vpop.permute.xlu2 %3648  ;;  %v757_v4 = vpop.permute.xlu0 %756  ;;  %v3515_v15 = vsel %vm6152_vm2, %v3510_v33, %v7755_v27  ;;  %v3542_v19 = vrot.slane %v3540_v28, 4  ;;  %v3887_v27 = vsel %vm6313_vm6, %v3885_v53, %v3886_v7 }
 0x1a0   : > { %823 = vst.msk [vmem:[#allocation2 + $0xe0] sm:$0xf] %vm794_vm8, %v755_v1  ;;  %v7935_v1 = vpop.f32.mrf.mxu3  ;;  %v3570_v39 = vshll.u32 %v5510_v16, 16  ;;  %v3562_v54 = vrot.slane %v3560_v43, 5  ;;  %3666 = vrot.lane.b32.xlu2 %v3515_v15, %s6060_s6  ;;  %v5867_v28 = vld [vmem:[#allocation2 + $0xa4] sm:$0xf0] }
 0x1a1   : > { %v7920_v9 = vld [vmem:[#allocation2 + $0x54] sm:$0xf]  ;;  %8569 = vst [vmem:[#allocation33_spill] sm:$0xff] %v7925_v26  ;;  %4376 = vmatmul.bf16.gmra.mxu1 %v5648_v42  ;;  %v3566_v26 = vrot.slane %v3564_v60, 4  ;;  %v3884_v42 = vsel %vm6313_vm6, %v5570_v57, %v3883_v6  ;;  %v227_v60 = vld [vmem:[%s6141_s5 + $0xac] sm:$0xf] }
 0x1a2   : > { %8568 = vst [vmem:[#allocation32_spill] sm:$0xff] %v7920_v9  ;;  %v5457_v53 = vld [vmem:[%s6141_s5 + $0x90] sm:$0xf]  ;;  %v5458_v7 = vld [vmem:[%s6141_s5 + $0x94] sm:$0xf] }
 0x1a3   : > { %2508 = vst.msk [vmem:[#allocation2 + $0x54] sm:$0xf] %vm230_vm4, %v2392_v48  ;;  %v5508_v48 = vld [vmem:[%s6141_s5 + $0xb4] sm:$0xf]  ;;  %v3567_v16 = vor.u32 %v3566_v26, %v3562_v54 }
 0x1a4   : > { %8570 = vst [vmem:[#allocation34_spill] sm:$0xff] %v7930_v24  ;;  %v7932_v62 = vld [vmem:[#allocation2 + $0x58] sm:$0xf0]  ;;  %v3551_v24 = vshrl.u32 %v5508_v48, 16  ;;  %v3554_v9 = vshll.u32 %v5508_v48, 16 }
 0x1a5   : > { %2252 = vst.msk [vmem:[#allocation2 + $0xd0] sm:$0xf] %vm794_vm8, %v2183_v61  ;;  %v7940_v61 = vpop.f32.mrf.mxu0  ;;  %v5327_v48 = vld [vmem:[#allocation2 + $0xa0] sm:$0xf]  ;;  %v3568_v6 = vrot.slane %v3567_v16, 4 }
 0x1a6   : > { %8571 = vst [vmem:[#allocation35_spill] sm:$0xff] %v7935_v1  ;;  %v5105_v1 = vld [vmem:[%s6141_s5 + $0xb4] sm:$0xf]  ;;  %v3553_v43 = vrot.slane %v3551_v24, 4  ;;  %v5328_v26 = vor.u32 %v5867_v28, %v5327_v48  ;;  %v2189_v28 = vpop.permute.xlu1 %2188 }
 0x1a7   : > { %2509 = vst.msk [vmem:[#allocation2 + $0x5c] sm:$0xf] %vm230_vm4, %v2395_v47  ;;  %v3572_v47 = vrot.slane %v3570_v39, 5  ;;  %v7953_v33 = vld [vmem:[#allocation2 + $0xe0] sm:$0xf] }
 0x1a8   : > { %3730 = vst.msk [vmem:[#allocation2 + $0x60] sm:$0xf] %vm794_vm8, %v3647_v29  ;;  %v3556_v29 = vrot.slane %v3554_v9, 5  ;;  %v4976_v9 = vor.u32 %v7733_v21, %v7684_v55  ;;  %2909 = vmatmul.bf16.gmra.mxu2 %v5328_v26  ;;  %v845_v55 = vld [vmem:[%s6141_s5 + $0x48] sm:$0xe] }
 0x1a9   : > { %8572 = vst [vmem:[#allocation36_spill] sm:$0xff] %v7940_v61  ;;  %v3573_v39 = vsel %vm6152_vm2, %v3568_v6, %v3572_v47  ;;  %v846_v21 = vld [vmem:[%s6141_s5 + $0x4c] sm:$0xf]  ;;  %v4875_v16 = vrot.slane %v845_v55, 9  ;;  %v2187_v6 = vpop.permute.xlu0 %2186  ;;  %v5507_v61 = vld [vmem:[%s6141_s5 + $0xb0] sm:$0x1] }
 0x1aa   : > { %3731 = vst.msk [vmem:[#allocation2 + $0x68] sm:$0xf] %vm794_vm8, %v3649_v52  ;;  %v7956_v52 = vld [vmem:[#allocation2 + $0x54] sm:$0xf]  ;;  %v3557_v57 = vor.u32 %v3556_v29, %v3553_v43  ;;  %1486 = vmatmul.bf16.gmra.mxu0 %v4976_v9  ;;  %3676 = vrot.lane.b32.xlu1 %v3573_v39, %s6060_s6  ;;  %v970_v43 = vrot.slane %v846_v21, 5  ;;  %v3543_v29 = vor.u32 %v3542_v19, %v7852_v32 }
 0x1ab   : > { %260 = vst.msk [vmem:[#allocation2 + $0xe8] sm:$0xf] %vm230_vm4, %v227_v60  ;;  %v7982_v60 = vpop.f32.mrf.mxu3  ;;  %v5176_v9 = vld [vmem:[%s6141_s5 + $0x58] sm:$0xf]  ;;  %v5177_v32 = vld [vmem:[%s6141_s5 + $0x5c] sm:$0x1] }
 0x1ac   : > { %1694 = vst.msk [vmem:[#allocation2 + $0xe0] sm:$0xf] %vm230_vm4, %v5105_v1  ;;  %v3558_v15 = vrot.slane %v3557_v57, 4  ;;  %v7973_v1 = vpop.f32.mrf.mxu2  ;;  %v971_v57 = vsel %vm6313_vm6, %v4875_v16, %v970_v43  ;;  %v972_v26 = vrot.slane %v970_v43, 4  ;;  %v2398_v19 = vrot.slane %v5176_v9, 5 }
 0x1ad   : > { %4000 = vst.msk [vmem:[#allocation2 + $0x54] sm:$0xf] %vm230_vm4, %v3884_v42  ;;  %v7975_v42 = vpop.f32.mrf.mxu1  ;;  %v7991_v39 = vpop.f32.mrf.mxu0  ;;  %v3544_v21 = vrot.slane %v3543_v29, 4  ;;  %v5536_v9 = vld [vmem:[%s6141_s5 + $0x64] sm:$0xf] }
 0x1ae   : > { %v7964_v24 = vld [vmem:[#allocation2 + $0x58] sm:$0xf0]  ;;  %824 = vst.msk [vmem:[#allocation2 + $0xe8] sm:$0xf] %vm794_vm8, %v757_v4  ;;  %v3563_v47 = vsel %vm6152_vm2, %v3558_v15, %v3562_v54  ;;  %v847_v4 = vld [vmem:[%s6141_s5 + $0x50] sm:$0x1] }
 0x1af   : > { %4001 = vst.msk [vmem:[#allocation2 + $0x5c] sm:$0xf] %vm230_vm4, %v3887_v27  ;;  %3674 = vrot.lane.b32.xlu0 %v3563_v47, %s6060_s6  ;;  %v973_v48 = vrot.slane %v847_v4, 5  ;;  %v5175_v27 = vld [vmem:[%s6141_s5 + $0x54] sm:$0xe]  ;;  %v2400_v43 = vrot.slane %v2398_v19, 4 }
 0x1b0   : > { %8573 = vst [vmem:[#allocation37_spill] sm:$0xff] %v7973_v1  ;;  %v5106_v54 = vld [vmem:[%s6141_s5 + $0xb8] sm:$0xf]  ;;  %v5211_v55 = vrot.slane %v5175_v27, 9  ;;  %v5535_v4 = vld [vmem:[%s6141_s5 + $0x60] sm:$0xe] }
 0x1b1   : > { %8574 = vst [vmem:[#allocation38_spill] sm:$0xff] %v7975_v42  ;;  %v974_v15 = vsel %vm6313_vm6, %v972_v26, %v973_v48  ;;  %v5571_v26 = vrot.slane %v5535_v4, 9  ;;  %v228_v1 = vld [vmem:[%s6141_s5 + $0xb4] sm:$0xf] }
 0x1b2   : > { %3178 = vst.msk [vmem:[#allocation2 + $0xa0] sm:$0xf] %vm230_vm4, %v5457_v53  ;;  %v759_v53 = vpop.permute.xlu2 %758  ;;  %v2399_v27 = vsel %vm6313_vm6, %v5211_v55, %v2398_v19  ;;  %v3890_v19 = vrot.slane %v5536_v9, 5 }
 0x1b3   : > { %8575 = vst [vmem:[#allocation39_spill] sm:$0xff] %v7982_v60 }
 0x1b4   : > { %3179 = vst.msk [vmem:[#allocation2 + $0xa8] sm:$0xf] %vm230_vm4, %v5458_v7  ;;  %v5900_v7 = vld [vmem:[#allocation2 + $0x54] sm:$0xf]  ;;  %v8005_v48 = vpop.f32.mrf.mxu2 }
 0x1b5   : > { %8576 = vst [vmem:[#allocation40_spill] sm:$0xff] %v7991_v39  ;;  %v7997_v47 = vld [vmem:[#allocation2 + $0xe4] sm:$0xf0]  ;;  %v8007_v29 = vpop.f32.mrf.mxu1  ;;  %v8023_v4 = vpop.f32.mrf.mxu0 }
 0x1b6   : > { %1082 = vst.msk [vmem:[#allocation2 + $0x64] sm:$0xf] %vm230_vm4, %v971_v57  ;;  %v5649_v16 = vld [vmem:[#allocation2 + $0x58] sm:$0xf0]  ;;  %v2401_v57 = vrot.slane %v5177_v32, 5 }
 0x1b7   : > { %1083 = vst.msk [vmem:[#allocation2 + $0x6c] sm:$0xf] %vm230_vm4, %v974_v15  ;;  %v5652_v39 = vor.u32 %v5900_v7, %v5649_v16  ;;  %v3546_v15 = vshll.u32 %v5507_v61, 16  ;;  %v5537_v32 = vld [vmem:[%s6141_s5 + $0x68] sm:$0x1]  ;;  %v761_v16 = vpop.permute.xlu0 %760 }
 0x1b8   : > { %1695 = vst.msk [vmem:[#allocation2 + $0xe8] sm:$0xf] %vm230_vm4, %v5106_v54  ;;  %v8013_v54 = vpop.f32.mrf.mxu3  ;;  %v5903_v7 = vld [vmem:[#allocation2 + $0x64] sm:$0xf0]  ;;  %v2402_v61 = vsel %vm6313_vm6, %v2400_v43, %v2401_v57 }
 0x1b9   : > { %2255 = vst.msk [vmem:[#allocation2 + $0xe8] sm:$0xf] %vm794_vm8, %v2189_v28  ;;  %5786 = vmatmul.msk.bf16.gmra.mxu3 %vm1374_vm7, %v5652_v39  ;;  %v5655_v28 = vld [vmem:[#allocation2 + $0x60] sm:$0xf]  ;;  %v3548_v55 = vrot.slane %v3546_v15, 5 }
 0x1ba   : > { %8577 = vst [vmem:[#allocation41_spill] sm:$0xff] %v8005_v48  ;;  %v5513_v39 = vld [vmem:[%s6141_s5 + $0xc8] sm:$0x1]  ;;  %v5107_v15 = vld [vmem:[%s6141_s5 + $0xc0] sm:$0xf] }
 0x1bb   : > { %8578 = vst [vmem:[#allocation42_spill] sm:$0xff] %v8007_v29  ;;  %v3549_v60 = vsel %vm6152_vm2, %v3544_v21, %v3548_v55  ;;  %v3594_v9 = vshll.u32 %v5513_v39, 16  ;;  %v5335_v21 = vld [vmem:[#allocation2 + $0xb0] sm:$0xf]  ;;  %v5869_v55 = vld [vmem:[#allocation2 + $0xb4] sm:$0xf0] }
 0x1bc   : > { %2254 = vst.msk [vmem:[#allocation2 + $0xe0] sm:$0xf] %vm794_vm8, %v2187_v6  ;;  %v5656_v6 = vor.u32 %v5903_v7, %v5655_v28  ;;  %3672 = vrot.lane.b32.xlu2 %v3549_v60, %s6060_s6  ;;  %v229_v28 = vld [vmem:[%s6141_s5 + $0xb8] sm:$0xf]  ;;  %v3892_v7 = vrot.slane %v3890_v19, 4 }
 0x1bd   : > { %8579 = vst [vmem:[#allocation43_spill] sm:$0xff] %v8013_v54  ;;  %v8018_v48 = vld [vmem:[#allocation2 + $0x64] sm:$0xf]  ;;  %v3651_v54 = vpop.permute.xlu1 %3650  ;;  %v8044_v60 = vpop.f32.mrf.mxu1  ;;  %v5459_v39 = vld [vmem:[%s6141_s5 + $0x9c] sm:$0xf] }
 0x1be   : > { %261 = vst.msk [vmem:[#allocation2 + $0xf0] sm:$0xf] %vm230_vm4, %v228_v1  ;;  %v5512_v1 = vld [vmem:[%s6141_s5 + $0xc4] sm:$0xf]  ;;  %v8028_v29 = vld [vmem:[#allocation2 + $0x68] sm:$0xf0]  ;;  %4381 = vmatmul.bf16.gmra.mxu1 %v5656_v6 }
 0x1bf   : > { %8580 = vst [vmem:[#allocation44_spill] sm:$0xff] %v8018_v48  ;;  %v3584_v43 = vshll.u32 %v5512_v1, 16  ;;  %v3588_v57 = vshrl.u32 %v5512_v1, 16 }
 0x1c0   : > { %825 = vst.msk [vmem:[#allocation2 + $0xf0] sm:$0xf] %vm794_vm8, %v759_v53  ;;  %v3653_v53 = vpop.permute.xlu2 %3652  ;;  %v8050_v6 = vpop.f32.mrf.mxu3 }
 0x1c1   : > { %8581 = vst [vmem:[#allocation45_spill] sm:$0xff] %v8023_v4  ;;  %v3893_v4 = vrot.slane %v5537_v32, 5  ;;  %v8038_v42 = vrot.slane %v3584_v43, 5  ;;  %v3590_v48 = vrot.slane %v3588_v57, 4  ;;  %v3596_v32 = vrot.slane %v3594_v9, 5  ;;  %v2191_v43 = vpop.permute.xlu0 %2190 }
 0x1c2   : > { %2510 = vst.msk [vmem:[#allocation2 + $0x64] sm:$0xf] %vm230_vm4, %v2399_v27  ;;  %v4984_v27 = vor.u32 %v7813_v45, %v7786_v11  ;;  %v3891_v11 = vsel %vm6313_vm6, %v5571_v26, %v3890_v19  ;;  %v8061_v19 = vpop.f32.mrf.mxu0  ;;  %v5460_v9 = vld [vmem:[%s6141_s5 + $0xa0] sm:$0xf] }
 0x1c3   : > { %2511 = vst.msk [vmem:[#allocation2 + $0x6c] sm:$0xf] %vm230_vm4, %v2402_v61  ;;  %v8042_v61 = vpop.f32.mrf.mxu2  ;;  %v3591_v45 = vor.u32 %v3590_v48, %v8038_v42  ;;  %v3894_v48 = vsel %vm6313_vm6, %v3892_v7, %v3893_v4 }
 0x1c4   : > { %3732 = vst.msk [vmem:[#allocation2 + $0x70] sm:$0xf] %vm794_vm8, %v3651_v54  ;;  %1491 = vmatmul.bf16.gmra.mxu0 %v4984_v27  ;;  %v5336_v54 = vor.u32 %v5869_v55, %v5335_v21  ;;  %v5108_v27 = vld [vmem:[%s6141_s5 + $0xc4] sm:$0xf] }
 0x1c5   : > { %3733 = vst.msk [vmem:[#allocation2 + $0x78] sm:$0xf] %vm794_vm8, %v3653_v53  ;;  %v3592_v26 = vrot.slane %v3591_v45, 4  ;;  %v5514_v53 = vld [vmem:[%s6141_s5 + $0xcc] sm:$0xf] }
 0x1c6   : > { %8582 = vst [vmem:[#allocation46_spill] sm:$0xff] %v8042_v61  ;;  %2914 = vmatmul.bf16.gmra.mxu2 %v5336_v54  ;;  %v3602_v7 = vshll.u32 %v5514_v53, 16  ;;  %v5871_v61 = vld [vmem:[#allocation2 + $0xc4] sm:$0xf0] }
 0x1c7   : > { %262 = vst.msk [vmem:[#allocation2 + $0xf8] sm:$0xf] %vm230_vm4, %v229_v28  ;;  %v8052_v1 = vld [vmem:[#allocation2 + $0xf0] sm:$0xf] }
 0x1c8   : > { %8583 = vst [vmem:[#allocation47_spill] sm:$0xff] %v8050_v6  ;;  %v3655_v21 = vpop.permute.xlu2 %3654 }
 0x1c9   : > { %826 = vst.msk [vmem:[#allocation2 + $0xf8] sm:$0xf] %vm794_vm8, %v761_v16  ;;  %v8056_v57 = vld [vmem:[#allocation2 + $0x64] sm:$0xf]  ;;  %v3597_v16 = vsel %vm6152_vm2, %v3592_v26, %v3596_v32  ;;  %v3604_v32 = vrot.slane %v3602_v7, 5 }
 0x1ca   : > { %1696 = vst.msk [vmem:[#allocation2 + $0xf0] sm:$0xf] %vm230_vm4, %v5107_v15  ;;  %v8066_v28 = vld [vmem:[#allocation2 + $0x68] sm:$0xf0]  ;;  %3680 = vrot.lane.b32.xlu0 %v3597_v16, %s6060_s6  ;;  %v3599_v15 = vshrl.u32 %v5514_v53, 16  ;;  %v8086_v16 = vpop.f32.mrf.mxu3 }
 0x1cb   : > { %8584 = vst [vmem:[#allocation48_spill] sm:$0xff] %v8061_v19  ;;  %v5663_v4 = vld [vmem:[#allocation2 + $0x70] sm:$0xf]  ;;  %v8080_v54 = vpop.f32.mrf.mxu2  ;;  %v3657_v19 = vpop.permute.xlu0 %3656  ;;  %v5343_v7 = vld [vmem:[#allocation2 + $0xc0] sm:$0xf] }
 0x1cc   : > { %4002 = vst.msk [vmem:[#allocation2 + $0x64] sm:$0xf] %vm230_vm4, %v3891_v11  ;;  %v5905_v55 = vld [vmem:[#allocation2 + $0x74] sm:$0xf0]  ;;  %v3608_v11 = vshll.u32 %v8073_v23, 16  ;;  %v3601_v45 = vrot.slane %v3599_v15, 4  ;;  %v8091_v15 = vpop.f32.mrf.mxu0 }
 0x1cd   : > { %3180 = vst.msk [vmem:[#allocation2 + $0xb0] sm:$0xf] %vm230_vm4, %v5459_v39  ;;  %v8082_v39 = vpop.f32.mrf.mxu1  ;;  %v5664_v26 = vor.u32 %v5905_v55, %v5663_v4 }
 0x1ce   : > { %4003 = vst.msk [vmem:[#allocation2 + $0x6c] sm:$0xf] %vm230_vm4, %v3894_v48  ;;  %v3610_v53 = vrot.slane %v3608_v11, 5 }
 0x1cf   : > { %3181 = vst.msk [vmem:[#allocation2 + $0xb8] sm:$0xf] %vm230_vm4, %v5460_v9  ;;  %v3605_v9 = vor.u32 %v3604_v32, %v3601_v45  ;;  %4386 = vmatmul.bf16.gmra.mxu1 %v5664_v26 }
 0x1d0   : > { %2256 = vst.msk [vmem:[#allocation2 + $0xf0] sm:$0xf] %vm794_vm8, %v2191_v43  ;;  %v8084_v48 = vld [vmem:[#allocation2 + $0xf4] sm:$0xf0] }
 0x1d1   : > { %8585 = vst [vmem:[#allocation49_spill] sm:$0xff] %v8080_v54  ;;  %v3606_v54 = vrot.slane %v3605_v9, 4  ;;  %v2193_v9 = vpop.permute.xlu1 %2192 }
 0x1d2   : > { %8586 = vst [vmem:[#allocation50_spill] sm:$0xff] %v8082_v39  ;;  %v5511_v39 = vld [vmem:[%s6141_s5 + $0xc0] sm:$0xf] }
 0x1d3   : > { %8587 = vst [vmem:[#allocation51_spill] sm:$0xff] %v8086_v16  ;;  %v5902_v43 = vld [vmem:[#allocation2 + $0x64] sm:$0xf]  ;;  %v3575_v4 = vshrl.u32 %v5511_v39, 16  ;;  %v3578_v55 = vshll.u32 %v5511_v39, 16  ;;  %v8100_v32 = vpop.f32.mrf.mxu2  ;;  %v4441_v39 = vpop.f32.mrf.mxu3 }
 0x1d4   : > { %3734 = vst.msk [vmem:[#allocation2 + $0x80] sm:$0xf] %vm794_vm8, %v3655_v21  ;;  %v4992_v21 = vor.u32 %v7897_v36, %v7867_v10 }
 0x1d5   : > { %1697 = vst.msk [vmem:[#allocation2 + $0xf8] sm:$0xf] %vm230_vm4, %v5108_v27  ;;  %v5657_v6 = vld [vmem:[#allocation2 + $0x68] sm:$0xf0]  ;;  %v3611_v27 = vsel %vm6152_vm2, %v3606_v54, %v3610_v53  ;;  %v3577_v11 = vrot.slane %v3575_v4, 4  ;;  %v3580_v45 = vrot.slane %v3578_v55, 5 }
 0x1d6   : > { %3735 = vst.msk [vmem:[#allocation2 + $0x88] sm:$0xf] %vm794_vm8, %v3657_v19  ;;  %v5660_v16 = vor.u32 %v5902_v43, %v5657_v6  ;;  %3682 = vrot.lane.b32.xlu1 %v3611_v27, %s6060_s6  ;;  %v5344_v19 = vor.u32 %v5871_v61, %v5343_v7  ;;  %1496 = vmatmul.bf16.gmra.mxu0 %v4992_v21  ;;  %v4352_v6 = vpop.f32.mrf.mxu1  ;;  %v8103_v43 = vpop.f32.mrf.mxu0  ;;  %v3612_v61 = vshrl.u32 %v8073_v23, 16  ;;  %v5904_v27 = vld [vmem:[#allocation2 + $0x74] sm:$0xf] }
 0x1d7   : > { %v3581_v26 = vor.u32 %v3580_v45, %v3577_v11  ;;  %2257 = vst.msk [vmem:[#allocation2 + $0xf8] sm:$0xf] %vm794_vm8, %v2193_v9  ;;  %v8105_v10 = vadd.f32 %v4441_v39, %v4352_v6  ;;  %v5665_v21 = vld [vmem:[#allocation2 + $0x78] sm:$0xf0]  ;;  %v3661_v11 = vpop.permute.xlu2 %3660  ;;  %v5516_v23 = vld [vmem:[%s6141_s5 + $0xd4] sm:$0x1] }
 0x1d8   : > { %5787 = vmatmul.msk.bf16.gmra.mxu3 %vm1374_vm7, %v5660_v16  ;;  %2919 = vmatmul.bf16.gmra.mxu2 %v5344_v19  ;;  %8588 = vst [vmem:[#allocation52_spill] sm:$0xff] %v8103_v43  ;;  %v5351_v6 = vld [vmem:[#allocation2 + $0xd0] sm:$0xf]  ;;  %v5873_v39 = vld [vmem:[#allocation2 + $0xd4] sm:$0xf0] }
 0x1d9   : > { %v3582_v54 = vrot.slane %v3581_v26, 4  ;;  %v3659_v55 = vpop.permute.xlu1 %3658  ;;  %3737 = vst.msk [vmem:[#allocation2 + $0x98] sm:$0xf] %vm794_vm8, %v3661_v11  ;;  %v5668_v26 = vor.u32 %v5904_v27, %v5665_v21 }
 0x1da   : > { %3736 = vst.msk [vmem:[#allocation2 + $0x90] sm:$0xf] %vm794_vm8, %v3659_v55  ;;  %v5000_v55 = vor.u32 %v7997_v47, %v7953_v33  ;;  %v3663_v47 = vpop.permute.xlu0 %3662 }
 0x1db   : > { %v3587_v36 = vsel %vm6152_vm2, %v3582_v54, %v8038_v42  ;;  %v5671_v16 = vld [vmem:[#allocation2 + $0x80] sm:$0xf]  ;;  %v8112_v4 = vpop.f32.mrf.mxu2  ;;  %v3614_v42 = vrot.slane %v3612_v61, 4  ;;  %v8121_v43 = vpop.f32.mrf.mxu3  ;;  %3738 = vst.msk [vmem:[#allocation2 + $0xa0] sm:$0xf] %vm794_vm8, %v3663_v47 }
 0x1dc   : > { %3678 = vrot.lane.b32.xlu2 %v3587_v36, %s6060_s6  ;;  %8589 = vst [vmem:[#allocation53_spill] sm:$0xff] %v8112_v4  ;;  %v3618_v36 = vshll.u32 %v5516_v23, 16  ;;  %v5352_v4 = vor.u32 %v5873_v39, %v5351_v6  ;;  %v5906_v23 = vld [vmem:[#allocation2 + $0x84] sm:$0xf] }
 0x1dd   : > { %v5907_v7 = vld [vmem:[#allocation2 + $0x84] sm:$0xf0]  ;;  %v3615_v54 = vor.u32 %v3614_v42, %v3610_v53 }
 0x1de   : > { %v5672_v19 = vor.u32 %v5907_v7, %v5671_v16  ;;  %v8115_v45 = vpop.f32.mrf.mxu1  ;;  %v8118_v9 = vpop.f32.mrf.mxu0  ;;  %v3620_v7 = vrot.slane %v3618_v36, 5 }
 0x1df   : > { %8590 = vst [vmem:[#allocation54_spill] sm:$0xff] %v8118_v9  ;;  %v3616_v16 = vrot.slane %v3615_v54, 4 }
 0x1e0   : > { %4391 = vmatmul.bf16.gmra.mxu1 %v5672_v19  ;;  %v5909_v33 = vld [vmem:[#allocation2 + $0x94] sm:$0xf0] }
 0x1e1   : > { %v3621_v61 = vsel %vm6152_vm2, %v3616_v16, %v3620_v7  ;;  %v3665_v27 = vpop.permute.xlu1 %3664  ;;  %v5679_v19 = vld [vmem:[#allocation2 + $0x90] sm:$0xf]  ;;  %v5359_v16 = vld [vmem:[#allocation2 + $0xe0] sm:$0xf]  ;;  %v5875_v7 = vld [vmem:[#allocation2 + $0xe4] sm:$0xf0] }
 0x1e2   : > { %3739 = vst.msk [vmem:[#allocation2 + $0xa8] sm:$0xf] %vm794_vm8, %v3665_v27  ;;  %v5680_v39 = vor.u32 %v5909_v33, %v5679_v19  ;;  %v5687_v47 = vld [vmem:[#allocation2 + $0xa0] sm:$0xf] }
 0x1e3   : > { %v8128_v11 = vpop.f32.mrf.mxu2  ;;  %v4446_v42 = vpop.f32.mrf.mxu3 }
 0x1e4   : > { %3684 = vrot.lane.b32.xlu2 %v3621_v61, %s6060_s6  ;;  %v5360_v61 = vor.u32 %v5875_v7, %v5359_v16  ;;  %v5367_v7 = vld [vmem:[#allocation2 + $0xf0] sm:$0xf] }
 0x1e6   : > { %1501 = vmatmul.bf16.gmra.mxu0 %v5000_v55  ;;  %v4357_v53 = vpop.f32.mrf.mxu1  ;;  %v8131_v21 = vpop.f32.mrf.mxu0  ;;  %v5008_v55 = vor.u32 %v8084_v48, %v8052_v1 }
 0x1e7   : > { %8591 = vst [vmem:[#allocation55_spill] sm:$0xff] %v8131_v21  ;;  %v8137_v6 = vadd.f32 %v4446_v42, %v4357_v53 }
 0x1e8   : > { %5788 = vmatmul.msk.bf16.gmra.mxu3 %vm1374_vm7, %v5668_v26  ;;  %2924 = vmatmul.bf16.gmra.mxu2 %v5352_v4  ;;  %v5673_v26 = vld [vmem:[#allocation2 + $0x88] sm:$0xf0] }
 0x1e9   : > { %v5676_v36 = vor.u32 %v5906_v23, %v5673_v26  ;;  %v5911_v42 = vld [vmem:[#allocation2 + $0xa4] sm:$0xf0]  ;;  %v3669_v26 = vpop.permute.xlu0 %3668 }
 0x1ea   : > { %v5688_v1 = vor.u32 %v5911_v42, %v5687_v47  ;;  %3741 = vst.msk [vmem:[#allocation2 + $0xb8] sm:$0xf] %vm794_vm8, %v3669_v26  ;;  %v5461_v47 = vld [vmem:[%s6141_s5 + $0xa8] sm:$0xf]  ;;  %v5462_v42 = vld [vmem:[%s6141_s5 + $0xac] sm:$0xf] }
 0x1eb   : > { %v8135_v25 = vpop.f32.mrf.mxu2  ;;  %v8148_v33 = vpop.f32.mrf.mxu3  ;;  %3182 = vst.msk [vmem:[#allocation2 + $0xc0] sm:$0xf] %vm230_vm4, %v5461_v47 }
 0x1ec   : > { %8592 = vst [vmem:[#allocation56_spill] sm:$0xff] %v8135_v25  ;;  %v4892_v25 = vor.u32 %v7475_v22, %v7489_v40  ;;  %v5910_v40 = vld [vmem:[#allocation2 + $0xa4] sm:$0xf] }
 0x1ed   : > { %3183 = vst.msk [vmem:[#allocation2 + $0xc8] sm:$0xf] %vm230_vm4, %v5462_v42  ;;  %v5464_v42 = vld [vmem:[%s6141_s5 + $0xb8] sm:$0xf] }
 0x1ee   : > { %v8139_v54 = vpop.f32.mrf.mxu1  ;;  %v8141_v4 = vpop.f32.mrf.mxu0  ;;  %3185 = vst.msk [vmem:[#allocation2 + $0xd8] sm:$0xf] %vm230_vm4, %v5464_v42 }
 0x1ef   : > { %8593 = vst [vmem:[#allocation57_spill] sm:$0xff] %v8141_v4  ;;  %v5681_v4 = vld [vmem:[#allocation2 + $0x98] sm:$0xf0] }
 0x1f0   : > { %4396 = vmatmul.bf16.gmra.mxu1 %v5680_v39  ;;  %v5908_v39 = vld [vmem:[#allocation2 + $0x94] sm:$0xf] }
 0x1f1   : > { %v5684_v16 = vor.u32 %v5908_v39, %v5681_v4 }
 0x1f3   : > { %v8146_v27 = vpop.f32.mrf.mxu2 }
 0x1f4   : > { %8594 = vst [vmem:[#allocation58_spill] sm:$0xff] %v8146_v27 }
 0x1f6   : > { %1506 = vmatmul.bf16.gmra.mxu0 %v5008_v55  ;;  %v4362_v53 = vpop.f32.mrf.mxu1  ;;  %v1467_v19 = vpop.f32.mrf.mxu0  ;;  %v5877_v55 = vld [vmem:[#allocation2 + $0xf4] sm:$0xf0] }
 0x1f7   : > { %v5368_v21 = vor.u32 %v5877_v55, %v5367_v7  ;;  %v1557_v26 = vadd.f32 %v7385_v2, %v1467_v19 }
 0x1f8   : > { %5789 = vmatmul.msk.bf16.gmra.mxu3 %vm1374_vm7, %v5676_v36  ;;  %2929 = vmatmul.bf16.gmra.mxu2 %v5360_v61  ;;  %v4451_v61 = vpop.f32.mrf.mxu3 }
 0x1f9   : > { %v8155_v27 = vadd.f32 %v4451_v61, %v4362_v53 }
 0x1fb   : > { %v8150_v23 = vpop.f32.mrf.mxu2 }
 0x1fc   : > { %8595 = vst [vmem:[#allocation59_spill] sm:$0xff] %v8150_v23 }
 0x1fe   : > { %v8153_v48 = vpop.f32.mrf.mxu1  ;;  %v1469_v36 = vpop.f32.mrf.mxu0 }
 0x1ff   : > { %v1559_v2 = vadd.f32 %v7426_v0, %v1469_v36  ;;  %v5252_v0 = vor.u32 %v7505_v3, %v7523_v41  ;;  %v4900_v36 = vor.u32 %v7571_v30, %v7577_v37 }
 0x200   : > { %4401 = vmatmul.bf16.gmra.mxu1 %v5688_v1  ;;  %v3667_v1 = vpop.permute.xlu2 %3666 }
 0x201   : > { %3740 = vst.msk [vmem:[#allocation2 + $0xb0] sm:$0xf] %vm794_vm8, %v3667_v1 }
 0x202   : > { %v3671_v47 = vpop.permute.xlu1 %3670 }
 0x203   : > { %v2895_v23 = vpop.f32.mrf.mxu2  ;;  %3742 = vst.msk [vmem:[#allocation2 + $0xc0] sm:$0xf] %vm794_vm8, %v3671_v47 }
 0x204   : > { %v2985_v9 = vadd.f32 %v7392_v20, %v2895_v23 }
 0x206   : > { %v4367_v4 = vpop.f32.mrf.mxu1  ;;  %5061 = vmatmul.msk.bf16.vlgmr.msrb.gmra.mxu0 %vm1374_vm7, %v4892_v25  ;;  %v8167_v53 = vadd.f32 %v2985_v9, %v1557_v26  ;;  %v1472_v39 = vpop.f32.mrf.mxu0  ;;  %v5463_v26 = vld [vmem:[%s6141_s5 + $0xb4] sm:$0xf] }
 0x207   : > { %v8174_v25 = vpop.f32.mrf.mxu3  ;;  %v1562_v1 = vadd.f32 %v7471_v56, %v1472_v39  ;;  %3184 = vst.msk [vmem:[#allocation2 + $0xd0] sm:$0xf] %vm230_vm4, %v5463_v26  ;;  %v5912_v56 = vld [vmem:[#allocation2 + $0xb4] sm:$0xf]  ;;  %v5697_v39 = vld [vmem:[#allocation2 + $0xb8] sm:$0xf0] }
 0x208   : > { %5790 = vmatmul.msk.bf16.gmra.mxu3 %vm1374_vm7, %v5684_v16  ;;  %2934 = vmatmul.bf16.gmra.mxu2 %v5368_v21  ;;  %v5689_v16 = vld [vmem:[#allocation2 + $0xa8] sm:$0xf0]  ;;  %v5913_v21 = vld [vmem:[#allocation2 + $0xb4] sm:$0xf0]  ;;  %v5695_v55 = vld [vmem:[#allocation2 + $0xb0] sm:$0xf] }
 0x209   : > { %v5692_v7 = vor.u32 %v5910_v40, %v5689_v16  ;;  %v5696_v61 = vor.u32 %v5913_v21, %v5695_v55 }
 0x20b   : > { %v2897_v22 = vpop.f32.mrf.mxu2 }
 0x20c   : > { %v2987_v20 = vadd.f32 %v7432_v13, %v2897_v22 }
 0x20e   : > { %v8172_v19 = vpop.f32.mrf.mxu1  ;;  %v8176_v9 = vadd.f32 %v2987_v20, %v1559_v2  ;;  %v1474_v23 = vpop.f32.mrf.mxu0 }
 0x20f   : > { %v4456_v16 = vpop.f32.mrf.mxu3 }
 0x210   : > { %4406 = vmatmul.bf16.gmra.mxu1 %v5696_v61  ;;  %v8194_v30 = vadd.f32 %v4456_v16, %v4367_v4  ;;  %v5700_v61 = vor.u32 %v5912_v56, %v5697_v39  ;;  %v5260_v4 = vor.u32 %v7607_v5, %v7616_v12  ;;  %v5705_v16 = vld [vmem:[#allocation2 + $0xc8] sm:$0xf0] }
 0x213   : > { %v2900_v13 = vpop.f32.mrf.mxu2 }
 0x214   : > { %v2990_v22 = vadd.f32 %v7480_v58, %v2900_v13  ;;  %v1564_v58 = vadd.f32 %v7515_v38, %v1474_v23  ;;  %v4908_v38 = vor.u32 %v7662_v49, %v7665_v50  ;;  %v5465_v50 = vld [vmem:[%s6141_s5 + $0xc0] sm:$0xf] }
 0x215   : > { %3186 = vst.msk [vmem:[#allocation2 + $0xe0] sm:$0xf] %vm230_vm4, %v5465_v50  ;;  %v5468_v50 = vld [vmem:[%s6141_s5 + $0xd0] sm:$0xf] }
 0x216   : > { %v4372_v40 = vpop.f32.mrf.mxu1  ;;  %5062 = vmatmul.msk.bf16.gmra.mxu0 %vm1374_vm7, %v4900_v36  ;;  %v8192_v3 = vadd.f32 %v2990_v22, %v1562_v1  ;;  %v1477_v41 = vpop.f32.mrf.mxu0  ;;  %3189 = vst.msk [vmem:[#allocation2 + $0xf8] sm:$0xf] %vm230_vm4, %v5468_v50  ;;  %v5721_v50 = vld [vmem:[#allocation2 + $0xe8] sm:$0xf0] }
 0x217   : > { %v3673_v37 = vpop.permute.xlu2 %3672  ;;  %v8201_v47 = vpop.f32.mrf.mxu3 }
 0x218   : > { %5791 = vmatmul.msk.bf16.gmra.mxu3 %vm1374_vm7, %v5692_v7  ;;  %5421 = vmatmul.msk.bf16.vlgmr.msrb.gmra.mxu2 %vm1374_vm7, %v5252_v0  ;;  %3743 = vst.msk [vmem:[#allocation2 + $0xc8] sm:$0xf] %vm794_vm8, %v3673_v37  ;;  %v5703_v0 = vld [vmem:[#allocation2 + $0xc0] sm:$0xf] }
 0x21b   : > { %v2902_v2 = vpop.f32.mrf.mxu2 }
 0x21c   : > { %v2992_v20 = vadd.f32 %v7518_v31, %v2902_v2  ;;  %v1567_v31 = vadd.f32 %v7558_v44, %v1477_v41  ;;  %v3677_v26 = vpop.permute.xlu1 %3676  ;;  %v5466_v44 = vld [vmem:[%s6141_s5 + $0xc4] sm:$0xf] }
 0x21d   : > { %3745 = vst.msk [vmem:[#allocation2 + $0xd8] sm:$0xf] %vm794_vm8, %v3677_v26  ;;  %v5914_v41 = vld [vmem:[#allocation2 + $0xc4] sm:$0xf]  ;;  %v5713_v26 = vld [vmem:[#allocation2 + $0xd8] sm:$0xf0] }
 0x21e   : > { %v8199_v21 = vadd.f32 %v2992_v20, %v1564_v58  ;;  %v1479_v7 = vpop.f32.mrf.mxu0  ;;  %v4374_v55 = vpop.f32.mrf.mxu1  ;;  %3187 = vst.msk [vmem:[#allocation2 + $0xe8] sm:$0xf] %vm230_vm4, %v5466_v44  ;;  %v5708_v20 = vor.u32 %v5914_v41, %v5705_v16 }
 0x21f   : > { %v5915_v13 = vld [vmem:[#allocation2 + $0xc4] sm:$0xf0]  ;;  %v1569_v2 = vadd.f32 %v7600_v59, %v1479_v7 }
 0x220   : > { %v5704_v23 = vor.u32 %v5915_v13, %v5703_v0 }
 0x221   : > { %v3675_v1 = vpop.permute.xlu0 %3674 }
 0x222   : > { %4411 = vmatmul.bf16.gmra.mxu1 %v5704_v23  ;;  %3744 = vst.msk [vmem:[#allocation2 + $0xd0] sm:$0xf] %vm794_vm8, %v3675_v1 }
 0x223   : > { %v2905_v36 = vpop.f32.mrf.mxu2 }
 0x224   : > { %v2995_v42 = vadd.f32 %v7562_v8, %v2905_v36  ;;  %v4461_v8 = vpop.f32.mrf.mxu3  ;;  %v5917_v0 = vld [vmem:[#allocation2 + $0xd4] sm:$0xf0]  ;;  %v5268_v36 = vor.u32 %v7693_v51, %v7700_v63  ;;  %v4916_v51 = vor.u32 %v7743_v34, %v7750_v14 }
 0x225   : > { %v8220_v37 = vadd.f32 %v4461_v8, %v4372_v40 }
 0x226   : > { %5063 = vmatmul.msk.bf16.gmra.mxu0 %vm1374_vm7, %v4908_v38  ;;  %v8213_v5 = vadd.f32 %v2995_v42, %v1567_v31  ;;  %v1482_v12 = vpop.f32.mrf.mxu0  ;;  %v4377_v49 = vpop.f32.mrf.mxu1  ;;  %v5916_v42 = vld [vmem:[#allocation2 + $0xd4] sm:$0xf] }
 0x228   : > { %5792 = vmatmul.msk.bf16.gmra.mxu3 %vm1374_vm7, %v5700_v61  ;;  %5422 = vmatmul.msk.bf16.gmra.mxu2 %vm1374_vm7, %v5260_v4 }
 0x229   : > { %v5711_v61 = vld [vmem:[#allocation2 + $0xd0] sm:$0xf] }
 0x22a   : > { %v5712_v4 = vor.u32 %v5917_v0, %v5711_v61  ;;  %v8598_v61 = vld [vmem:[#allocation14_spill] sm:$0xff] }
 0x22b   : > { %v2907_v22 = vpop.f32.mrf.mxu2 }
 0x22c   : > { %v2997_v56 = vadd.f32 %v7603_v46, %v2907_v22  ;;  %v4463_v38 = vpop.f32.mrf.mxu3  ;;  %v1572_v46 = vadd.f32 %v7642_v17, %v1482_v12  ;;  %v5467_v12 = vld [vmem:[%s6141_s5 + $0xcc] sm:$0xf]  ;;  %v5716_v22 = vor.u32 %v5916_v42, %v5713_v26  ;;  %v8602_v26 = vld [vmem:[#allocation9_spill] sm:$0xff]  ;;  %s6016_s5 = scalar_lea.hbm %s8536_s4, 1024 }
 0x22d   : > { %v8229_v31 = vadd.f32 %v4463_v38, %v4374_v55  ;;  %3188 = vst.msk [vmem:[#allocation2 + $0xf0] sm:$0xf] %vm230_vm4, %v5467_v12  ;;  %v5918_v12 = vld [vmem:[#allocation2 + $0xe4] sm:$0xf]  ;;  %p6018_p1 = scmp.lt.s32.totalorder %s6016_s5, %s6012_s23 }
 0x22e   : > { %v8224_v39 = vadd.f32 %v2997_v56, %v1569_v2  ;;  %v1484_v58 = vpop.f32.mrf.mxu0  ;;  %v4379_v13 = vpop.f32.mrf.mxu1 }
 0x22f   : > { %v1574_v44 = vadd.f32 %v7670_v18, %v1484_v58  ;;  %p6019_p2 = por %p6018_p1, %p6017_p0 }
 0x231   : > { %p6020_p3 = pnand %p6019_p2, %p6015_p13 }
 0x232   : > { %4416 = vmatmul.bf16.gmra.mxu1 %v5712_v4 }
 0x233   : > { %v2910_v59 = vpop.f32.mrf.mxu2 }
 0x234   : > { %v3000_v7 = vadd.f32 %v7646_v35, %v2910_v59  ;;  %v8596_v35 = vld [vmem:[#allocation7_spill] sm:$0xff]  ;;  %v8600_v59 = vld [vmem:[#allocation20_spill] sm:$0xff] }
 0x236   : > { %v3679_v40 = vpop.permute.xlu2 %3678  ;;  %v1487_v23 = vpop.f32.mrf.mxu0  ;;  %v8237_v63 = vadd.f32 %v3000_v7, %v1572_v46  ;;  %5064 = vmatmul.msk.bf16.gmra.mxu0 %vm1374_vm7, %v4916_v51 }
 0x237   : > { %3746 = vst.msk [vmem:[#allocation2 + $0xe0] sm:$0xf] %vm794_vm8, %v3679_v40  ;;  %v8599_v40 = vld [vmem:[#allocation22_spill] sm:$0xff] }
 0x238   : > { %5793 = vmatmul.msk.bf16.gmra.mxu3 %vm1374_vm7, %v5708_v20  ;;  %5423 = vmatmul.msk.bf16.gmra.mxu2 %vm1374_vm7, %v5268_v36  ;;  %v8597_v20 = vld [vmem:[#allocation15_spill] sm:$0xff] }
 0x239   : > { %v5276_v18 = vor.u32 %v8598_v61, %v8597_v20  ;;  %v8603_v20 = vld [vmem:[#allocation11_spill] sm:$0xff] }
 0x23b   : > { %v4382_v1 = vpop.f32.mrf.mxu1  ;;  %v2912_v17 = vpop.f32.mrf.mxu2 }
 0x23c   : > { %v3681_v55 = vpop.permute.xlu0 %3680  ;;  %v3002_v8 = vadd.f32 %v8596_v35, %v2912_v17  ;;  %v4466_v41 = vpop.f32.mrf.mxu3 }
 0x23d   : > { %3747 = vst.msk [vmem:[#allocation2 + $0xe8] sm:$0xf] %vm794_vm8, %v3681_v55  ;;  %v8250_v2 = vadd.f32 %v4466_v41, %v4377_v49  ;;  %v4924_v49 = vor.u32 %v8600_v59, %v8599_v40  ;;  %v8601_v55 = vld [vmem:[#allocation8_spill] sm:$0xff] }
 0x23e   : > { %v3685_v34 = vpop.permute.xlu2 %3684  ;;  %v1489_v14 = vpop.f32.mrf.mxu0  ;;  %v8247_v16 = vadd.f32 %v3002_v8, %v1574_v44  ;;  %v5719_v56 = vld [vmem:[#allocation2 + $0xe0] sm:$0xf]  ;;  %v1577_v42 = vadd.f32 %v8601_v55, %v1487_v23 }
 0x23f   : > { %3749 = vst.msk [vmem:[#allocation2 + $0xf8] sm:$0xf] %vm794_vm8, %v3685_v34  ;;  %v5724_v34 = vor.u32 %v5918_v12, %v5721_v50  ;;  %v8609_v12 = vld [vmem:[#allocation18_spill] sm:$0xff] }
 0x243   : > { %v4384_v36 = vpop.f32.mrf.mxu1 }
 0x244   : > { %v5919_v58 = vld [vmem:[#allocation2 + $0xe4] sm:$0xf0]  ;;  %v4468_v46 = vpop.f32.mrf.mxu3 }
 0x245   : > { %v5720_v0 = vor.u32 %v5919_v58, %v5719_v56  ;;  %v8259_v7 = vadd.f32 %v4468_v46, %v4379_v13  ;;  %v1579_v13 = vadd.f32 %v8603_v20, %v1489_v14  ;;  %v8607_v14 = vld [vmem:[#allocation32_spill] sm:$0xff] }
 0x246   : > { %v1492_v38 = vpop.f32.mrf.mxu0  ;;  %5065 = vmatmul.msk.bf16.gmra.mxu0 %vm1374_vm7, %v4924_v49  ;;  %v5921_v41 = vld [vmem:[#allocation2 + $0xf4] sm:$0xf0]  ;;  %v4932_v55 = vor.u32 %v8607_v14, %v7932_v62  ;;  %v8610_v62 = vld [vmem:[#allocation23_spill] sm:$0xff] }
 0x247   : > { %4421 = vmatmul.bf16.gmra.mxu1 %v5720_v0  ;;  %v8605_v0 = vld [vmem:[#allocation27_spill] sm:$0xff] }
 0x248   : > { %5794 = vmatmul.msk.bf16.gmra.mxu3 %vm1374_vm7, %v5716_v22  ;;  %v3683_v4 = vpop.permute.xlu1 %3682  ;;  %5424 = vmatmul.msk.bf16.gmra.mxu2 %vm1374_vm7, %v5276_v18  ;;  %v8604_v18 = vld [vmem:[#allocation12_spill] sm:$0xff] }
 0x249   : > { %3748 = vst.msk [vmem:[#allocation2 + $0xf0] sm:$0xf] %vm794_vm8, %v3683_v4  ;;  %v2915_v51 = vpop.f32.mrf.mxu2  ;;  %v8606_v4 = vld [vmem:[#allocation26_spill] sm:$0xff] }
 0x24a   : > { %v3005_v17 = vadd.f32 %v8602_v26, %v2915_v51  ;;  %v5284_v23 = vor.u32 %v8606_v4, %v8605_v0  ;;  %v8608_v26 = vld [vmem:[#allocation17_spill] sm:$0xff]  ;;  %v8611_v0 = vld [vmem:[#allocation24_spill] sm:$0xff] }
 0x24c   : > { %v8264_v44 = vadd.f32 %v3005_v17, %v1577_v42  ;;  %v4387_v35 = vpop.f32.mrf.mxu1  ;;  %v1582_v17 = vadd.f32 %v8608_v26, %v1492_v38  ;;  %v5292_v38 = vor.u32 %v7956_v52, %v7964_v24  ;;  %v8305_v24 = vld [vmem:[%s8535_s3] ss:$0 sm:$0xff] }
 0x24e   : > { %v1494_v8 = vpop.f32.mrf.mxu0 }
 0x250   : > { %v5727_v22 = vld [vmem:[#allocation2 + $0xf0] sm:$0xf] }
 0x251   : > { %v2917_v56 = vpop.f32.mrf.mxu2  ;;  %v5728_v61 = vor.u32 %v5921_v41, %v5727_v22  ;;  %v5729_v22 = vld [vmem:[#allocation2 + $0xf8] sm:$0xf0] }
 0x252   : > { %v3007_v58 = vadd.f32 %v8604_v18, %v2917_v56 }
 0x254   : > { %v8271_v40 = vadd.f32 %v3007_v58, %v1579_v13  ;;  %v4389_v59 = vpop.f32.mrf.mxu1  ;;  %v1584_v58 = vadd.f32 %v8610_v62, %v1494_v8  ;;  %v8296_v8 = vld [vmem:[%s8534_s2] ss:$0 sm:$0xff] }
 0x256   : > { %v1497_v46 = vpop.f32.mrf.mxu0  ;;  %5066 = vmatmul.msk.bf16.gmra.mxu0 %vm1374_vm7, %v4932_v55 }
 0x257   : > { %4426 = vmatmul.bf16.gmra.mxu1 %v5728_v61 }
 0x258   : > { %5795 = vmatmul.msk.bf16.gmra.mxu3 %vm1374_vm7, %v5724_v34  ;;  %5425 = vmatmul.msk.bf16.gmra.mxu2 %vm1374_vm7, %v5284_v23  ;;  %v5920_v34 = vld [vmem:[#allocation2 + $0xf4] sm:$0xf] }
 0x259   : > { %v5732_v61 = vor.u32 %v5920_v34, %v5729_v22 }
 0x25b   : > { %v4471_v49 = vpop.f32.mrf.mxu3  ;;  %v2920_v42 = vpop.f32.mrf.mxu2 }
 0x25c   : > { %v8274_v51 = vadd.f32 %v4471_v49, %v4382_v1  ;;  %v3010_v50 = vadd.f32 %v8609_v12, %v2920_v42  ;;  %v8612_v42 = vld [vmem:[#allocation44_spill] sm:$0xff] }
 0x25d   : > { %v4392_v56 = vpop.f32.mrf.mxu1  ;;  %v4940_v26 = vor.u32 %v8612_v42, %v8028_v29  ;;  %v5300_v42 = vor.u32 %v8056_v57, %v8066_v28  ;;  %v8618_v28 = vld [vmem:[#allocation39_spill] sm:$0xff] }
 0x25e   : > { %v8281_v41 = vadd.f32 %v3010_v50, %v1582_v17  ;;  %v1499_v13 = vpop.f32.mrf.mxu0  ;;  %v8614_v50 = vld [vmem:[#allocation30_spill] sm:$0xff] }
 0x263   : > { %v4473_v20 = vpop.f32.mrf.mxu3  ;;  %v2922_v18 = vpop.f32.mrf.mxu2 }
 0x264   : > { %v8283_v1 = vadd.f32 %v4473_v20, %v4384_v36  ;;  %v3012_v4 = vadd.f32 %v8611_v0, %v2922_v18 }
 0x265   : > { %v4394_v49 = vpop.f32.mrf.mxu1 }
 0x266   : > { %v8290_v23 = vadd.f32 %v3012_v4, %v1584_v58  ;;  %v1502_v36 = vpop.f32.mrf.mxu0  ;;  %5067 = vmatmul.msk.bf16.gmra.mxu0 %vm1374_vm7, %v4940_v26  ;;  %v8615_v4 = vld [vmem:[#allocation34_spill] sm:$0xff] }
 0x268   : > { %5796 = vmatmul.msk.bf16.gmra.mxu3 %vm1374_vm7, %v5732_v61  ;;  %5426 = vmatmul.msk.bf16.gmra.mxu2 %vm1374_vm7, %v5292_v38  ;;  %v1589_v38 = vadd.f32 %v8615_v4, %v1499_v13 }
 0x26b   : > { %v4476_v14 = vpop.f32.mrf.mxu3  ;;  %v2925_v17 = vpop.f32.mrf.mxu2 }
 0x26c   : > { %v4477_v55 = vadd.f32 %v4476_v14, %v4387_v35  ;;  %v8613_v35 = vld [vmem:[#allocation29_spill] sm:$0xff]  ;;  %v3015_v34 = vadd.f32 %v8614_v50, %v2925_v17  ;;  %v8616_v14 = vld [vmem:[#allocation35_spill] sm:$0xff] }
 0x26d   : > { %v1587_v12 = vadd.f32 %v8613_v35, %v1497_v46  ;;  %v4397_v20 = vpop.f32.mrf.mxu1 }
 0x26e   : > { %v4567_v52 = vadd.f32 %v4477_v55, %v8167_v53  ;;  %v1504_v18 = vpop.f32.mrf.mxu0 }
 0x26f   : > { %v8313_v29 = vadd.f32 %v3015_v34, %v1587_v12 }
 0x270   : > { %v4667_v22 = vmul.f32 %v8296_v8, %v4567_v52 }
 0x272   : > { %v4703_v53 = vadd.f32 %v8305_v24, %v4667_v22  ;;  %v8617_v22 = vld [vmem:[#allocation38_spill] sm:$0xff] }
 0x273   : > { %v4478_v61 = vpop.f32.mrf.mxu3  ;;  %v2927_v0 = vpop.f32.mrf.mxu2  ;;  %v1592_v57 = vadd.f32 %v8617_v22, %v1502_v36 }
 0x274   : > { %v4735_v62 = vmax.f32 %v4703_v53, 0.0  ;;  %v4479_v58 = vadd.f32 %v4478_v61, %v4389_v59  ;;  %v3017_v55 = vadd.f32 %v8616_v14, %v2927_v0 }
 0x275   : > { %v4399_v17 = vpop.f32.mrf.mxu1 }
 0x276   : > { %4767 = vst [vmem:[%s8316_s9 + $0x70] sm:$0xff] %v4735_v62  ;;  %v4568_v46 = vadd.f32 %v4479_v58, %v8176_v9  ;;  %v8325_v52 = vadd.f32 %v3017_v55, %v1589_v38  ;;  %v1507_v12 = vpop.f32.mrf.mxu0  ;;  %v8619_v55 = vld [vmem:[#allocation42_spill] sm:$0xff] }
 0x277   : > { %v1594_v36 = vadd.f32 %v8619_v55, %v1504_v18  ;;  %v1597_v18 = vadd.f32 %v8044_v60, %v1507_v12  ;;  %v8623_v12 = vld [vmem:[#allocation51_spill] sm:$0xff] }
 0x278   : > { %v4668_v26 = vmul.f32 %v8296_v8, %v4568_v46  ;;  %5427 = vmatmul.msk.bf16.gmra.mxu2 %vm1374_vm7, %v5300_v42  ;;  %v8620_v42 = vld [vmem:[#allocation43_spill] sm:$0xff] }
 0x27a   : > { %v4704_v59 = vadd.f32 %v8305_v24, %v4668_v26 }
 0x27b   : > { %v4481_v35 = vpop.f32.mrf.mxu3  ;;  %v2930_v34 = vpop.f32.mrf.mxu2 }
 0x27c   : > { %v4736_v9 = vmax.f32 %v4704_v59, 0.0  ;;  %v4482_v50 = vadd.f32 %v4481_v35, %v4392_v56  ;;  %v3020_v53 = vadd.f32 %v8618_v28, %v2930_v34  ;;  %v8621_v28 = vld [vmem:[#allocation47_spill] sm:$0xff] }
 0x27d   : > { %v4402_v46 = vpop.f32.mrf.mxu1 }
 0x27e   : > { %4768 = vst [vmem:[%s8316_s9 + $0x78] sm:$0xff] %v4736_v9  ;;  %v4569_v13 = vadd.f32 %v4482_v50, %v8192_v3  ;;  %v8334_v62 = vadd.f32 %v3020_v53, %v1592_v57  ;;  %v1509_v4 = vpop.f32.mrf.mxu0 }
 0x280   : > { %v4669_v61 = vmul.f32 %v8296_v8, %v4569_v13 }
 0x282   : > { %v4705_v58 = vadd.f32 %v8305_v24, %v4669_v61 }
 0x283   : > { %v4483_v0 = vpop.f32.mrf.mxu3  ;;  %v2932_v14 = vpop.f32.mrf.mxu2 }
 0x284   : > { %v4737_v38 = vmax.f32 %v4705_v58, 0.0  ;;  %v4484_v56 = vadd.f32 %v4483_v0, %v4394_v49  ;;  %v3022_v26 = vadd.f32 %v8620_v42, %v2932_v14 }
 0x285   : > { %v4404_v49 = vpop.f32.mrf.mxu1 }
 0x286   : > { %4769 = vst [vmem:[%s8316_s9 + $0x80] sm:$0xff] %v4737_v38  ;;  %v4570_v3 = vadd.f32 %v4484_v56, %v8199_v21  ;;  %v8342_v35 = vadd.f32 %v3022_v26, %v1594_v36  ;;  %v1521_v13 = vpop.f32.mrf.mxu0  ;;  %v8622_v36 = vld [vmem:[#allocation50_spill] sm:$0xff] }
 0x287   : > { %v1599_v60 = vadd.f32 %v8622_v36, %v1509_v4  ;;  %v8625_v4 = vld [vmem:[#allocation16_spill] sm:$0xff] }
 0x288   : > { %v4670_v59 = vmul.f32 %v8296_v8, %v4570_v3 }
 0x28a   : > { %v4706_v9 = vadd.f32 %v8305_v24, %v4670_v59 }
 0x28b   : > { %v4486_v50 = vpop.f32.mrf.mxu3  ;;  %v2935_v57 = vpop.f32.mrf.mxu2 }
 0x28c   : > { %v4738_v34 = vmax.f32 %v4706_v9, 0.0  ;;  %v4487_v22 = vadd.f32 %v4486_v50, %v4397_v20  ;;  %v3025_v53 = vadd.f32 %v8621_v28, %v2935_v57  ;;  %v8624_v57 = vld [vmem:[#allocation10_spill] sm:$0xff] }
 0x28e   : > { %4770 = vst [vmem:[%s8316_s9 + $0x88] sm:$0xff] %v4738_v34  ;;  %v4571_v21 = vadd.f32 %v4487_v22, %v8213_v5  ;;  %v8350_v58 = vadd.f32 %v3025_v53, %v1597_v18  ;;  %v1523_v56 = vpop.f32.mrf.mxu0  ;;  %v4407_v5 = vpop.f32.mrf.mxu1  ;;  %v1522_v18 = vadd.f32 %v1521_v13, %v8624_v57 }
 0x290   : > { %v4671_v61 = vmul.f32 %v8296_v8, %v4571_v21 }
 0x292   : > { %v4707_v0 = vadd.f32 %v8305_v24, %v4671_v61 }
 0x293   : > { %v4488_v38 = vpop.f32.mrf.mxu3  ;;  %v2937_v55 = vpop.f32.mrf.mxu2 }
 0x294   : > { %v4739_v3 = vmax.f32 %v4707_v0, 0.0  ;;  %v4489_v20 = vadd.f32 %v4488_v38, %v4399_v17  ;;  %v3027_v42 = vadd.f32 %v8623_v12, %v2937_v55 }
 0x296   : > { %4771 = vst [vmem:[%s8316_s9 + $0x90] sm:$0xff] %v4739_v3  ;;  %v4572_v14 = vadd.f32 %v4489_v20, %v8224_v39  ;;  %v8358_v59 = vadd.f32 %v3027_v42, %v1599_v60  ;;  %v1526_v34 = vpop.f32.mrf.mxu0  ;;  %v4409_v61 = vpop.f32.mrf.mxu1  ;;  %v8626_v60 = vld [vmem:[#allocation13_spill] sm:$0xff] }
 0x297   : > { %v1524_v12 = vadd.f32 %v1523_v56, %v8626_v60 }
 0x298   : > { %v4672_v26 = vmul.f32 %v8296_v8, %v4572_v14 }
 0x29a   : > { %v4708_v9 = vadd.f32 %v8305_v24, %v4672_v26  ;;  %v8627_v26 = vld [vmem:[#allocation21_spill] sm:$0xff] }
 0x29b   : > { %v4491_v50 = vpop.f32.mrf.mxu3  ;;  %v2949_v17 = vpop.f32.mrf.mxu2 }
 0x29c   : > { %v4740_v22 = vmax.f32 %v4708_v9, 0.0  ;;  %v4492_v21 = vadd.f32 %v4491_v50, %v4402_v46  ;;  %v2950_v28 = vadd.f32 %v2949_v17, %v8625_v4 }
 0x29e   : > { %4772 = vst [vmem:[%s8316_s9 + $0x98] sm:$0xff] %v4740_v22  ;;  %v4573_v39 = vadd.f32 %v4492_v21, %v8237_v63  ;;  %v3061_v0 = vadd.f32 %v2950_v28, %v1522_v18  ;;  %v1528_v14 = vpop.f32.mrf.mxu0 }
 0x2a0   : > { %v4673_v53 = vmul.f32 %v8296_v8, %v4573_v39  ;;  %v4553_v20 = vadd.f32 %v8105_v10, %v3061_v0  ;;  %v4444_v10 = vadd.f32 %v8121_v43, %v8115_v45  ;;  %v4412_v39 = vpop.f32.mrf.mxu1  ;;  %v8628_v0 = vld [vmem:[#allocation19_spill] sm:$0xff] }
 0x2a1   : > { %v1527_v43 = vadd.f32 %v1526_v34, %v8628_v0 }
 0x2a2   : > { %v4709_v38 = vadd.f32 %v8305_v24, %v4673_v53  ;;  %v4653_v63 = vmul.f32 %v8296_v8, %v4553_v20 }
 0x2a3   : > { %v4493_v3 = vpop.f32.mrf.mxu3  ;;  %v2951_v36 = vpop.f32.mrf.mxu2 }
 0x2a4   : > { %v4741_v46 = vmax.f32 %v4709_v38, 0.0  ;;  %v4494_v55 = vadd.f32 %v4493_v3, %v4404_v49  ;;  %v4689_v42 = vadd.f32 %v8305_v24, %v4653_v63  ;;  %v2952_v9 = vadd.f32 %v2951_v36, %v8627_v26  ;;  %v8629_v38 = vld [vmem:[#allocation28_spill] sm:$0xff] }
 0x2a6   : > { %4773 = vst [vmem:[%s8316_s9 + $0xa0] sm:$0xff] %v4741_v46  ;;  %v4574_v13 = vadd.f32 %v4494_v55, %v8247_v16  ;;  %v4721_v22 = vmax.f32 %v4689_v42, 0.0  ;;  %v3062_v49 = vadd.f32 %v2952_v9, %v1524_v12  ;;  %v1531_v56 = vpop.f32.mrf.mxu0  ;;  %v8630_v9 = vld [vmem:[#allocation25_spill] sm:$0xff] }
 0x2a8   : > { %v4674_v50 = vmul.f32 %v8296_v8, %v4574_v13  ;;  %4753 = vst [vmem:[%s8316_s9] sm:$0xff] %v4721_v22  ;;  %v4554_v16 = vadd.f32 %v4444_v10, %v3062_v49  ;;  %v4414_v12 = vpop.f32.mrf.mxu1  ;;  %v8631_v22 = vld [vmem:[#allocation33_spill] sm:$0xff] }
 0x2aa   : > { %v4710_v21 = vadd.f32 %v8305_v24, %v4674_v50  ;;  %v4654_v4 = vmul.f32 %v8296_v8, %v4554_v16  ;;  %v1529_v50 = vadd.f32 %v1528_v14, %v8630_v9  ;;  %v8635_v9 = vld [vmem:[#allocation41_spill] sm:$0xff] }
 0x2ab   : > { %v4496_v17 = vpop.f32.mrf.mxu3  ;;  %v2954_v53 = vpop.f32.mrf.mxu2 }
 0x2ac   : > { %v4742_v57 = vmax.f32 %v4710_v21, 0.0  ;;  %v4497_v18 = vadd.f32 %v4496_v17, %v4407_v5  ;;  %v4690_v45 = vadd.f32 %v8305_v24, %v4654_v4  ;;  %v2955_v3 = vadd.f32 %v2954_v53, %v8629_v38  ;;  %v8633_v38 = vld [vmem:[#allocation37_spill] sm:$0xff] }
 0x2ae   : > { %4774 = vst [vmem:[%s8316_s9 + $0xa8] sm:$0xff] %v4742_v57  ;;  %v4575_v28 = vadd.f32 %v4497_v18, %v8264_v44  ;;  %v4722_v46 = vmax.f32 %v4690_v45, 0.0  ;;  %v3063_v55 = vadd.f32 %v2955_v3, %v1527_v43  ;;  %v1533_v60 = vpop.f32.mrf.mxu0  ;;  %v8632_v43 = vld [vmem:[#allocation31_spill] sm:$0xff] }
 0x2b0   : > { %v4675_v20 = vmul.f32 %v8296_v8, %v4575_v28  ;;  %4754 = vst [vmem:[%s8316_s9 + $0x8] sm:$0xff] %v4722_v46  ;;  %v4555_v13 = vadd.f32 %v8137_v6, %v3063_v55 }
 0x2b2   : > { %v4711_v63 = vadd.f32 %v8305_v24, %v4675_v20  ;;  %v4655_v34 = vmul.f32 %v8296_v8, %v4555_v13 }
 0x2b3   : > { %v4498_v5 = vpop.f32.mrf.mxu3  ;;  %v2956_v26 = vpop.f32.mrf.mxu2 }
 0x2b4   : > { %v4743_v36 = vmax.f32 %v4711_v63, 0.0  ;;  %v4499_v44 = vadd.f32 %v4498_v5, %v4409_v61  ;;  %v4691_v10 = vadd.f32 %v8305_v24, %v4655_v34  ;;  %v2957_v49 = vadd.f32 %v2956_v26, %v8631_v22  ;;  %v8634_v34 = vld [vmem:[#allocation36_spill] sm:$0xff] }
 0x2b5   : > { %v4449_v61 = vadd.f32 %v8148_v33, %v8139_v54  ;;  %v1532_v54 = vadd.f32 %v1531_v56, %v8632_v43  ;;  %v4417_v33 = vpop.f32.mrf.mxu1 }
 0x2b6   : > { %4775 = vst [vmem:[%s8316_s9 + $0xb0] sm:$0xff] %v4743_v36  ;;  %v4576_v42 = vadd.f32 %v4499_v44, %v8271_v40  ;;  %v4723_v21 = vmax.f32 %v4691_v10, 0.0  ;;  %v3064_v17 = vadd.f32 %v2957_v49, %v1529_v50  ;;  %v1536_v0 = vpop.f32.mrf.mxu0 }
 0x2b8   : > { %v4676_v6 = vmul.f32 %v8296_v8, %v4576_v42  ;;  %4755 = vst [vmem:[%s8316_s9 + $0x10] sm:$0xff] %v4723_v21  ;;  %v4556_v40 = vadd.f32 %v4449_v61, %v3064_v17  ;;  %v1534_v42 = vadd.f32 %v1533_v60, %v8634_v34 }
 0x2ba   : > { %v4712_v16 = vadd.f32 %v8305_v24, %v4676_v6  ;;  %v4656_v14 = vmul.f32 %v8296_v8, %v4556_v40 }
 0x2bb   : > { %v4501_v57 = vpop.f32.mrf.mxu3  ;;  %v2959_v53 = vpop.f32.mrf.mxu2 }
 0x2bc   : > { %v4744_v18 = vmax.f32 %v4712_v16, 0.0  ;;  %v4502_v4 = vadd.f32 %v4501_v57, %v4412_v39  ;;  %v4692_v45 = vadd.f32 %v8305_v24, %v4656_v14  ;;  %v2960_v3 = vadd.f32 %v2959_v53, %v8633_v38 }
 0x2be   : > { %4776 = vst [vmem:[%s8316_s9 + $0xb8] sm:$0xff] %v4744_v18  ;;  %v4577_v28 = vadd.f32 %v4502_v4, %v8281_v41  ;;  %v4724_v46 = vmax.f32 %v4692_v45, 0.0  ;;  %v3065_v55 = vadd.f32 %v2960_v3, %v1532_v54  ;;  %v1538_v22 = vpop.f32.mrf.mxu0  ;;  %v8636_v18 = vld [vmem:[#allocation40_spill] sm:$0xff]  ;;  %v8637_v4 = vld [vmem:[#allocation46_spill] sm:$0xff] }
 0x2c0   : > { %v4677_v20 = vmul.f32 %v8296_v8, %v4577_v28  ;;  %4756 = vst [vmem:[%s8316_s9 + $0x18] sm:$0xff] %v4724_v46  ;;  %v4557_v41 = vadd.f32 %v8155_v27, %v3065_v55  ;;  %v4454_v27 = vadd.f32 %v8174_v25, %v8153_v48  ;;  %v1537_v48 = vadd.f32 %v1536_v0, %v8636_v18 }
 0x2c2   : > { %v4713_v39 = vadd.f32 %v8305_v24, %v4677_v20  ;;  %v4657_v56 = vmul.f32 %v8296_v8, %v4557_v41 }
 0x2c3   : > { %v4503_v63 = vpop.f32.mrf.mxu3  ;;  %v2961_v44 = vpop.f32.mrf.mxu2 }
 0x2c4   : > { %v4745_v5 = vmax.f32 %v4713_v39, 0.0  ;;  %v4504_v13 = vadd.f32 %v4503_v63, %v4414_v12  ;;  %v4693_v26 = vadd.f32 %v8305_v24, %v4657_v56  ;;  %v2962_v50 = vadd.f32 %v2961_v44, %v8635_v9  ;;  %v4419_v12 = vpop.f32.mrf.mxu1  ;;  %v8638_v39 = vld [vmem:[#allocation45_spill] sm:$0xff] }
 0x2c5   : > { %v1539_v63 = vadd.f32 %v1538_v22, %v8638_v39 }
 0x2c6   : > { %4777 = vst [vmem:[%s8316_s9 + $0xc0] sm:$0xff] %v4745_v5  ;;  %v4578_v36 = vadd.f32 %v4504_v13, %v8290_v23  ;;  %v4725_v49 = vmax.f32 %v4693_v26, 0.0  ;;  %v3066_v6 = vadd.f32 %v2962_v50, %v1534_v42  ;;  %v8639_v5 = vld [vmem:[#allocation49_spill] sm:$0xff] }
 0x2c8   : > { %v4678_v10 = vmul.f32 %v8296_v8, %v4578_v36  ;;  %4757 = vst [vmem:[%s8316_s9 + $0x20] sm:$0xff] %v4725_v49  ;;  %v4558_v21 = vadd.f32 %v4454_v27, %v3066_v6 }
 0x2ca   : > { %v4714_v61 = vadd.f32 %v8305_v24, %v4678_v10  ;;  %v4658_v16 = vmul.f32 %v8296_v8, %v4558_v21 }
 0x2cb   : > { %v4506_v23 = vpop.f32.mrf.mxu3  ;;  %v2964_v40 = vpop.f32.mrf.mxu2 }
 0x2cc   : > { %v4746_v60 = vmax.f32 %v4714_v61, 0.0  ;;  %v4507_v17 = vadd.f32 %v4506_v23, %v4417_v33  ;;  %v4694_v25 = vadd.f32 %v8305_v24, %v4658_v16  ;;  %v2965_v14 = vadd.f32 %v2964_v40, %v8637_v4  ;;  %v1541_v33 = vpop.f32.mrf.mxu0  ;;  %v4422_v38 = vpop.f32.mrf.mxu1 }
 0x2ce   : > { %4778 = vst [vmem:[%s8316_s9 + $0xc8] sm:$0xff] %v4746_v60  ;;  %v4579_v57 = vadd.f32 %v4507_v17, %v8313_v29  ;;  %v4726_v53 = vmax.f32 %v4694_v25, 0.0  ;;  %v3067_v43 = vadd.f32 %v2965_v14, %v1537_v48 }
 0x2d0   : > { %v4679_v28 = vmul.f32 %v8296_v8, %v4579_v57  ;;  %4758 = vst [vmem:[%s8316_s9 + $0x28] sm:$0xff] %v4726_v53  ;;  %v4559_v29 = vadd.f32 %v8194_v30, %v3067_v43  ;;  %v4459_v30 = vadd.f32 %v8201_v47, %v8172_v19  ;;  %v8640_v19 = vld [vmem:[#allocation48_spill] sm:$0xff] }
 0x2d1   : > { %v1542_v47 = vadd.f32 %v1541_v33, %v8640_v19 }
 0x2d2   : > { %v4715_v54 = vadd.f32 %v8305_v24, %v4679_v28  ;;  %v4659_v0 = vmul.f32 %v8296_v8, %v4559_v29  ;;  %v8641_v28 = vld [vmem:[#allocation53_spill] sm:$0xff] }
 0x2d3   : > { %v4508_v45 = vpop.f32.mrf.mxu3  ;;  %v2966_v55 = vpop.f32.mrf.mxu2 }
 0x2d4   : > { %v4747_v3 = vmax.f32 %v4715_v54, 0.0  ;;  %v4509_v20 = vadd.f32 %v4508_v45, %v4419_v12  ;;  %v4695_v41 = vadd.f32 %v8305_v24, %v4659_v0  ;;  %v2967_v13 = vadd.f32 %v2966_v55, %v8639_v5  ;;  %v1543_v50 = vpop.f32.mrf.mxu0  ;;  %v4424_v10 = vpop.f32.mrf.mxu1  ;;  %v8642_v0 = vld [vmem:[#allocation52_spill] sm:$0xff] }
 0x2d5   : > { %v1544_v4 = vadd.f32 %v1543_v50, %v8091_v15  ;;  %v8644_v50 = vld [vmem:[#allocation56_spill] sm:$0xff] }
 0x2d6   : > { %4779 = vst [vmem:[%s8316_s9 + $0xd0] sm:$0xff] %v4747_v3  ;;  %v4580_v46 = vadd.f32 %v4509_v20, %v8325_v52  ;;  %v4727_v36 = vmax.f32 %v4695_v41, 0.0  ;;  %v3068_v44 = vadd.f32 %v2967_v13, %v1539_v63 }
 0x2d8   : > { %v4680_v56 = vmul.f32 %v8296_v8, %v4580_v46  ;;  %4759 = vst [vmem:[%s8316_s9 + $0x30] sm:$0xff] %v4727_v36  ;;  %v4560_v52 = vadd.f32 %v4459_v30, %v3068_v44 }
 0x2da   : > { %v4716_v34 = vadd.f32 %v8305_v24, %v4680_v56  ;;  %v4660_v22 = vmul.f32 %v8296_v8, %v4560_v52  ;;  %v8643_v52 = vld [vmem:[#allocation54_spill] sm:$0xff] }
 0x2db   : > { %v4511_v42 = vpop.f32.mrf.mxu3  ;;  %v2969_v12 = vpop.f32.mrf.mxu2 }
 0x2dc   : > { %v4748_v26 = vmax.f32 %v4716_v34, 0.0  ;;  %v4512_v9 = vadd.f32 %v4511_v42, %v4422_v38  ;;  %v4696_v49 = vadd.f32 %v8305_v24, %v4660_v22  ;;  %v2970_v6 = vadd.f32 %v2969_v12, %v8100_v32  ;;  %v1546_v48 = vpop.f32.mrf.mxu0  ;;  %v4427_v25 = vpop.f32.mrf.mxu1 }
 0x2dd   : > { %v1547_v46 = vadd.f32 %v1546_v48, %v8642_v0  ;;  %v8647_v48 = vld [vmem:[#allocation57_spill] sm:$0xff] }
 0x2de   : > { %4780 = vst [vmem:[%s8316_s9 + $0xd8] sm:$0xff] %v4748_v26  ;;  %v4581_v27 = vadd.f32 %v4512_v9, %v8334_v62  ;;  %v4728_v23 = vmax.f32 %v4696_v49, 0.0  ;;  %v3069_v21 = vadd.f32 %v2970_v6, %v1542_v47 }
 0x2e0   : > { %v4681_v61 = vmul.f32 %v8296_v8, %v4581_v27  ;;  %4760 = vst [vmem:[%s8316_s9 + $0x38] sm:$0xff] %v4728_v23  ;;  %v4561_v16 = vadd.f32 %v8220_v37, %v3069_v21 }
 0x2e2   : > { %v4717_v60 = vadd.f32 %v8305_v24, %v4681_v61  ;;  %v4661_v40 = vmul.f32 %v8296_v8, %v4561_v16  ;;  %v8645_v61 = vld [vmem:[#allocation55_spill] sm:$0xff] }
 0x2e3   : > { %v4513_v17 = vpop.f32.mrf.mxu3  ;;  %v2971_v32 = vpop.f32.mrf.mxu2 }
 0x2e4   : > { %v4749_v57 = vmax.f32 %v4717_v60, 0.0  ;;  %v4514_v62 = vadd.f32 %v4513_v17, %v4424_v10  ;;  %v4697_v14 = vadd.f32 %v8305_v24, %v4661_v40  ;;  %v2972_v53 = vadd.f32 %v2971_v32, %v8641_v28  ;;  %v1548_v41 = vpop.f32.mrf.mxu0  ;;  %v8646_v60 = vld [vmem:[#allocation58_spill] sm:$0xff] }
 0x2e5   : > { %v1549_v26 = vadd.f32 %v1548_v41, %v8643_v52 }
 0x2e6   : > { %4781 = vst [vmem:[%s8316_s9 + $0xe0] sm:$0xff] %v4749_v57  ;;  %v4582_v18 = vadd.f32 %v4514_v62, %v8342_v35  ;;  %v4729_v43 = vmax.f32 %v4697_v14, 0.0  ;;  %v3070_v54 = vadd.f32 %v2972_v53, %v1544_v4  ;;  %v8648_v4 = vld [vmem:[#allocation59_spill] sm:$0xff] }
 0x2e8   : > { %v4682_v37 = vmul.f32 %v8296_v8, %v4582_v18  ;;  %4761 = vst [vmem:[%s8316_s9 + $0x40] sm:$0xff] %v4729_v43  ;;  %v4562_v35 = vadd.f32 %v8229_v31, %v3070_v54  ;;  %v4429_v31 = vpop.f32.mrf.mxu1 }
 0x2ea   : > { %v4718_v33 = vadd.f32 %v8305_v24, %v4682_v37  ;;  %v4662_v3 = vmul.f32 %v8296_v8, %v4562_v35 }
 0x2eb   : > { %v4516_v45 = vpop.f32.mrf.mxu3  ;;  %v2974_v20 = vpop.f32.mrf.mxu2 }
 0x2ec   : > { %v4750_v38 = vmax.f32 %v4718_v33, 0.0  ;;  %v4517_v29 = vadd.f32 %v4516_v45, %v4427_v25  ;;  %v4698_v55 = vadd.f32 %v8305_v24, %v4662_v3  ;;  %v2975_v39 = vadd.f32 %v2974_v20, %v8128_v11  ;;  %v1551_v19 = vpop.f32.mrf.mxu0 }
 0x2ed   : > { %v1552_v23 = vadd.f32 %v1551_v19, %v8645_v61 }
 0x2ee   : > { %4782 = vst [vmem:[%s8316_s9 + $0xe8] sm:$0xff] %v4750_v38  ;;  %v4583_v15 = vadd.f32 %v4517_v29, %v8350_v58  ;;  %v4730_v5 = vmax.f32 %v4698_v55, 0.0  ;;  %v3071_v13 = vadd.f32 %v2975_v39, %v1547_v46 }
 0x2f0   : > { %v4683_v63 = vmul.f32 %v8296_v8, %v4583_v15  ;;  %4762 = vst [vmem:[%s8316_s9 + $0x48] sm:$0xff] %v4730_v5  ;;  %v4563_v58 = vadd.f32 %v8250_v2, %v3071_v13 }
 0x2f2   : > { %v4719_v56 = vadd.f32 %v8305_v24, %v4683_v63  ;;  %v4663_v34 = vmul.f32 %v8296_v8, %v4563_v58 }
 0x2f3   : > { %v4518_v30 = vpop.f32.mrf.mxu3  ;;  %v2976_v42 = vpop.f32.mrf.mxu2 }
 0x2f4   : > { %v4751_v36 = vmax.f32 %v4719_v56, 0.0  ;;  %v4519_v44 = vadd.f32 %v4518_v30, %v4429_v31  ;;  %v4699_v9 = vadd.f32 %v8305_v24, %v4663_v34  ;;  %v2977_v10 = vadd.f32 %v2976_v42, %v8644_v50 }
 0x2f6   : > { %4783 = vst [vmem:[%s8316_s9 + $0xf0] sm:$0xff] %v4751_v36  ;;  %v4584_v11 = vadd.f32 %v4519_v44, %v8358_v59  ;;  %v4731_v27 = vmax.f32 %v4699_v9, 0.0  ;;  %v3072_v2 = vadd.f32 %v2977_v10, %v1549_v26 }
 0x2f8   : > { %v4684_v22 = vmul.f32 %v8296_v8, %v4584_v11  ;;  %4763 = vst [vmem:[%s8316_s9 + $0x50] sm:$0xff] %v4731_v27  ;;  %v4564_v47 = vadd.f32 %v8259_v7, %v3072_v2  ;;  %v1553_v7 = vpop.f32.mrf.mxu0 }
 0x2f9   : > { %v1554_v32 = vadd.f32 %v1553_v7, %v8647_v48 }
 0x2fa   : > { %v4720_v12 = vadd.f32 %v8305_v24, %v4684_v22  ;;  %v4664_v59 = vmul.f32 %v8296_v8, %v4564_v47 }
 0x2fb   : > { %v2979_v6 = vpop.f32.mrf.mxu2 }
 0x2fc   : > { %v4752_v49 = vmax.f32 %v4720_v12, 0.0  ;;  %v4700_v21 = vadd.f32 %v8305_v24, %v4664_v59  ;;  %v2980_v17 = vadd.f32 %v2979_v6, %v8646_v60 }
 0x2fe   : > { %4784 = vst [vmem:[%s8316_s9 + $0xf8] sm:$0xff] %v4752_v49  ;;  %v4732_v16 = vmax.f32 %v4700_v21, 0.0  ;;  %v3073_v57 = vadd.f32 %v2980_v17, %v1552_v23 }
 0x300   : > { %4764 = vst [vmem:[%s8316_s9 + $0x58] sm:$0xff] %v4732_v16  ;;  %v4565_v62 = vadd.f32 %v8274_v51, %v3073_v57 }
 0x302   : > { %v4665_v40 = vmul.f32 %v8296_v8, %v4565_v62 }
 0x303   : > { %v2981_v18 = vpop.f32.mrf.mxu2 }
 0x304   : > { %v4701_v25 = vadd.f32 %v8305_v24, %v4665_v40  ;;  %v2982_v14 = vadd.f32 %v2981_v18, %v8648_v4 }
 0x306   : > { %v4733_v28 = vmax.f32 %v4701_v25, 0.0  ;;  %v3074_v53 = vadd.f32 %v2982_v14, %v1554_v32 }
 0x308   : > { %4765 = vst [vmem:[%s8316_s9 + $0x60] sm:$0xff] %v4733_v28  ;;  %v4566_v51 = vadd.f32 %v8283_v1, %v3074_v53 }
 0x30a   : > { %v4666_v37 = vmul.f32 %v8296_v8, %v4566_v51 }
 0x30c   : > { %v4702_v43 = vadd.f32 %v8305_v24, %v4666_v37 }
 0x30e   : > { %v4734_v54 = vmax.f32 %v4702_v43, 0.0 }
 0x310   : > { %4766 = vst [vmem:[%s8316_s9 + $0x68] sm:$0xff] %v4734_v54 }
 0x311   : > { %6023 = shalt.err (!%p6020_p3)
}
 0x312   : > { %s6061_s29 = smov 128   ;;  %s6062_s7 = smov 8  }
 0x313   : > { %5944 = dma.vmem_to_hbm [thread:$0]  (%p6126_p5), %s4799_s14, 4096, %s4801_s20, %s4786_s19, %s6061_s29, %s6061_s29, %s6062_s7  }
 0x314 PF: > { %p5950_p4 = scmp.ge.s32.totalorder %s6058_s18, 2  ;;  %s4815_s8 = sand.u32 1, %s6046_s15  }
 0x315   : > { %s4816_s9 = scalar_lea.sflag [#allocation5], %s4815_s8 }
 0x316   : > { %p5947_p7 = pnand %p5950_p4, %p6130_p6 }
 0x318   : > { %p5948_p8 = pneg %p5947_p7 }
 0x31a   : > { %6041 = dma.done.wait (%p5948_p8), %s4816_s9, 4096  }
 0x31b   : > { %6043 = vsyncadd (%p5948_p8), %s4816_s9, 4294963200  ;;  %p14_p9 = scmp.ge.s32.totalorder %s6113_s21, 6   ;;  %s8649_s15 = smov %s6050_s16 }
 0x31c   : > { %s8650_s16 = smov %s6054_s17  ;;  %s8651_s17 = smov %s6124_s24 }
 0x31d   : > { %s8652_s18 = smov %s6113_s21  ;;  %16 = sbr.rel (!%p14_p9) target bundleno = 3 (0x3), region = 75 }
 0x322   :  { %4822 = vsyncpa [#allocation5], 1 }
 0x323   :  { %4824 = vsyncpa [#allocation5 + $0x1], 1 }

</bundles_post_ra>
